<compile_context>
chip_gen: v7x
topology: tpu7x:2x2x1
jax: 0.10.0
libtpu: 0.0.40
codegen_flags: <defaults>
</compile_context>

<pallas_src>
import functools

import jax
import jax.numpy as jnp
from jax.experimental import pallas as pl
from jax.experimental.pallas import tpu as pltpu


KSIZE = 3
STRIDE = 2
PAD = 1
CHANNELS = (3, 16, 32, 32)   # input -> conv1 -> conv2 -> conv3


def _conv_out(n):
    return (n + 2 * PAD - KSIZE) // STRIDE + 1


def _round_up(x, m):
    return ((x + m - 1) // m) * m


# ----------------------------------------------------------------------------
# Fused Pallas kernel: conv1 -> conv2 -> conv3 -> global avg pool -> fc
# (each layer folded into one dense bf16 matmul; batch on the M axis)
# ----------------------------------------------------------------------------

def fused_encoder_kernel(x_ref,
                         m1_ref, b1_ref,
                         m2_ref, b2_ref,
                         m3_ref, b3_ref,
                         m4_ref, bfc_ref,
                         o_ref):
    """SimpleConvs forward for TB images, entirely VMEM-resident.

    Activations are (TB, C*H*W) row-major (NCHW flattened), so the input is consumed
    natively.  Each conv layer is one matmul against a pre-folded (Cin*Sin, Cout*Sout)
    matrix; avg-pool + fc are folded into m4.  bf16 operands, f32 accumulation.
    """
    a0 = x_ref[...]                                                        # (TB, 768) bf16
    a1 = jnp.maximum(
        jnp.dot(a0, m1_ref[...], preferred_element_type=jnp.float32) + b1_ref[...],
        0.0).astype(jnp.bfloat16)                                          # (TB, 1024)
    a2 = jnp.maximum(
        jnp.dot(a1, m2_ref[...], preferred_element_type=jnp.float32) + b2_ref[...],
        0.0).astype(jnp.bfloat16)                                          # (TB, 512)
    a3 = jnp.maximum(
        jnp.dot(a2, m3_ref[...], preferred_element_type=jnp.float32) + b3_ref[...],
        0.0).astype(jnp.bfloat16)                                          # (TB, 128)
    o_ref[...] = (
        jnp.dot(a3, m4_ref[...], preferred_element_type=jnp.float32) + bfc_ref[...])  # (TB, D_pad)


# ----------------------------------------------------------------------------
# One-time parameter preprocessing (hoisted out of the forward pass)
# ----------------------------------------------------------------------------

def _make_gather_t(h, w):
    """Per-tap gather matrices Gt_k: (9, h*w, oh*ow), 0/1 valued, f32.

    Gt_k[q, p] = 1 iff input pixel q is the tap-(ki,kj) source of output pixel p
    for a k3/s2/p1 conv (rows for out-of-bounds taps are all zero == zero padding).
    """
    oh, ow = _conv_out(h), _conv_out(w)
    q = jnp.arange(h * w)
    mats = []
    for ki in range(KSIZE):
        for kj in range(KSIZE):
            ih = jnp.arange(oh) * STRIDE + ki - PAD                       # (oh,)
            iw = jnp.arange(ow) * STRIDE + kj - PAD                       # (ow,)
            valid = ((ih[:, None] >= 0) & (ih[:, None] < h)
                     & (iw[None, :] >= 0) & (iw[None, :] < w))            # (oh, ow)
            lin = ih[:, None] * w + iw[None, :]
            tgt = jnp.where(valid, lin, -1).reshape(-1)                   # (oh*ow,)
            mats.append((q[:, None] == tgt[None, :]).astype(jnp.float32))
    return jnp.stack(mats, axis=0)


def _fold_conv(w_oihw, h, w):
    """Fold gather + conv weights into one (Cin*Sin, Cout*Sout) bf16 matrix."""
    cout, cin, kh, kw = w_oihw.shape
    g = _make_gather_t(h, w)                                              # (9, Sin, Sout) f32
    wt = jnp.transpose(w_oihw, (2, 3, 0, 1)).reshape(kh * kw, cout, cin)  # (9, Cout, Cin)
    # M[(cin, q), (cout, p)] = sum_k G[k, q, p] * W[k, cout, cin]
    m = jnp.einsum('kqp,koc->cqop', g, wt.astype(jnp.float32))
    s_in, s_out = h * w, _conv_out(h) * _conv_out(w)
    return m.reshape(cin * s_in, cout * s_out).astype(jnp.bfloat16)


def init_params(key, encoder_dim):
    """Deterministic synthetic parameters in PyTorch layouts (conv OIHW, fc (in,out))."""
    ks = jax.random.split(key, 8)
    scale = 0.1
    return {
        "conv1_w": scale * jax.random.normal(ks[0], (16, 3, 3, 3), jnp.float32),
        "conv1_b": scale * jax.random.normal(ks[1], (16,), jnp.float32),
        "conv2_w": scale * jax.random.normal(ks[2], (32, 16, 3, 3), jnp.float32),
        "conv2_b": scale * jax.random.normal(ks[3], (32,), jnp.float32),
        "conv3_w": scale * jax.random.normal(ks[4], (32, 32, 3, 3), jnp.float32),
        "conv3_b": scale * jax.random.normal(ks[5], (32,), jnp.float32),
        "fc_w": scale * jax.random.normal(ks[6], (32, encoder_dim), jnp.float32),
        "fc_b": scale * jax.random.normal(ks[7], (encoder_dim,), jnp.float32),
    }


def prepare_params(params, encoder_dim, h=16, w=16):
    """Fold conv layers, pool and fc into dense bf16 matrices + f32 bias rows."""
    d_pad = _round_up(encoder_dim, 128)

    h1, w1 = _conv_out(h), _conv_out(w)
    h2, w2 = _conv_out(h1), _conv_out(w1)
    h3, w3 = _conv_out(h2), _conv_out(w2)
    s1, s2, s3 = h1 * w1, h2 * w2, h3 * w3

    # Conv layers -> dense matrices + spatially-replicated bias rows.
    m1 = _fold_conv(params["conv1_w"], h, w)                              # (768, 1024)
    m2 = _fold_conv(params["conv2_w"], h1, w1)                            # (1024, 512)
    m3 = _fold_conv(params["conv3_w"], h2, w2)                            # (512, 128)
    b1 = jnp.repeat(params["conv1_b"], s1).reshape(1, -1)                 # (1, 1024) f32
    b2 = jnp.repeat(params["conv2_b"], s2).reshape(1, -1)                 # (1, 512)  f32
    b3 = jnp.repeat(params["conv3_b"], s3).reshape(1, -1)                 # (1, 128)  f32

    # avg-pool + fc folded: M4[(c, p), d] = fc_w[c, d] / S3 ; zero-padded to D_pad lanes.
    m4 = jnp.repeat(params["fc_w"] / float(s3), s3, axis=0)               # (C3*S3, D)
    m4 = jnp.zeros((m4.shape[0], d_pad), jnp.float32).at[:, :encoder_dim].set(m4)
    m4 = m4.astype(jnp.bfloat16)                                          # (128, D_pad)
    bfc = jnp.zeros((1, d_pad), jnp.float32).at[0, :encoder_dim].set(params["fc_b"])

    prepared = {"m1": m1, "b1": b1, "m2": m2, "b2": b2,
                "m3": m3, "b3": b3, "m4": m4, "bfc": bfc}
    return prepared, d_pad


# ----------------------------------------------------------------------------
# ImageEncoder.forward (simpleconvs branch) — single fused, batch-blocked pallas_call
# ----------------------------------------------------------------------------

@functools.partial(jax.jit, static_argnames=("encoder_dim", "d_pad", "tb"))
def image_encoder_forward(prepared, x_nchw, *, encoder_dim, d_pad, tb):
    """ImageEncoder.forward for enc_type='simpleconvs':
       x = enc(x); mu = x; logvar = None; return (x, (mu, logvar))"""
    n, c, h, w = x_nchw.shape
    s0 = c * h * w
    n_pad = _round_up(n, tb)

    # NCHW flattened row-major == (cin, pixel) channel-major layout the folded
    # matrices expect; cast to bf16 here so the HBM->VMEM DMA moves half the bytes.
    x2d = x_nchw.reshape(n, s0).astype(jnp.bfloat16)
    if n_pad != n:
        x2d = jnp.pad(x2d, ((0, n_pad - n), (0, 0)))                      # batch remainder

    p = prepared
    weight_names = ("m1", "b1", "m2", "b2", "m3", "b3", "m4", "bfc")
    const2 = lambda i: (0, 0)

    # Advisory cost estimate (per-call): 4 matmuls per image + weight/activation bytes.
    flops = 2 * n_pad * (p["m1"].shape[0] * p["m1"].shape[1]
                         + p["m2"].shape[0] * p["m2"].shape[1]
                         + p["m3"].shape[0] * p["m3"].shape[1]
                         + p["m4"].shape[0] * p["m4"].shape[1])
    weight_bytes = sum(int(p[k].size) * p[k].dtype.itemsize for k in weight_names)
    bytes_accessed = int(x2d.size) * 2 + n_pad * d_pad * 4 + weight_bytes

    out_pad = pl.pallas_call(
        fused_encoder_kernel,
        out_shape=jax.ShapeDtypeStruct((n_pad, d_pad), jnp.float32),
        grid=(n_pad // tb,),
        in_specs=[pl.BlockSpec((tb, s0), lambda i: (i, 0))] +
                 [pl.BlockSpec(p[name].shape, const2) for name in weight_names],
        out_specs=pl.BlockSpec((tb, d_pad), lambda i: (i, 0)),
        compiler_params=pltpu.CompilerParams(
            dimension_semantics=("parallel",)),
        cost_estimate=pl.CostEstimate(flops=flops, transcendentals=0,
                                      bytes_accessed=bytes_accessed),
    )(x2d, *(p[name] for name in weight_names))

    x = out_pad[:n, :encoder_dim]
    mu = x
    logvar = None  # TODO(synk): variational (mu, logvar) heads only exist for mobilenet/vqvae branches
    return x, (mu, logvar)


def pick_batch_tile(n):
    """TB: multiple of 8 (sublane), capped at 128 (MXU-filling M); pads tiny batches."""
    return min(128, _round_up(max(n, 1), 8))


# ----------------------------------------------------------------------------
# Pure-JAX f32 reference (XLA conv) for validation
# ----------------------------------------------------------------------------

def reference_forward(params, x_nchw):
    x = x_nchw
    for wn, bn in (("conv1_w", "conv1_b"), ("conv2_w", "conv2_b"), ("conv3_w", "conv3_b")):
        x = jax.lax.conv_general_dilated(
            x, params[wn], window_strides=(STRIDE, STRIDE),
            padding=((PAD, PAD), (PAD, PAD)),
            dimension_numbers=("NCHW", "OIHW", "NCHW"))
        x = jnp.maximum(x + params[bn][None, :, None, None], 0.0)
    pooled = jnp.mean(x, axis=(2, 3))
    return pooled @ params["fc_w"] + params["fc_b"]


if __name__ == "__main__":
    encoder_dim = 32
    key = jax.random.PRNGKey(0)
    k_params, k_x = jax.random.split(key)

    params = init_params(k_params, encoder_dim)
    prepared, d_pad = prepare_params(params, encoder_dim, h=16, w=16)

    # PyTorch-style NCHW input: batch=2, channels=3, spatial=16x16
    x = jax.random.normal(k_x, (2, 3, 16, 16), jnp.float32)
    tb = pick_batch_tile(x.shape[0])

    out, (mu, logvar) = image_encoder_forward(
        prepared, x, encoder_dim=encoder_dim, d_pad=d_pad, tb=tb)
    jax.block_until_ready(out)
    jax.block_until_ready(mu)

    assert out.shape == (2, encoder_dim)
    assert mu.shape == (2, encoder_dim)
    assert logvar is None

    # Loose tolerance: kernel uses bf16 MXU operands with f32 accumulation.
    ref = reference_forward(params, x)
    err = float(jnp.max(jnp.abs(out - ref)))
    assert err < 5e-2, f"max abs err vs reference: {err}"

    print("KERNEL_OK")
</pallas_src>

<mosaic_0001>
module attributes {stable_mosaic.version = 11 : i64} {
  func.func @fused_encoder_kernel(%arg0: i32, %arg1: memref<8x768xbf16, #tpu.memory_space<vmem>>, %arg2: memref<768x1024xbf16, #tpu.memory_space<vmem>>, %arg3: memref<1x1024xf32, #tpu.memory_space<vmem>>, %arg4: memref<1024x512xbf16, #tpu.memory_space<vmem>>, %arg5: memref<1x512xf32, #tpu.memory_space<vmem>>, %arg6: memref<512x128xbf16, #tpu.memory_space<vmem>>, %arg7: memref<1x128xf32, #tpu.memory_space<vmem>>, %arg8: memref<128x128xbf16, #tpu.memory_space<vmem>>, %arg9: memref<1x128xf32, #tpu.memory_space<vmem>>, %arg10: memref<8x128xf32, #tpu.memory_space<vmem>>) attributes {dimension_semantics = [#tpu.dimension_semantics<parallel>], iteration_bounds = array<i64: 1>, scalar_prefetch = 0 : i64, scratch_operands = 0 : i64, tpu.core_type = #tpu.core_type<tc>, window_params = [{transform_indices = @transform_0, window_bounds = array<i64: 8, 768>}, {pipeline_mode = #tpu.pipeline_mode<synchronous>, transform_indices = @transform_1, window_bounds = array<i64: 768, 1024>}, {pipeline_mode = #tpu.pipeline_mode<synchronous>, transform_indices = @transform_2, window_bounds = array<i64: 1, 1024>}, {pipeline_mode = #tpu.pipeline_mode<synchronous>, transform_indices = @transform_3, window_bounds = array<i64: 1024, 512>}, {pipeline_mode = #tpu.pipeline_mode<synchronous>, transform_indices = @transform_4, window_bounds = array<i64: 1, 512>}, {pipeline_mode = #tpu.pipeline_mode<synchronous>, transform_indices = @transform_5, window_bounds = array<i64: 512, 128>}, {pipeline_mode = #tpu.pipeline_mode<synchronous>, transform_indices = @transform_6, window_bounds = array<i64: 1, 128>}, {pipeline_mode = #tpu.pipeline_mode<synchronous>, transform_indices = @transform_7, window_bounds = array<i64: 128, 128>}, {pipeline_mode = #tpu.pipeline_mode<synchronous>, transform_indices = @transform_8, window_bounds = array<i64: 1, 128>}, {transform_indices = @transform_9, window_bounds = array<i64: 8, 128>}]} {
    %c0 = arith.constant 0 : index
    %c0_0 = arith.constant 0 : index
    %0 = vector.load %arg1[%c0, %c0_0] : memref<8x768xbf16, #tpu.memory_space<vmem>>, vector<8x768xbf16>
    %c0_1 = arith.constant 0 : index
    %c0_2 = arith.constant 0 : index
    %1 = vector.load %arg2[%c0_1, %c0_2] : memref<768x1024xbf16, #tpu.memory_space<vmem>>, vector<768x1024xbf16>
    %cst = arith.constant dense<0.000000e+00> : vector<8x1024xf32>
    %2 = tpu.matmul %0, %1, %cst {dimension_numbers = #tpu.dot_dimension_numbers<[1], [0], [0], [1], [0, 0, 1, 1], [], []>} : vector<8x768xbf16>, vector<768x1024xbf16>, vector<8x1024xf32> -> vector<8x1024xf32>
    %c0_3 = arith.constant 0 : index
    %c0_4 = arith.constant 0 : index
    %3 = vector.load %arg3[%c0_3, %c0_4] : memref<1x1024xf32, #tpu.memory_space<vmem>>, vector<1x1024xf32>
    %4 = vector.broadcast %3 : vector<1x1024xf32> to vector<8x1024xf32>
    %5 = arith.addf %2, %4 : vector<8x1024xf32>
    %cst_5 = arith.constant 0.000000e+00 : f32
    %6 = vector.broadcast %cst_5 : f32 to vector<8x1024xf32>
    %7 = arith.maximumf %5, %6 : vector<8x1024xf32>
    %8 = arith.truncf %7 : vector<8x1024xf32> to vector<8x1024xbf16>
    %c0_6 = arith.constant 0 : index
    %c0_7 = arith.constant 0 : index
    %9 = vector.load %arg4[%c0_6, %c0_7] : memref<1024x512xbf16, #tpu.memory_space<vmem>>, vector<1024x512xbf16>
    %cst_8 = arith.constant dense<0.000000e+00> : vector<8x512xf32>
    %10 = tpu.matmul %8, %9, %cst_8 {dimension_numbers = #tpu.dot_dimension_numbers<[1], [0], [0], [1], [0, 0, 1, 1], [], []>} : vector<8x1024xbf16>, vector<1024x512xbf16>, vector<8x512xf32> -> vector<8x512xf32>
    %c0_9 = arith.constant 0 : index
    %c0_10 = arith.constant 0 : index
    %11 = vector.load %arg5[%c0_9, %c0_10] : memref<1x512xf32, #tpu.memory_space<vmem>>, vector<1x512xf32>
    %12 = vector.broadcast %11 : vector<1x512xf32> to vector<8x512xf32>
    %13 = arith.addf %10, %12 : vector<8x512xf32>
    %cst_11 = arith.constant 0.000000e+00 : f32
    %14 = vector.broadcast %cst_11 : f32 to vector<8x512xf32>
    %15 = arith.maximumf %13, %14 : vector<8x512xf32>
    %16 = arith.truncf %15 : vector<8x512xf32> to vector<8x512xbf16>
    %c0_12 = arith.constant 0 : index
    %c0_13 = arith.constant 0 : index
    %17 = vector.load %arg6[%c0_12, %c0_13] : memref<512x128xbf16, #tpu.memory_space<vmem>>, vector<512x128xbf16>
    %cst_14 = arith.constant dense<0.000000e+00> : vector<8x128xf32>
    %18 = tpu.matmul %16, %17, %cst_14 {dimension_numbers = #tpu.dot_dimension_numbers<[1], [0], [0], [1], [0, 0, 1, 1], [], []>} : vector<8x512xbf16>, vector<512x128xbf16>, vector<8x128xf32> -> vector<8x128xf32>
    %c0_15 = arith.constant 0 : index
    %c0_16 = arith.constant 0 : index
    %19 = vector.load %arg7[%c0_15, %c0_16] : memref<1x128xf32, #tpu.memory_space<vmem>>, vector<1x128xf32>
    %20 = vector.broadcast %19 : vector<1x128xf32> to vector<8x128xf32>
    %21 = arith.addf %18, %20 : vector<8x128xf32>
    %cst_17 = arith.constant 0.000000e+00 : f32
    %22 = vector.broadcast %cst_17 : f32 to vector<8x128xf32>
    %23 = arith.maximumf %21, %22 : vector<8x128xf32>
    %24 = arith.truncf %23 : vector<8x128xf32> to vector<8x128xbf16>
    %c0_18 = arith.constant 0 : index
    %c0_19 = arith.constant 0 : index
    %25 = vector.load %arg8[%c0_18, %c0_19] : memref<128x128xbf16, #tpu.memory_space<vmem>>, vector<128x128xbf16>
    %cst_20 = arith.constant dense<0.000000e+00> : vector<8x128xf32>
    %26 = tpu.matmul %24, %25, %cst_20 {dimension_numbers = #tpu.dot_dimension_numbers<[1], [0], [0], [1], [0, 0, 1, 1], [], []>} : vector<8x128xbf16>, vector<128x128xbf16>, vector<8x128xf32> -> vector<8x128xf32>
    %c0_21 = arith.constant 0 : index
    %c0_22 = arith.constant 0 : index
    %27 = vector.load %arg9[%c0_21, %c0_22] : memref<1x128xf32, #tpu.memory_space<vmem>>, vector<1x128xf32>
    %28 = vector.broadcast %27 : vector<1x128xf32> to vector<8x128xf32>
    %29 = arith.addf %26, %28 : vector<8x128xf32>
    %c0_23 = arith.constant 0 : index
    %c0_24 = arith.constant 0 : index
    %30 = vector.load %arg10[%c0_23, %c0_24] : memref<8x128xf32, #tpu.memory_space<vmem>>, vector<8x128xf32>
    tpu.vector_store %arg10[%c0_23, %c0_24], %29 {strides = array<i32>} : memref<8x128xf32, #tpu.memory_space<vmem>>, vector<8x128xf32>,
    return
  }
  func.func @transform_0(%arg0: i32) -> (i32, i32) {
    %c0_i32 = arith.constant 0 : i32
    %c0_i32_0 = arith.constant 0 : i32
    return %arg0, %c0_i32 : i32, i32
  }
  func.func @transform_1(%arg0: i32) -> (i32, i32) {
    %c0_i32 = arith.constant 0 : i32
    %c0_i32_0 = arith.constant 0 : i32
    %c0_i32_1 = arith.constant 0 : i32
    return %c0_i32, %c0_i32_0 : i32, i32
  }
  func.func @transform_2(%arg0: i32) -> (i32, i32) {
    %c0_i32 = arith.constant 0 : i32
    %c0_i32_0 = arith.constant 0 : i32
    %c0_i32_1 = arith.constant 0 : i32
    return %c0_i32, %c0_i32_0 : i32, i32
  }
  func.func @transform_3(%arg0: i32) -> (i32, i32) {
    %c0_i32 = arith.constant 0 : i32
    %c0_i32_0 = arith.constant 0 : i32
    %c0_i32_1 = arith.constant 0 : i32
    return %c0_i32, %c0_i32_0 : i32, i32
  }
  func.func @transform_4(%arg0: i32) -> (i32, i32) {
    %c0_i32 = arith.constant 0 : i32
    %c0_i32_0 = arith.constant 0 : i32
    %c0_i32_1 = arith.constant 0 : i32
    return %c0_i32, %c0_i32_0 : i32, i32
  }
  func.func @transform_5(%arg0: i32) -> (i32, i32) {
    %c0_i32 = arith.constant 0 : i32
    %c0_i32_0 = arith.constant 0 : i32
    %c0_i32_1 = arith.constant 0 : i32
    return %c0_i32, %c0_i32_0 : i32, i32
  }
  func.func @transform_6(%arg0: i32) -> (i32, i32) {
    %c0_i32 = arith.constant 0 : i32
    %c0_i32_0 = arith.constant 0 : i32
    %c0_i32_1 = arith.constant 0 : i32
    return %c0_i32, %c0_i32_0 : i32, i32
  }
  func.func @transform_7(%arg0: i32) -> (i32, i32) {
    %c0_i32 = arith.constant 0 : i32
    %c0_i32_0 = arith.constant 0 : i32
    %c0_i32_1 = arith.constant 0 : i32
    return %c0_i32, %c0_i32_0 : i32, i32
  }
  func.func @transform_8(%arg0: i32) -> (i32, i32) {
    %c0_i32 = arith.constant 0 : i32
    %c0_i32_0 = arith.constant 0 : i32
    %c0_i32_1 = arith.constant 0 : i32
    return %c0_i32, %c0_i32_0 : i32, i32
  }
  func.func @transform_9(%arg0: i32) -> (i32, i32) {
    %c0_i32 = arith.constant 0 : i32
    %c0_i32_0 = arith.constant 0 : i32
    return %arg0, %c0_i32 : i32, i32
  }
}

</mosaic_0001>

<bundles_post_ra>
// kernel: image_encoder_forward.1
= control target key start
LH: loop header
LB: loop body
LE: loop exit
PB: predicated region body
PF: predicated region fallthrough
CT: control target
= control target key end

     0   :  { %14 = vsyncpa [#allocation3], 0  ;;  %s7116_s0 = inlined_call_operand.vmem [shape: bf16[8,768], index: 0, kind: input, shape index: {}]   ;;  %s7117_s1 = inlined_call_operand.hbm [shape: bf16[768,1024], index: 1, kind: input, shape index: {}]   ;;  %s7118_s2 = inlined_call_operand.hbm [shape: f32[1,1024], index: 2, kind: input, shape index: {}]   ;;  %s7119_s3 = inlined_call_operand.hbm [shape: bf16[1024,512], index: 3, kind: input, shape index: {}]   ;;  %s7120_s4 = inlined_call_operand.hbm [shape: f32[1,512], index: 4, kind: input, shape index: {}]   ;;  %s7121_s5 = inlined_call_operand.hbm [shape: bf16[512,128], index: 5, kind: input, shape index: {}]   ;;  %s7122_s6 = inlined_call_operand.hbm [shape: f32[1,128], index: 6, kind: input, shape index: {}]   ;;  %s7123_s7 = inlined_call_operand.hbm [shape: bf16[128,128], index: 7, kind: input, shape index: {}]   ;;  %s7124_s8 = inlined_call_operand.hbm [shape: f32[1,128], index: 8, kind: input, shape index: {}]   ;;  %s7125_s9 = inlined_call_operand.vmem [shape: f32[8,128], index: 9, kind: output, shape index: {}]  }
   0x1   :  { %15 = vsyncpa [#allocation5], 0 }
   0x2   :  { %16 = vsyncpa [#allocation8], 0 }
   0x3   :  { %17 = vsyncpa [#allocation11], 0 }
   0x4   :  { %18 = vsyncpa [#allocation14], 0  ;;  %s6834_s30 = smov [#allocation4]   ;;  %s6835_s11 = smov [#allocation7]  }
   0x5   :  { %s39_s10 = sshll.u32 %s6834_s30, 4  ;;  %s61_s12 = sshll.u32 %s6835_s11, 4  ;;  %s40_s10 = int_to_ptr.vmem [resolvable:$true] %s39_s10  ;;  %s62_s12 = int_to_ptr.vmem [resolvable:$true] %s61_s12 }
   0x6   :  { %s6648_s15 = scalar_lea.hbm %s7118_s2, 128 }
   0x7   :  { %p6649_p0 = scmp.ne.s32.totalorder %s7118_s2, %s6648_s15  ;;  %p6652_p1 = scmp.lt.u32.totalorder %s6648_s15, %s7118_s2 }
   0x9   :  { %p6654_p2 = pnand %p6652_p1, %p6649_p0 }
   0xb   :  { %6657 = shalt.err (!%p6654_p2)
}
   0xc   :  { %s6658_s20 = scalar_lea.vmem %s40_s10, 128  ;;  %p6663_p4 = scmp.lt.s32.totalorder %s40_s10, %s40_s10 }
   0xd   :  { %p6659_p3 = scmp.ne.s32.totalorder %s40_s10, %s6658_s20  ;;  %p6664_p5 = scmp.lt.s32.totalorder %s6658_s20, %s6658_s20 }
   0xf   :  { %p6665_p6 = por %p6664_p5, %p6663_p4 }
  0x11   :  { %p6666_p7 = pnand %p6665_p6, %p6659_p3 }
  0x13   :  { %6669 = shalt.err (!%p6666_p7)
}
  0x14   :  { %42 = dma.hbm_to_vmem [thread:$0]  %s7118_s2, 128, %s40_s10, [#allocation5]  }
  0x15   :  { %s6670_s25 = scalar_lea.hbm %s7120_s4, 64 }
  0x16   :  { %p6671_p8 = scmp.ne.s32.totalorder %s7120_s4, %s6670_s25  ;;  %p6674_p9 = scmp.lt.u32.totalorder %s6670_s25, %s7120_s4 }
  0x18   :  { %p6676_p10 = pnand %p6674_p9, %p6671_p8 }
  0x1a   :  { %6679 = shalt.err (!%p6676_p10)
}
  0x1b   :  { %s6680_s30 = scalar_lea.vmem %s62_s12, 64  ;;  %p6685_p12 = scmp.lt.s32.totalorder %s62_s12, %s62_s12 }
  0x1c   :  { %p6681_p11 = scmp.ne.s32.totalorder %s62_s12, %s6680_s30  ;;  %p6686_p13 = scmp.lt.s32.totalorder %s6680_s30, %s6680_s30 }
  0x1e   :  { %p6687_p0 = por %p6686_p13, %p6685_p12 }
  0x20   :  { %p6688_p1 = pnand %p6687_p0, %p6681_p11 }
  0x22   :  { %6691 = shalt.err (!%p6688_p1)
}
  0x23   :  { %64 = dma.hbm_to_vmem [thread:$0]  %s7120_s4, 64, %s62_s12, [#allocation8]  }
  0x24   :  { %s6836_s11 = smov [#allocation10]   ;;  %s6837_s14 = smov [#allocation2]  }
  0x25   :  { %s83_s13 = sshll.u32 %s6836_s11, 4  ;;  %s26_s15 = sshll.u32 %s6837_s14, 4  ;;  %s84_s13 = int_to_ptr.vmem [resolvable:$true] %s83_s13  ;;  %s6924_s15 = int_to_ptr.vmem [resolvable:$true] %s26_s15 }
  0x26   :  { %s6692_s18 = scalar_lea.hbm %s7122_s6, 16 }
  0x27   :  { %p6693_p2 = scmp.ne.s32.totalorder %s7122_s6, %s6692_s18  ;;  %p6696_p3 = scmp.lt.u32.totalorder %s6692_s18, %s7122_s6 }
  0x29   :  { %p6698_p4 = pnand %p6696_p3, %p6693_p2 }
  0x2b   :  { %6701 = shalt.err (!%p6698_p4)
}
  0x2c   :  { %s6702_s4 = scalar_lea.vmem %s84_s13, 16  ;;  %s6706_s12 = scalar_lea.vmem %s84_s13, 32 }
  0x2d   :  { %p6703_p5 = scmp.ne.s32.totalorder %s84_s13, %s6702_s4  ;;  %p6707_p6 = scmp.lt.s32.totalorder %s84_s13, %s84_s13 }
  0x2e   :  { %p6708_p7 = scmp.lt.s32.totalorder %s6706_s12, %s6702_s4 }
  0x30   :  { %p6709_p8 = por %p6708_p7, %p6707_p6 }
  0x32   :  { %p6710_p9 = pnand %p6709_p8, %p6703_p5 }
  0x34   :  { %6713 = shalt.err (!%p6710_p9)
}
  0x35   :  { %86 = dma.hbm_to_vmem [thread:$0]  %s7122_s6, 16, %s84_s13, [#allocation11]  }
  0x36   :  { %s6714_s27 = scalar_lea.hbm %s7117_s1, 49152 }
  0x37   :  { %p6715_p10 = scmp.ne.s32.totalorder %s7117_s1, %s6714_s27  ;;  %p6718_p11 = scmp.lt.u32.totalorder %s6714_s27, %s7117_s1 }
  0x39   :  { %p6720_p12 = pnand %p6718_p11, %p6715_p10 }
  0x3b   :  { %6723 = shalt.err (!%p6720_p12)
}
  0x3c   :  { %s6724_s10 = scalar_lea.vmem %s6924_s15, 49152  ;;  %p6729_p0 = scmp.lt.s32.totalorder %s6924_s15, %s6924_s15 }
  0x3d   :  { %p6725_p13 = scmp.ne.s32.totalorder %s6924_s15, %s6724_s10  ;;  %p6730_p1 = scmp.lt.s32.totalorder %s6724_s10, %s6724_s10 }
  0x3f   :  { %p6731_p2 = por %p6730_p1, %p6729_p0 }
  0x41   :  { %p6732_p3 = pnand %p6731_p2, %p6725_p13 }
  0x43   :  { %6735 = shalt.err (!%p6732_p3)
}
  0x44   :  { %s6838_s6 = smov 512   ;;  %s6839_s11 = smov 32  }
  0x45   :  { %32 = dma.hbm_to_vmem [thread:$0]  %s7117_s1, 49152, %s6924_s15, [#allocation3], %s6838_s6, %s6838_s6, %s6839_s11  }
  0x46   :  { %s6840_s16 = smov [#allocation6]   ;;  %s6736_s20 = scalar_lea.hbm %s7119_s3, 32768 }
  0x47   :  { %s48_s17 = sshll.u32 %s6840_s16, 4  ;;  %p6737_p4 = scmp.ne.s32.totalorder %s7119_s3, %s6736_s20  ;;  %s49_s17 = int_to_ptr.vmem [resolvable:$true] %s48_s17 }
  0x48   :  { %p6740_p5 = scmp.lt.u32.totalorder %s6736_s20, %s7119_s3 }
  0x4a   :  { %p6742_p6 = pnand %p6740_p5, %p6737_p4 }
  0x4c   :  { %6745 = shalt.err (!%p6742_p6)
}
  0x4d   :  { %s6746_s23 = scalar_lea.vmem %s49_s17, 32768  ;;  %p6751_p8 = scmp.lt.s32.totalorder %s49_s17, %s49_s17 }
  0x4e   :  { %p6747_p7 = scmp.ne.s32.totalorder %s49_s17, %s6746_s23  ;;  %p6752_p9 = scmp.lt.s32.totalorder %s6746_s23, %s6746_s23 }
  0x50   :  { %p6753_p10 = por %p6752_p9, %p6751_p8 }
  0x52   :  { %p6754_p11 = pnand %p6753_p10, %p6747_p7 }
  0x54   :  { %6757 = shalt.err (!%p6754_p11)
}
  0x55   :  { %s6841_s1 = smov 256   ;;  %s6842_s15 = smov 16  }
  0x56   :  { %54 = dma.hbm_to_vmem [thread:$0]  %s7119_s3, 32768, %s49_s17, [#allocation5], %s6841_s1, %s6841_s1, %s6842_s15  }
  0x57   :  { %s6843_s26 = smov [#allocation9]   ;;  %s6758_s30 = scalar_lea.hbm %s7121_s5, 4096 }
  0x58   :  { %s70_s27 = sshll.u32 %s6843_s26, 4  ;;  %p6759_p12 = scmp.ne.s32.totalorder %s7121_s5, %s6758_s30  ;;  %s71_s27 = int_to_ptr.vmem [resolvable:$true] %s70_s27 }
  0x59   :  { %p6762_p13 = scmp.lt.u32.totalorder %s6758_s30, %s7121_s5 }
  0x5b   :  { %p6764_p0 = pnand %p6762_p13, %p6759_p12 }
  0x5d   :  { %6767 = shalt.err (!%p6764_p0)
}
  0x5e   :  { %s6768_s13 = scalar_lea.vmem %s71_s27, 4096  ;;  %p6773_p2 = scmp.lt.s32.totalorder %s71_s27, %s71_s27 }
  0x5f   :  { %p6769_p1 = scmp.ne.s32.totalorder %s71_s27, %s6768_s13  ;;  %p6774_p3 = scmp.lt.s32.totalorder %s6768_s13, %s6768_s13 }
  0x61   :  { %p6775_p4 = por %p6774_p3, %p6773_p2 }
  0x63   :  { %p6776_p5 = pnand %p6775_p4, %p6769_p1 }
  0x65   :  { %6779 = shalt.err (!%p6776_p5)
}
  0x66   :  { %s6844_s3 = smov 64   ;;  %s6845_s14 = smov 4  }
  0x67   :  { %76 = dma.hbm_to_vmem [thread:$0]  %s7121_s5, 4096, %s71_s27, [#allocation8], %s6844_s3, %s6844_s3, %s6845_s14  }
  0x68   :  { %s6846_s18 = smov [#allocation12]   ;;  %s6847_s20 = smov [#allocation13]  }
  0x69   :  { %s92_s19 = sshll.u32 %s6846_s18, 4  ;;  %s105_s21 = sshll.u32 %s6847_s20, 4  ;;  %s93_s19 = int_to_ptr.vmem [resolvable:$true] %s92_s19  ;;  %s106_s21 = int_to_ptr.vmem [resolvable:$true] %s105_s21 }
  0x6a   :  { %s6780_s12 = scalar_lea.hbm %s7123_s7, 1024 }
  0x6b   :  { %p6781_p6 = scmp.ne.s32.totalorder %s7123_s7, %s6780_s12  ;;  %p6784_p7 = scmp.lt.u32.totalorder %s6780_s12, %s7123_s7 }
  0x6d   :  { %p6786_p8 = pnand %p6784_p7, %p6781_p6 }
  0x6f   :  { %6789 = shalt.err (!%p6786_p8)
}
  0x70   :  { %s6790_s5 = scalar_lea.vmem %s93_s19, 1024  ;;  %p6795_p10 = scmp.lt.s32.totalorder %s93_s19, %s93_s19 }
  0x71   :  { %p6791_p9 = scmp.ne.s32.totalorder %s93_s19, %s6790_s5  ;;  %p6796_p11 = scmp.lt.s32.totalorder %s6790_s5, %s6790_s5 }
  0x73   :  { %p6797_p12 = por %p6796_p11, %p6795_p10 }
  0x75   :  { %p6798_p13 = pnand %p6797_p12, %p6791_p9 }
  0x77   :  { %6801 = shalt.err (!%p6798_p13)
}
  0x78   :  { %98 = dma.hbm_to_vmem [thread:$0]  %s7123_s7, 1024, %s93_s19, [#allocation11], %s6844_s3, %s6844_s3, %s6845_s14  }
  0x79   :  { %s6802_s29 = scalar_lea.hbm %s7124_s8, 16 }
  0x7a   :  { %p6803_p0 = scmp.ne.s32.totalorder %s7124_s8, %s6802_s29  ;;  %p6806_p1 = scmp.lt.u32.totalorder %s6802_s29, %s7124_s8 }
  0x7c   :  { %p6808_p2 = pnand %p6806_p1, %p6803_p0 }
  0x7e   :  { %6811 = shalt.err (!%p6808_p2)
}
  0x7f   :  { %s6812_s11 = scalar_lea.vmem %s106_s21, 16  ;;  %s6816_s13 = scalar_lea.vmem %s106_s21, 32 }
  0x80   :  { %p6813_p3 = scmp.ne.s32.totalorder %s106_s21, %s6812_s11  ;;  %p6817_p4 = scmp.lt.s32.totalorder %s106_s21, %s106_s21 }
  0x81   :  { %p6818_p5 = scmp.lt.s32.totalorder %s6816_s13, %s6812_s11 }
  0x83   :  { %p6819_p6 = por %p6818_p5, %p6817_p4 }
  0x85   :  { %p6820_p7 = pnand %p6819_p6, %p6813_p3 }
  0x87   :  { %6823 = shalt.err (!%p6820_p7)
}
  0x88   :  { %108 = dma.hbm_to_vmem [thread:$0]  %s7124_s8, 16, %s106_s21, [#allocation14]  }
  0x89   :  { %6824 = dma.done.wait [#allocation3], 49152  }
  0x8a   :  { %6825 = vsyncadd [#allocation3], 4294918144 }
  0x8b   :  { %6826 = dma.done.wait [#allocation5], 32896  }
  0x8c   :  { %6827 = vsyncadd [#allocation5], 4294934400 }
  0x8d   :  { %6828 = dma.done.wait [#allocation8], 4160  }
  0x8e   :  { %6829 = vsyncadd [#allocation8], 4294963136 }
  0x8f   :  { %6830 = dma.done.wait [#allocation11], 1040  }
  0x90   :  { %6831 = vsyncadd [#allocation11], 4294966256 }
  0x91   :  { %6832 = dma.done.wait [#allocation14], 16  }
  0x92   :  { %6833 = vsyncadd [#allocation14], 4294967280  ;;  %v137_v0 = vld [vmem:[#allocation2] sm:$0xff]  ;;  %v138_v2 = vld [vmem:[#allocation2 + $0x8] sm:$0xff]  ;;  %vm6849_vm0 = vmmov 0  }
  0x93   :  { %v141_v1 = vld [vmem:[#allocation2 + $0x20] sm:$0xff]  ;;  %v142_v4 = vld [vmem:[#allocation2 + $0x28] sm:$0xff] }
  0x94   :  { %v5379_v3 = vcombine.high %v137_v0, %v141_v1  ;;  %v5378_v5 = vcombine.low %v137_v0, %v141_v1  ;;  %v145_v6 = vld [vmem:[#allocation2 + $0x40] sm:$0xff]  ;;  %v5381_v8 = vcombine.high %v138_v2, %v142_v4  ;;  %v5380_v9 = vcombine.low %v138_v2, %v142_v4  ;;  %v146_v11 = vld [vmem:[#allocation2 + $0x48] sm:$0xff] }
  0x95   :  { %v149_v7 = vld [vmem:[#allocation2 + $0x60] sm:$0xff]  ;;  %v150_v12 = vld [vmem:[#allocation2 + $0x68] sm:$0xff] }
  0x96   :  { %v5387_v10 = vcombine.high %v145_v6, %v149_v7  ;;  %v153_v13 = vld [vmem:[#allocation2 + $0x80] sm:$0xff]  ;;  %2504 = vmatprep.subr.bf16.mxu0 %v5379_v3  ;;  %v5389_v14 = vcombine.high %v146_v11, %v150_v12  ;;  %v154_v16 = vld [vmem:[#allocation2 + $0x88] sm:$0xff]  ;;  %2627 = vmatprep.subr.bf16.mxu1 %v5381_v8  ;;  %v5386_v18 = vcombine.low %v145_v6, %v149_v7 }
  0x97   :  { %v157_v15 = vld [vmem:[#allocation2 + $0xa0] sm:$0xff]  ;;  %v158_v17 = vld [vmem:[#allocation2 + $0xa8] sm:$0xff]  ;;  %2505 = vmatpush1.bf16.msra.mxu0 %v5378_v5  ;;  %2628 = vmatpush1.bf16.msra.mxu1 %v5380_v9  ;;  %v5388_v19 = vcombine.low %v146_v11, %v150_v12 }
  0x98   :  { %2506 = vmatprep.subr.bf16.mxu0 %v5387_v10  ;;  %v5395_v20 = vcombine.high %v153_v13, %v157_v15  ;;  %2629 = vmatprep.subr.bf16.mxu1 %v5389_v14  ;;  %v5397_v21 = vcombine.high %v154_v16, %v158_v17  ;;  %v161_v22 = vld [vmem:[#allocation2 + $0xc0] sm:$0xff]  ;;  %v162_v24 = vld [vmem:[#allocation2 + $0xc8] sm:$0xff]  ;;  %v5394_v26 = vcombine.low %v153_v13, %v157_v15 }
  0x99   :  { %v165_v23 = vld [vmem:[#allocation2 + $0xe0] sm:$0xff]  ;;  %v166_v25 = vld [vmem:[#allocation2 + $0xe8] sm:$0xff]  ;;  %v5396_v27 = vcombine.low %v154_v16, %v158_v17 }
  0x9a   :  { %v5403_v28 = vcombine.high %v161_v22, %v165_v23  ;;  %v5405_v29 = vcombine.high %v162_v24, %v166_v25  ;;  %v169_v30 = vld [vmem:[#allocation2 + $0x100] sm:$0xff]  ;;  %v170_v32 = vld [vmem:[#allocation2 + $0x108] sm:$0xff]  ;;  %v5402_v34 = vcombine.low %v161_v22, %v165_v23  ;;  %v5404_v35 = vcombine.low %v162_v24, %v166_v25 }
  0x9b   :  { %2507 = vmatpush1.bf16.msra.mxu0 %v5386_v18  ;;  %2630 = vmatpush1.bf16.msra.mxu1 %v5388_v19  ;;  %v173_v31 = vld [vmem:[#allocation2 + $0x120] sm:$0xff]  ;;  %v174_v33 = vld [vmem:[#allocation2 + $0x128] sm:$0xff] }
  0x9c   :  { %2508 = vmatprep.subr.bf16.mxu0 %v5395_v20  ;;  %2631 = vmatprep.subr.bf16.mxu1 %v5397_v21  ;;  %v5411_v36 = vcombine.high %v169_v30, %v173_v31  ;;  %v5413_v37 = vcombine.high %v170_v32, %v174_v33  ;;  %v177_v38 = vld [vmem:[#allocation2 + $0x140] sm:$0xff]  ;;  %v178_v40 = vld [vmem:[#allocation2 + $0x148] sm:$0xff]  ;;  %v5410_v42 = vcombine.low %v169_v30, %v173_v31 }
  0x9d   :  { %v181_v39 = vld [vmem:[#allocation2 + $0x160] sm:$0xff]  ;;  %v182_v41 = vld [vmem:[#allocation2 + $0x168] sm:$0xff]  ;;  %v5412_v43 = vcombine.low %v170_v32, %v174_v33 }
  0x9e   :  { %v5419_v44 = vcombine.high %v177_v38, %v181_v39  ;;  %v5421_v45 = vcombine.high %v178_v40, %v182_v41  ;;  %v185_v46 = vld [vmem:[#allocation2 + $0x180] sm:$0xff]  ;;  %v186_v48 = vld [vmem:[#allocation2 + $0x188] sm:$0xff]  ;;  %v5418_v50 = vcombine.low %v177_v38, %v181_v39  ;;  %v5420_v51 = vcombine.low %v178_v40, %v182_v41 }
  0x9f   :  { %2509 = vmatpush1.bf16.msra.mxu0 %v5394_v26  ;;  %2632 = vmatpush1.bf16.msra.mxu1 %v5396_v27  ;;  %v189_v47 = vld [vmem:[#allocation2 + $0x1a0] sm:$0xff]  ;;  %v190_v49 = vld [vmem:[#allocation2 + $0x1a8] sm:$0xff] }
  0xa0   :  { %2510 = vmatprep.subr.bf16.mxu0 %v5403_v28  ;;  %2633 = vmatprep.subr.bf16.mxu1 %v5405_v29  ;;  %v5427_v52 = vcombine.high %v185_v46, %v189_v47  ;;  %v7006_v53 = vld [vmem:[%s7116_s0] sm:$0xff]  ;;  %v5429_v54 = vcombine.high %v186_v48, %v190_v49  ;;  %v194_v58 = vld [vmem:[#allocation2 + $0x1c8] sm:$0xff]  ;;  %v5426_v60 = vcombine.low %v185_v46, %v189_v47 }
  0xa1   :  { %v193_v55 = vld [vmem:[#allocation2 + $0x1c0] sm:$0xff]  ;;  %v7010_v57 = vcombine.high %v7006_v53, %v7006_v53  ;;  %v198_v59 = vld [vmem:[#allocation2 + $0x1e8] sm:$0xff]  ;;  %v5428_v61 = vcombine.low %v186_v48, %v190_v49 }
  0xa2   :  { %v197_v56 = vld [vmem:[#allocation2 + $0x1e0] sm:$0xff]  ;;  %v5437_v63 = vcombine.high %v194_v58, %v198_v59  ;;  %v202_v2 = vld [vmem:[#allocation2 + $0x208] sm:$0xff]  ;;  %v5436_v5 = vcombine.low %v194_v58, %v198_v59 }
  0xa3   :  { %2511 = vmatpush1.bf16.msra.mxu0 %v5402_v34  ;;  %2634 = vmatpush1.bf16.msra.mxu1 %v5404_v35  ;;  %v5435_v62 = vcombine.high %v193_v55, %v197_v56  ;;  %v201_v0 = vld [vmem:[#allocation2 + $0x200] sm:$0xff]  ;;  %v206_v3 = vld [vmem:[#allocation2 + $0x228] sm:$0xff]  ;;  %v5434_v4 = vcombine.low %v193_v55, %v197_v56 }
  0xa4   :  { %2512 = vmatprep.subr.bf16.mxu0 %v5411_v36  ;;  %2635 = vmatprep.subr.bf16.mxu1 %v5413_v37  ;;  %v205_v1 = vld [vmem:[#allocation2 + $0x220] sm:$0xff]  ;;  %v5445_v7 = vcombine.high %v202_v2, %v206_v3  ;;  %v210_v10 = vld [vmem:[#allocation2 + $0x248] sm:$0xff]  ;;  %v5444_v13 = vcombine.low %v202_v2, %v206_v3 }
  0xa5   :  { %2536 = vmatprep.mubr.bf16.mxu0 %v7010_v57  ;;  %2659 = vmatprep.mubr.bf16.mxu1 %v7010_v57  ;;  %v5443_v6 = vcombine.high %v201_v0, %v205_v1  ;;  %v209_v8 = vld [vmem:[#allocation2 + $0x240] sm:$0xff]  ;;  %v214_v11 = vld [vmem:[#allocation2 + $0x268] sm:$0xff]  ;;  %v5442_v12 = vcombine.low %v201_v0, %v205_v1 }
  0xa6   :  { %v213_v9 = vld [vmem:[#allocation2 + $0x260] sm:$0xff]  ;;  %v5453_v15 = vcombine.high %v210_v10, %v214_v11  ;;  %v218_v18 = vld [vmem:[#allocation2 + $0x288] sm:$0xff]  ;;  %v5452_v21 = vcombine.low %v210_v10, %v214_v11 }
  0xa7   :  { %2513 = vmatpush1.bf16.msra.mxu0 %v5410_v42  ;;  %2636 = vmatpush1.bf16.msra.mxu1 %v5412_v43  ;;  %v5451_v14 = vcombine.high %v209_v8, %v213_v9  ;;  %v217_v16 = vld [vmem:[#allocation2 + $0x280] sm:$0xff]  ;;  %v222_v19 = vld [vmem:[#allocation2 + $0x2a8] sm:$0xff]  ;;  %v5450_v20 = vcombine.low %v209_v8, %v213_v9 }
  0xa8   :  { %2514 = vmatprep.subr.bf16.mxu0 %v5419_v44  ;;  %2637 = vmatprep.subr.bf16.mxu1 %v5421_v45  ;;  %v221_v17 = vld [vmem:[#allocation2 + $0x2a0] sm:$0xff]  ;;  %v5461_v23 = vcombine.high %v218_v18, %v222_v19  ;;  %v226_v26 = vld [vmem:[#allocation2 + $0x2c8] sm:$0xff]  ;;  %v5460_v29 = vcombine.low %v218_v18, %v222_v19 }
  0xa9   :  { %v5459_v22 = vcombine.high %v217_v16, %v221_v17  ;;  %v225_v24 = vld [vmem:[#allocation2 + $0x2c0] sm:$0xff]  ;;  %v230_v27 = vld [vmem:[#allocation2 + $0x2e8] sm:$0xff]  ;;  %v5458_v28 = vcombine.low %v217_v16, %v221_v17 }
  0xaa   :  { %v229_v25 = vld [vmem:[#allocation2 + $0x2e0] sm:$0xff]  ;;  %v5469_v31 = vcombine.high %v226_v26, %v230_v27  ;;  %v234_v34 = vld [vmem:[#allocation2 + $0x308] sm:$0xff]  ;;  %v5468_v37 = vcombine.low %v226_v26, %v230_v27 }
  0xab   :  { %2515 = vmatpush1.bf16.msra.mxu0 %v5418_v50  ;;  %2638 = vmatpush1.bf16.msra.mxu1 %v5420_v51  ;;  %v5467_v30 = vcombine.high %v225_v24, %v229_v25  ;;  %v233_v32 = vld [vmem:[#allocation2 + $0x300] sm:$0xff]  ;;  %v238_v35 = vld [vmem:[#allocation2 + $0x328] sm:$0xff]  ;;  %v5466_v36 = vcombine.low %v225_v24, %v229_v25 }
  0xac   :  { %2516 = vmatprep.subr.bf16.mxu0 %v5427_v52  ;;  %2639 = vmatprep.subr.bf16.mxu1 %v5429_v54  ;;  %v237_v33 = vld [vmem:[#allocation2 + $0x320] sm:$0xff]  ;;  %v5477_v39 = vcombine.high %v234_v34, %v238_v35  ;;  %v242_v42 = vld [vmem:[#allocation2 + $0x348] sm:$0xff]  ;;  %v5476_v45 = vcombine.low %v234_v34, %v238_v35 }
  0xad   :  { %v5475_v38 = vcombine.high %v233_v32, %v237_v33  ;;  %v241_v40 = vld [vmem:[#allocation2 + $0x340] sm:$0xff]  ;;  %v246_v43 = vld [vmem:[#allocation2 + $0x368] sm:$0xff]  ;;  %v5474_v44 = vcombine.low %v233_v32, %v237_v33 }
  0xae   :  { %v245_v41 = vld [vmem:[#allocation2 + $0x360] sm:$0xff]  ;;  %v5485_v47 = vcombine.high %v242_v42, %v246_v43  ;;  %v250_v50 = vld [vmem:[#allocation2 + $0x388] sm:$0xff]  ;;  %v5484_v54 = vcombine.low %v242_v42, %v246_v43 }
  0xaf   :  { %2517 = vmatpush1.bf16.msra.mxu0 %v5426_v60  ;;  %2640 = vmatpush1.bf16.msra.mxu1 %v5428_v61  ;;  %v5483_v46 = vcombine.high %v241_v40, %v245_v41  ;;  %v249_v48 = vld [vmem:[#allocation2 + $0x380] sm:$0xff]  ;;  %v254_v51 = vld [vmem:[#allocation2 + $0x3a8] sm:$0xff]  ;;  %v5482_v52 = vcombine.low %v241_v40, %v245_v41 }
  0xb0   :  { %2518 = vmatprep.subr.bf16.mxu0 %v5435_v62  ;;  %2641 = vmatprep.subr.bf16.mxu1 %v5437_v63  ;;  %v253_v49 = vld [vmem:[#allocation2 + $0x3a0] sm:$0xff]  ;;  %v5493_v56 = vcombine.high %v250_v50, %v254_v51  ;;  %v258_v60 = vld [vmem:[#allocation2 + $0x3c8] sm:$0xff]  ;;  %v5492_v63 = vcombine.low %v250_v50, %v254_v51 }
  0xb1   :  { %v5491_v55 = vcombine.high %v249_v48, %v253_v49  ;;  %v257_v58 = vld [vmem:[#allocation2 + $0x3c0] sm:$0xff]  ;;  %v262_v61 = vld [vmem:[#allocation2 + $0x3e8] sm:$0xff]  ;;  %v5490_v62 = vcombine.low %v249_v48, %v253_v49 }
  0xb2   :  { %v261_v59 = vld [vmem:[#allocation2 + $0x3e0] sm:$0xff]  ;;  %v5501_v1 = vcombine.high %v258_v60, %v262_v61 }
  0xb3   :  { %2519 = vmatpush1.bf16.msra.mxu0 %v5434_v4  ;;  %2642 = vmatpush1.bf16.msra.mxu1 %v5436_v5  ;;  %v5499_v0 = vcombine.high %v257_v58, %v261_v59  ;;  %v265_v2 = vld [vmem:[#allocation2 + $0x400] sm:$0xff]  ;;  %v266_v4 = vld [vmem:[#allocation2 + $0x408] sm:$0xff] }
  0xb4   :  { %2520 = vmatprep.subr.bf16.mxu0 %v5443_v6  ;;  %2643 = vmatprep.subr.bf16.mxu1 %v5445_v7  ;;  %v269_v3 = vld [vmem:[#allocation2 + $0x420] sm:$0xff]  ;;  %v270_v5 = vld [vmem:[#allocation2 + $0x428] sm:$0xff]  ;;  %v5498_v6 = vcombine.low %v257_v58, %v261_v59  ;;  %v5500_v7 = vcombine.low %v258_v60, %v262_v61 }
  0xb5   :  { %v5507_v8 = vcombine.high %v265_v2, %v269_v3  ;;  %v5509_v9 = vcombine.high %v266_v4, %v270_v5  ;;  %v273_v10 = vld [vmem:[#allocation2 + $0x440] sm:$0xff]  ;;  %v5506_v16 = vcombine.low %v265_v2, %v269_v3  ;;  %v5508_v17 = vcombine.low %v266_v4, %v270_v5 }
  0xb6   :  { %v277_v11 = vld [vmem:[#allocation2 + $0x460] sm:$0xff] }
  0xb7   :  { %2521 = vmatpush1.bf16.msra.mxu0 %v5442_v12  ;;  %2644 = vmatpush1.bf16.msra.mxu1 %v5444_v13  ;;  %v7016_v12 = vcombine.low %v7006_v53, %v7006_v53  ;;  %v274_v13 = vld [vmem:[#allocation2 + $0x448] sm:$0xff]  ;;  %v5515_v18 = vcombine.high %v273_v10, %v277_v11  ;;  %v281_v19 = vld [vmem:[#allocation2 + $0x480] sm:$0xff]  ;;  %v5514_v24 = vcombine.low %v273_v10, %v277_v11 }
  0xb8   :  { %2522 = vmatprep.subr.bf16.mxu0 %v5451_v14  ;;  %2645 = vmatprep.subr.bf16.mxu1 %v5453_v15  ;;  %v278_v14 = vld [vmem:[#allocation2 + $0x468] sm:$0xff]  ;;  %v289_v27 = vld [vmem:[#allocation2 + $0x4c0] sm:$0xff] }
  0xb9   :  { %v7021_v15 = vld [vmem:[%s7116_s0 + $0x8] sm:$0xff]  ;;  %v5516_v25 = vcombine.low %v274_v13, %v278_v14  ;;  %v297_v35 = vld [vmem:[#allocation2 + $0x500] sm:$0xff] }
  0xba   :  { %v286_v53 = vld [vmem:[#allocation2 + $0x4a8] sm:$0xff]  ;;  %v305_v43 = vld [vmem:[#allocation2 + $0x540] sm:$0xff] }
  0xbb   :  { %2523 = vmatpush1.bf16.msra.mxu0 %v5450_v20  ;;  %2646 = vmatpush1.bf16.msra.mxu1 %v5452_v21  ;;  %v285_v20 = vld [vmem:[#allocation2 + $0x4a0] sm:$0xff]  ;;  %v282_v21 = vld [vmem:[#allocation2 + $0x488] sm:$0xff] }
  0xbc   :  { %2524 = vmatprep.subr.bf16.mxu0 %v5459_v22  ;;  %2647 = vmatprep.subr.bf16.mxu1 %v5461_v23  ;;  %v5517_v22 = vcombine.high %v274_v13, %v278_v14  ;;  %v7025_v23 = vcombine.high %v7021_v15, %v7021_v15  ;;  %v5523_v26 = vcombine.high %v281_v19, %v285_v20  ;;  %v313_v51 = vld [vmem:[#allocation2 + $0x580] sm:$0xff] }
  0xbd   :  { %v5522_v32 = vcombine.low %v281_v19, %v285_v20  ;;  %v5524_v33 = vcombine.low %v282_v21, %v286_v53  ;;  %v321_v61 = vld [vmem:[#allocation2 + $0x5c0] sm:$0xff]  ;;  %v342_v19 = vld [vmem:[#allocation2 + $0x668] sm:$0xff] }
  0xbe   :  { %v329_v5 = vld [vmem:[#allocation2 + $0x600] sm:$0xff] }
  0xbf   :  { %2525 = vmatpush1.bf16.msra.mxu0 %v5458_v28  ;;  %2648 = vmatpush1.bf16.msra.mxu1 %v5460_v29  ;;  %v293_v28 = vld [vmem:[#allocation2 + $0x4e0] sm:$0xff]  ;;  %v290_v29 = vld [vmem:[#allocation2 + $0x4c8] sm:$0xff] }
  0xc0   :  { %2526 = vmatprep.subr.bf16.mxu0 %v5467_v30  ;;  %2649 = vmatprep.subr.bf16.mxu1 %v5469_v31  ;;  %v5525_v30 = vcombine.high %v282_v21, %v286_v53  ;;  %v294_v31 = vld [vmem:[#allocation2 + $0x4e8] sm:$0xff]  ;;  %v5531_v34 = vcombine.high %v289_v27, %v293_v28  ;;  %v5530_v40 = vcombine.low %v289_v27, %v293_v28  ;;  %v337_v14 = vld [vmem:[#allocation2 + $0x640] sm:$0xff] }
  0xc1   :  { %v5532_v41 = vcombine.low %v290_v29, %v294_v31  ;;  %v345_v53 = vld [vmem:[#allocation2 + $0x680] sm:$0xff]  ;;  %v350_v27 = vld [vmem:[#allocation2 + $0x6a8] sm:$0xff] }
  0xc3   :  { %2527 = vmatpush1.bf16.msra.mxu0 %v5466_v36  ;;  %2650 = vmatpush1.bf16.msra.mxu1 %v5468_v37  ;;  %v301_v36 = vld [vmem:[#allocation2 + $0x520] sm:$0xff]  ;;  %v298_v37 = vld [vmem:[#allocation2 + $0x508] sm:$0xff] }
  0xc4   :  { %2528 = vmatprep.subr.bf16.mxu0 %v5475_v38  ;;  %2651 = vmatprep.subr.bf16.mxu1 %v5477_v39  ;;  %v5533_v38 = vcombine.high %v290_v29, %v294_v31  ;;  %v302_v39 = vld [vmem:[#allocation2 + $0x528] sm:$0xff]  ;;  %v5539_v42 = vcombine.high %v297_v35, %v301_v36  ;;  %v5538_v48 = vcombine.low %v297_v35, %v301_v36  ;;  %v353_v31 = vld [vmem:[#allocation2 + $0x6c0] sm:$0xff] }
  0xc5   :  { %v5540_v49 = vcombine.low %v298_v37, %v302_v39  ;;  %v358_v35 = vld [vmem:[#allocation2 + $0x6e8] sm:$0xff] }
  0xc7   :  { %2529 = vmatpush1.bf16.msra.mxu0 %v5474_v44  ;;  %2652 = vmatpush1.bf16.msra.mxu1 %v5476_v45  ;;  %v309_v44 = vld [vmem:[#allocation2 + $0x560] sm:$0xff]  ;;  %v306_v45 = vld [vmem:[#allocation2 + $0x548] sm:$0xff] }
  0xc8   :  { %2530 = vmatprep.subr.bf16.mxu0 %v5483_v46  ;;  %2653 = vmatprep.subr.bf16.mxu1 %v5485_v47  ;;  %v5541_v46 = vcombine.high %v298_v37, %v302_v39  ;;  %v310_v47 = vld [vmem:[#allocation2 + $0x568] sm:$0xff]  ;;  %v5547_v50 = vcombine.high %v305_v43, %v309_v44  ;;  %v5546_v58 = vcombine.low %v305_v43, %v309_v44  ;;  %v361_v39 = vld [vmem:[#allocation2 + $0x700] sm:$0xff] }
  0xc9   :  { %v5548_v59 = vcombine.low %v306_v45, %v310_v47  ;;  %v366_v43 = vld [vmem:[#allocation2 + $0x728] sm:$0xff] }
  0xcb   :  { %2531 = vmatpush1.bf16.msra.mxu0 %v5482_v52  ;;  %2654 = vmatpush1.bf16.msra.mxu1 %v5484_v54  ;;  %v317_v52 = vld [vmem:[#allocation2 + $0x5a0] sm:$0xff]  ;;  %v314_v54 = vld [vmem:[#allocation2 + $0x588] sm:$0xff] }
  0xcc   :  { %2532 = vmatprep.subr.bf16.mxu0 %v5491_v55  ;;  %2655 = vmatprep.subr.bf16.mxu1 %v5493_v56  ;;  %v5549_v55 = vcombine.high %v306_v45, %v310_v47  ;;  %v318_v56 = vld [vmem:[#allocation2 + $0x5a8] sm:$0xff]  ;;  %v5555_v60 = vcombine.high %v313_v51, %v317_v52  ;;  %v5554_v2 = vcombine.low %v313_v51, %v317_v52  ;;  %v369_v47 = vld [vmem:[#allocation2 + $0x740] sm:$0xff] }
  0xcd   :  { %v5556_v3 = vcombine.low %v314_v54, %v318_v56  ;;  %v374_v51 = vld [vmem:[#allocation2 + $0x768] sm:$0xff] }
  0xcf   :  { %2533 = vmatpush1.bf16.msra.mxu0 %v5490_v62  ;;  %2656 = vmatpush1.bf16.msra.mxu1 %v5492_v63  ;;  %v325_v62 = vld [vmem:[#allocation2 + $0x5e0] sm:$0xff]  ;;  %v322_v63 = vld [vmem:[#allocation2 + $0x5c8] sm:$0xff] }
  0xd0   :  { %2534 = vmatprep.subr.bf16.mxu0 %v5499_v0  ;;  %2657 = vmatprep.subr.bf16.mxu1 %v5501_v1  ;;  %v5557_v0 = vcombine.high %v314_v54, %v318_v56  ;;  %v326_v1 = vld [vmem:[#allocation2 + $0x5e8] sm:$0xff]  ;;  %v5563_v4 = vcombine.high %v321_v61, %v325_v62  ;;  %v5562_v10 = vcombine.low %v321_v61, %v325_v62  ;;  %v377_v56 = vld [vmem:[#allocation2 + $0x780] sm:$0xff] }
  0xd1   :  { %v5564_v11 = vcombine.low %v322_v63, %v326_v1  ;;  %v382_v61 = vld [vmem:[#allocation2 + $0x7a8] sm:$0xff] }
  0xd3   :  { %2535 = vmatpush1.bf16.msra.mxu0 %v5498_v6  ;;  %2658 = vmatpush1.bf16.msra.mxu1 %v5500_v7  ;;  %v333_v6 = vld [vmem:[#allocation2 + $0x620] sm:$0xff]  ;;  %v330_v7 = vld [vmem:[#allocation2 + $0x608] sm:$0xff] }
  0xd4   :  { %2545 = vmatprep.subr.bf16.mxu0 %v5507_v8  ;;  %2668 = vmatprep.subr.bf16.mxu1 %v5509_v9  ;;  %v5565_v8 = vcombine.high %v322_v63, %v326_v1  ;;  %v334_v9 = vld [vmem:[#allocation2 + $0x628] sm:$0xff]  ;;  %v5571_v13 = vcombine.high %v329_v5, %v333_v6  ;;  %v5570_v20 = vcombine.low %v329_v5, %v333_v6  ;;  %v385_v1 = vld [vmem:[#allocation2 + $0x7c0] sm:$0xff] }
  0xd5   :  { %v5572_v21 = vcombine.low %v330_v7, %v334_v9  ;;  %v390_v5 = vld [vmem:[#allocation2 + $0x7e8] sm:$0xff] }
  0xd6   :  { %2537 = vmatmul.mubr.bf16.vlgmr.msra.gmra.mrb[0].mxu0 %v7016_v12  ;;  %2660 = vmatmul.mubr.bf16.vlgmr.msra.gmra.mrb[0].mxu1 %v7016_v12 }
  0xd7   :  { %2546 = vmatpush1.bf16.msra.mxu0 %v5506_v16  ;;  %2669 = vmatpush1.bf16.msra.mxu1 %v5508_v17  ;;  %v341_v16 = vld [vmem:[#allocation2 + $0x660] sm:$0xff]  ;;  %v338_v17 = vld [vmem:[#allocation2 + $0x648] sm:$0xff] }
  0xd8   :  { %2547 = vmatprep.subr.bf16.mxu0 %v5515_v18  ;;  %2670 = vmatprep.subr.bf16.mxu1 %v5517_v22  ;;  %v5573_v18 = vcombine.high %v330_v7, %v334_v9  ;;  %v5579_v22 = vcombine.high %v337_v14, %v341_v16  ;;  %v5578_v28 = vcombine.low %v337_v14, %v341_v16  ;;  %v393_v9 = vld [vmem:[#allocation2 + $0x800] sm:$0xff]  ;;  %v398_v14 = vld [vmem:[#allocation2 + $0x828] sm:$0xff] }
  0xd9   :  { %2577 = vmatprep.mubr.bf16.mxu0 %v7025_v23  ;;  %2700 = vmatprep.mubr.bf16.mxu1 %v7025_v23  ;;  %v5580_v29 = vcombine.low %v338_v17, %v342_v19 }
  0xdb   :  { %2548 = vmatpush1.bf16.msra.mxu0 %v5514_v24  ;;  %2671 = vmatpush1.bf16.msra.mxu1 %v5516_v25  ;;  %v349_v24 = vld [vmem:[#allocation2 + $0x6a0] sm:$0xff]  ;;  %v346_v25 = vld [vmem:[#allocation2 + $0x688] sm:$0xff] }
  0xdc   :  { %2549 = vmatprep.subr.bf16.mxu0 %v5523_v26  ;;  %2672 = vmatprep.subr.bf16.mxu1 %v5525_v30  ;;  %v5581_v26 = vcombine.high %v338_v17, %v342_v19  ;;  %v5587_v30 = vcombine.high %v345_v53, %v349_v24  ;;  %v5586_v36 = vcombine.low %v345_v53, %v349_v24  ;;  %v401_v17 = vld [vmem:[#allocation2 + $0x840] sm:$0xff]  ;;  %v7034_v24 = vld [vmem:[%s7116_s0 + $0x10] sm:$0xff] }
  0xdd   :  { %v5588_v37 = vcombine.low %v346_v25, %v350_v27 }
  0xdf   :  { %2550 = vmatpush1.bf16.msra.mxu0 %v5522_v32  ;;  %2673 = vmatpush1.bf16.msra.mxu1 %v5524_v33  ;;  %v357_v32 = vld [vmem:[#allocation2 + $0x6e0] sm:$0xff]  ;;  %v354_v33 = vld [vmem:[#allocation2 + $0x6c8] sm:$0xff] }
  0xe0   :  { %2551 = vmatprep.subr.bf16.mxu0 %v5531_v34  ;;  %2674 = vmatprep.subr.bf16.mxu1 %v5533_v38  ;;  %v5589_v34 = vcombine.high %v346_v25, %v350_v27  ;;  %v5595_v38 = vcombine.high %v353_v31, %v357_v32  ;;  %v5594_v44 = vcombine.low %v353_v31, %v357_v32  ;;  %v410_v31 = vld [vmem:[#allocation2 + $0x888] sm:$0xff] }
  0xe1   :  { %v5596_v45 = vcombine.low %v354_v33, %v358_v35  ;;  %v7038_v25 = vcombine.low %v7021_v15, %v7021_v15 }
  0xe3   :  { %2552 = vmatpush1.bf16.msra.mxu0 %v5530_v40  ;;  %2675 = vmatpush1.bf16.msra.mxu1 %v5532_v41  ;;  %v365_v40 = vld [vmem:[#allocation2 + $0x720] sm:$0xff]  ;;  %v362_v41 = vld [vmem:[#allocation2 + $0x708] sm:$0xff] }
  0xe4   :  { %2553 = vmatprep.subr.bf16.mxu0 %v5539_v42  ;;  %2676 = vmatprep.subr.bf16.mxu1 %v5541_v46  ;;  %v5597_v42 = vcombine.high %v354_v33, %v358_v35  ;;  %v5603_v46 = vcombine.high %v361_v39, %v365_v40  ;;  %v5602_v52 = vcombine.low %v361_v39, %v365_v40  ;;  %v414_v33 = vld [vmem:[#allocation2 + $0x8a8] sm:$0xff] }
  0xe5   :  { %v5604_v54 = vcombine.low %v362_v41, %v366_v43  ;;  %v418_v39 = vld [vmem:[#allocation2 + $0x8c8] sm:$0xff]  ;;  %v5653_v40 = vcombine.high %v410_v31, %v414_v33 }
  0xe7   :  { %2554 = vmatpush1.bf16.msra.mxu0 %v5538_v48  ;;  %2677 = vmatpush1.bf16.msra.mxu1 %v5540_v49  ;;  %v373_v48 = vld [vmem:[#allocation2 + $0x760] sm:$0xff]  ;;  %v370_v49 = vld [vmem:[#allocation2 + $0x748] sm:$0xff] }
  0xe8   :  { %2555 = vmatprep.subr.bf16.mxu0 %v5547_v50  ;;  %2678 = vmatprep.subr.bf16.mxu1 %v5549_v55  ;;  %v5605_v50 = vcombine.high %v362_v41, %v366_v43  ;;  %v5611_v55 = vcombine.high %v369_v47, %v373_v48  ;;  %v5610_v62 = vcombine.low %v369_v47, %v373_v48  ;;  %v422_v41 = vld [vmem:[#allocation2 + $0x8e8] sm:$0xff] }
  0xe9   :  { %v5612_v63 = vcombine.low %v370_v49, %v374_v51  ;;  %v5652_v43 = vcombine.low %v410_v31, %v414_v33  ;;  %v426_v47 = vld [vmem:[#allocation2 + $0x908] sm:$0xff]  ;;  %v5661_v48 = vcombine.high %v418_v39, %v422_v41 }
  0xea   :  { %v470_v31 = vld [vmem:[#allocation2 + $0xa68] sm:$0xff] }
  0xeb   :  { %2556 = vmatpush1.bf16.msra.mxu0 %v5546_v58  ;;  %2679 = vmatpush1.bf16.msra.mxu1 %v5548_v59  ;;  %v381_v58 = vld [vmem:[#allocation2 + $0x7a0] sm:$0xff]  ;;  %v378_v59 = vld [vmem:[#allocation2 + $0x788] sm:$0xff] }
  0xec   :  { %2557 = vmatprep.subr.bf16.mxu0 %v5555_v60  ;;  %2680 = vmatprep.subr.bf16.mxu1 %v5557_v0  ;;  %v5613_v60 = vcombine.high %v370_v49, %v374_v51  ;;  %v5619_v0 = vcombine.high %v377_v56, %v381_v58  ;;  %v5618_v6 = vcombine.low %v377_v56, %v381_v58  ;;  %v430_v49 = vld [vmem:[#allocation2 + $0x928] sm:$0xff] }
  0xed   :  { %v5620_v7 = vcombine.low %v378_v59, %v382_v61  ;;  %v5660_v51 = vcombine.low %v418_v39, %v422_v41  ;;  %v434_v56 = vld [vmem:[#allocation2 + $0x948] sm:$0xff]  ;;  %v5669_v58 = vcombine.high %v426_v47, %v430_v49 }
  0xee   :  { %v478_v39 = vld [vmem:[#allocation2 + $0xaa8] sm:$0xff] }
  0xef   :  { %2558 = vmatpush1.bf16.msra.mxu0 %v5554_v2  ;;  %2681 = vmatpush1.bf16.msra.mxu1 %v5556_v3  ;;  %v389_v2 = vld [vmem:[#allocation2 + $0x7e0] sm:$0xff]  ;;  %v386_v3 = vld [vmem:[#allocation2 + $0x7c8] sm:$0xff] }
  0xf0   :  { %2559 = vmatprep.subr.bf16.mxu0 %v5563_v4  ;;  %2682 = vmatprep.subr.bf16.mxu1 %v5565_v8  ;;  %v5621_v4 = vcombine.high %v378_v59, %v382_v61  ;;  %v5627_v8 = vcombine.high %v385_v1, %v389_v2  ;;  %v5626_v16 = vcombine.low %v385_v1, %v389_v2  ;;  %v438_v59 = vld [vmem:[#allocation2 + $0x968] sm:$0xff] }
  0xf1   :  { %v5668_v61 = vcombine.low %v426_v47, %v430_v49  ;;  %v442_v1 = vld [vmem:[#allocation2 + $0x988] sm:$0xff]  ;;  %v5677_v2 = vcombine.high %v434_v56, %v438_v59 }
  0xf2   :  { %v486_v47 = vld [vmem:[#allocation2 + $0xae8] sm:$0xff] }
  0xf3   :  { %2560 = vmatpush1.bf16.msra.mxu0 %v5562_v10  ;;  %2683 = vmatpush1.bf16.msra.mxu1 %v5564_v11  ;;  %v397_v10 = vld [vmem:[#allocation2 + $0x820] sm:$0xff]  ;;  %v394_v11 = vld [vmem:[#allocation2 + $0x808] sm:$0xff] }
  0xf4   :  { %2561 = vmatprep.subr.bf16.mxu0 %v5571_v13  ;;  %2684 = vmatprep.subr.bf16.mxu1 %v5573_v18  ;;  %v5629_v13 = vcombine.high %v386_v3, %v390_v5  ;;  %v5628_v18 = vcombine.low %v386_v3, %v390_v5  ;;  %v5635_v19 = vcombine.high %v393_v9, %v397_v10  ;;  %v446_v3 = vld [vmem:[#allocation2 + $0x9a8] sm:$0xff] }
  0xf5   :  { %v5637_v53 = vcombine.high %v394_v11, %v398_v14  ;;  %v5636_v27 = vcombine.low %v394_v11, %v398_v14  ;;  %v5676_v5 = vcombine.low %v434_v56, %v438_v59  ;;  %v454_v11 = vld [vmem:[#allocation2 + $0x9e8] sm:$0xff]  ;;  %v5684_v14 = vcombine.low %v442_v1, %v446_v3 }
  0xf6   :  { %v494_v56 = vld [vmem:[#allocation2 + $0xb28] sm:$0xff] }
  0xf7   :  { %2562 = vmatpush1.bf16.msra.mxu0 %v5570_v20  ;;  %2685 = vmatpush1.bf16.msra.mxu1 %v5572_v21  ;;  %v405_v20 = vld [vmem:[#allocation2 + $0x860] sm:$0xff]  ;;  %v402_v21 = vld [vmem:[#allocation2 + $0x848] sm:$0xff] }
  0xf8   :  { %2563 = vmatprep.subr.bf16.mxu0 %v5579_v22  ;;  %2686 = vmatprep.subr.bf16.mxu1 %v5581_v26  ;;  %v406_v22 = vld [vmem:[#allocation2 + $0x868] sm:$0xff]  ;;  %v5634_v26 = vcombine.low %v393_v9, %v397_v10  ;;  %v5642_v15 = vcombine.low %v401_v17, %v405_v20  ;;  %v5685_v10 = vcombine.high %v442_v1, %v446_v3 }
  0xf9   :  { %v5645_v32 = vcombine.high %v402_v21, %v406_v22  ;;  %v5644_v35 = vcombine.low %v402_v21, %v406_v22  ;;  %v450_v9 = vld [vmem:[#allocation2 + $0x9c8] sm:$0xff] }
  0xfa   :  { %v462_v21 = vld [vmem:[#allocation2 + $0xa28] sm:$0xff] }
  0xfb   :  { %2564 = vmatpush1.bf16.msra.mxu0 %v5578_v28  ;;  %2687 = vmatpush1.bf16.msra.mxu1 %v5580_v29  ;;  %v5643_v28 = vcombine.high %v401_v17, %v405_v20  ;;  %v409_v29 = vld [vmem:[#allocation2 + $0x880] sm:$0xff]  ;;  %v5693_v20 = vcombine.high %v450_v9, %v454_v11  ;;  %v502_v1 = vld [vmem:[#allocation2 + $0xb68] sm:$0xff] }
  0xfc   :  { %2565 = vmatprep.subr.bf16.mxu0 %v5587_v30  ;;  %2688 = vmatprep.subr.bf16.mxu1 %v5589_v34  ;;  %v413_v30 = vld [vmem:[#allocation2 + $0x8a0] sm:$0xff]  ;;  %v7042_v34 = vcombine.high %v7034_v24, %v7034_v24 }
  0xfd   :  { %v457_v17 = vld [vmem:[#allocation2 + $0xa00] sm:$0xff] }
  0xff   :  { %2566 = vmatpush1.bf16.msra.mxu0 %v5586_v36  ;;  %2689 = vmatpush1.bf16.msra.mxu1 %v5588_v37  ;;  %v5651_v36 = vcombine.high %v409_v29, %v413_v30  ;;  %v417_v37 = vld [vmem:[#allocation2 + $0x8c0] sm:$0xff] }
 0x100   :  { %2567 = vmatprep.subr.bf16.mxu0 %v5595_v38  ;;  %2690 = vmatprep.subr.bf16.mxu1 %v5597_v42  ;;  %v421_v38 = vld [vmem:[#allocation2 + $0x8e0] sm:$0xff]  ;;  %v5650_v42 = vcombine.low %v409_v29, %v413_v30  ;;  %v466_v29 = vld [vmem:[#allocation2 + $0xa48] sm:$0xff] }
 0x101   :  { %v5708_v41 = vcombine.low %v466_v29, %v470_v31 }
 0x103   :  { %2568 = vmatpush1.bf16.msra.mxu0 %v5594_v44  ;;  %2691 = vmatpush1.bf16.msra.mxu1 %v5596_v45  ;;  %v5659_v44 = vcombine.high %v417_v37, %v421_v38  ;;  %v425_v45 = vld [vmem:[#allocation2 + $0x900] sm:$0xff] }
 0x104   :  { %2569 = vmatprep.subr.bf16.mxu0 %v5603_v46  ;;  %2692 = vmatprep.subr.bf16.mxu1 %v5605_v50  ;;  %v429_v46 = vld [vmem:[#allocation2 + $0x920] sm:$0xff]  ;;  %v5658_v50 = vcombine.low %v417_v37, %v421_v38  ;;  %v474_v37 = vld [vmem:[#allocation2 + $0xa88] sm:$0xff]  ;;  %v5709_v38 = vcombine.high %v466_v29, %v470_v31  ;;  %v144_v29 = vld [vmem:[#allocation2 + $0x38] sm:$0xff] }
 0x105   :  { %v5716_v49 = vcombine.low %v474_v37, %v478_v39 }
 0x107   :  { %2570 = vmatpush1.bf16.msra.mxu0 %v5602_v52  ;;  %2693 = vmatpush1.bf16.msra.mxu1 %v5604_v54  ;;  %v5667_v52 = vcombine.high %v425_v45, %v429_v46  ;;  %v433_v54 = vld [vmem:[#allocation2 + $0x940] sm:$0xff] }
 0x108   :  { %2571 = vmatprep.subr.bf16.mxu0 %v5611_v55  ;;  %2694 = vmatprep.subr.bf16.mxu1 %v5613_v60  ;;  %v437_v55 = vld [vmem:[#allocation2 + $0x960] sm:$0xff]  ;;  %v5666_v60 = vcombine.low %v425_v45, %v429_v46  ;;  %v482_v45 = vld [vmem:[#allocation2 + $0xac8] sm:$0xff]  ;;  %v5717_v46 = vcombine.high %v474_v37, %v478_v39  ;;  %v152_v37 = vld [vmem:[#allocation2 + $0x78] sm:$0xff] }
 0x109   :  { %v5724_v59 = vcombine.low %v482_v45, %v486_v47 }
 0x10b   :  { %2572 = vmatpush1.bf16.msra.mxu0 %v5610_v62  ;;  %2695 = vmatpush1.bf16.msra.mxu1 %v5612_v63  ;;  %v5675_v62 = vcombine.high %v433_v54, %v437_v55  ;;  %v441_v63 = vld [vmem:[#allocation2 + $0x980] sm:$0xff] }
 0x10c   :  { %2573 = vmatprep.subr.bf16.mxu0 %v5619_v0  ;;  %2696 = vmatprep.subr.bf16.mxu1 %v5621_v4  ;;  %v445_v0 = vld [vmem:[#allocation2 + $0x9a0] sm:$0xff]  ;;  %v5674_v4 = vcombine.low %v433_v54, %v437_v55  ;;  %v490_v54 = vld [vmem:[#allocation2 + $0xb08] sm:$0xff]  ;;  %v5725_v55 = vcombine.high %v482_v45, %v486_v47 }
 0x10d   :  { %v5732_v3 = vcombine.low %v490_v54, %v494_v56 }
 0x10f   :  { %2574 = vmatpush1.bf16.msra.mxu0 %v5618_v6  ;;  %2697 = vmatpush1.bf16.msra.mxu1 %v5620_v7  ;;  %v5683_v6 = vcombine.high %v441_v63, %v445_v0  ;;  %v449_v7 = vld [vmem:[#allocation2 + $0x9c0] sm:$0xff] }
 0x110   :  { %2575 = vmatprep.subr.bf16.mxu0 %v5627_v8  ;;  %2698 = vmatprep.subr.bf16.mxu1 %v5629_v13  ;;  %v453_v8 = vld [vmem:[#allocation2 + $0x9e0] sm:$0xff]  ;;  %v5682_v13 = vcombine.low %v441_v63, %v445_v0  ;;  %v498_v63 = vld [vmem:[#allocation2 + $0xb48] sm:$0xff]  ;;  %v5733_v0 = vcombine.high %v490_v54, %v494_v56  ;;  %v168_v54 = vld [vmem:[#allocation2 + $0xf8] sm:$0xff] }
 0x111   :  { %v5690_v22 = vcombine.low %v449_v7, %v453_v8 }
 0x113   :  { %2576 = vmatpush1.bf16.msra.mxu0 %v5626_v16  ;;  %2699 = vmatpush1.bf16.msra.mxu1 %v5628_v18  ;;  %v5691_v16 = vcombine.high %v449_v7, %v453_v8  ;;  %v461_v18 = vld [vmem:[#allocation2 + $0xa20] sm:$0xff]  ;;  %v506_v7 = vld [vmem:[#allocation2 + $0xb88] sm:$0xff]  ;;  %v5741_v8 = vcombine.high %v498_v63, %v502_v1 }
 0x114   :  { %2586 = vmatprep.subr.bf16.mxu0 %v5635_v19  ;;  %2709 = vmatprep.subr.bf16.mxu1 %v5637_v53  ;;  %v458_v19 = vld [vmem:[#allocation2 + $0xa08] sm:$0xff]  ;;  %v5692_v53 = vcombine.low %v450_v9, %v454_v11  ;;  %v5740_v11 = vcombine.low %v498_v63, %v502_v1  ;;  %v176_v63 = vld [vmem:[#allocation2 + $0x138] sm:$0xff] }
 0x115   :  { %v5701_v30 = vcombine.high %v458_v19, %v462_v21  ;;  %v5700_v33 = vcombine.low %v458_v19, %v462_v21  ;;  %v510_v9 = vld [vmem:[#allocation2 + $0xba8] sm:$0xff] }
 0x116   :  { %2578 = vmatmul.mubr.bf16.vlgmr.msra.gmra.mrb[0].mxu0 %v7038_v25  ;;  %2701 = vmatmul.mubr.bf16.vlgmr.msra.gmra.mrb[0].mxu1 %v7038_v25  ;;  %v518_v19 = vld [vmem:[#allocation2 + $0xbe8] sm:$0xff]  ;;  %v5748_v21 = vcombine.low %v506_v7, %v510_v9 }
 0x117   :  { %2587 = vmatpush1.bf16.msra.mxu0 %v5634_v26  ;;  %2710 = vmatpush1.bf16.msra.mxu1 %v5636_v27  ;;  %v5699_v26 = vcombine.high %v457_v17, %v461_v18  ;;  %v465_v27 = vld [vmem:[#allocation2 + $0xa40] sm:$0xff] }
 0x118   :  { %2588 = vmatprep.subr.bf16.mxu0 %v5643_v28  ;;  %2711 = vmatprep.subr.bf16.mxu1 %v5645_v32  ;;  %v469_v28 = vld [vmem:[#allocation2 + $0xa60] sm:$0xff]  ;;  %v5698_v32 = vcombine.low %v457_v17, %v461_v18  ;;  %v514_v17 = vld [vmem:[#allocation2 + $0xbc8] sm:$0xff]  ;;  %v5749_v18 = vcombine.high %v506_v7, %v510_v9 }
 0x119   :  { %2618 = vmatprep.mubr.bf16.mxu0 %v7042_v34  ;;  %2741 = vmatprep.mubr.bf16.mxu1 %v7042_v34  ;;  %v5756_v31 = vcombine.low %v514_v17, %v518_v19 }
 0x11b   :  { %2589 = vmatpush1.bf16.msra.mxu0 %v5642_v15  ;;  %2712 = vmatpush1.bf16.msra.mxu1 %v5644_v35  ;;  %v5707_v15 = vcombine.high %v465_v27, %v469_v28  ;;  %v473_v35 = vld [vmem:[#allocation2 + $0xa80] sm:$0xff] }
 0x11c   :  { %2590 = vmatprep.subr.bf16.mxu0 %v5651_v36  ;;  %2713 = vmatprep.subr.bf16.mxu1 %v5653_v40  ;;  %v477_v36 = vld [vmem:[#allocation2 + $0xaa0] sm:$0xff]  ;;  %v5706_v40 = vcombine.low %v465_v27, %v469_v28  ;;  %v140_v27 = vld [vmem:[#allocation2 + $0x18] sm:$0xff]  ;;  %v5757_v28 = vcombine.high %v514_v17, %v518_v19 }
 0x11f   :  { %2591 = vmatpush1.bf16.msra.mxu0 %v5650_v42  ;;  %2714 = vmatpush1.bf16.msra.mxu1 %v5652_v43  ;;  %v5715_v42 = vcombine.high %v473_v35, %v477_v36  ;;  %v481_v43 = vld [vmem:[#allocation2 + $0xac0] sm:$0xff] }
 0x120   :  { %2592 = vmatprep.subr.bf16.mxu0 %v5659_v44  ;;  %2715 = vmatprep.subr.bf16.mxu1 %v5661_v48  ;;  %v485_v44 = vld [vmem:[#allocation2 + $0xae0] sm:$0xff]  ;;  %v5714_v48 = vcombine.low %v473_v35, %v477_v36  ;;  %v148_v35 = vld [vmem:[#allocation2 + $0x58] sm:$0xff]  ;;  %v5385_v36 = vcombine.high %v140_v27, %v144_v29 }
 0x121   :  { %v5393_v45 = vcombine.high %v148_v35, %v152_v37 }
 0x123   :  { %2593 = vmatpush1.bf16.msra.mxu0 %v5658_v50  ;;  %2716 = vmatpush1.bf16.msra.mxu1 %v5660_v51  ;;  %v5723_v50 = vcombine.high %v481_v43, %v485_v44  ;;  %v489_v51 = vld [vmem:[#allocation2 + $0xb00] sm:$0xff] }
 0x124   :  { %2594 = vmatprep.subr.bf16.mxu0 %v5667_v52  ;;  %2717 = vmatprep.subr.bf16.mxu1 %v5669_v58  ;;  %v493_v52 = vld [vmem:[#allocation2 + $0xb20] sm:$0xff]  ;;  %v5722_v58 = vcombine.low %v481_v43, %v485_v44  ;;  %v159_v43 = vld [vmem:[#allocation2 + $0xb0] sm:$0xff]  ;;  %v156_v44 = vld [vmem:[#allocation2 + $0x98] sm:$0xff] }
 0x127   :  { %2595 = vmatpush1.bf16.msra.mxu0 %v5666_v60  ;;  %2718 = vmatpush1.bf16.msra.mxu1 %v5668_v61  ;;  %v5731_v60 = vcombine.high %v489_v51, %v493_v52  ;;  %v497_v61 = vld [vmem:[#allocation2 + $0xb40] sm:$0xff] }
 0x128   :  { %2596 = vmatprep.subr.bf16.mxu0 %v5675_v62  ;;  %2719 = vmatprep.subr.bf16.mxu1 %v5677_v2  ;;  %v501_v62 = vld [vmem:[#allocation2 + $0xb60] sm:$0xff]  ;;  %v5730_v2 = vcombine.low %v489_v51, %v493_v52  ;;  %v164_v51 = vld [vmem:[#allocation2 + $0xd8] sm:$0xff] }
 0x129   :  { %v5408_v1 = vcombine.low %v164_v51, %v168_v54 }
 0x12b   :  { %2597 = vmatpush1.bf16.msra.mxu0 %v5674_v4  ;;  %2720 = vmatpush1.bf16.msra.mxu1 %v5676_v5  ;;  %v5739_v4 = vcombine.high %v497_v61, %v501_v62  ;;  %v505_v5 = vld [vmem:[#allocation2 + $0xb80] sm:$0xff] }
 0x12c   :  { %2598 = vmatprep.subr.bf16.mxu0 %v5683_v6  ;;  %2721 = vmatprep.subr.bf16.mxu1 %v5685_v10  ;;  %v509_v6 = vld [vmem:[#allocation2 + $0xba0] sm:$0xff]  ;;  %v5738_v10 = vcombine.low %v497_v61, %v501_v62  ;;  %v172_v61 = vld [vmem:[#allocation2 + $0x118] sm:$0xff]  ;;  %v5409_v62 = vcombine.high %v164_v51, %v168_v54 }
 0x12f   :  { %2599 = vmatpush1.bf16.msra.mxu0 %v5682_v13  ;;  %2722 = vmatpush1.bf16.msra.mxu1 %v5684_v14  ;;  %v5747_v13 = vcombine.high %v505_v5, %v509_v6  ;;  %v513_v14 = vld [vmem:[#allocation2 + $0xbc0] sm:$0xff] }
 0x130   :  { %2600 = vmatprep.subr.bf16.mxu0 %v5691_v16  ;;  %2723 = vmatprep.subr.bf16.mxu1 %v5693_v20  ;;  %v517_v16 = vld [vmem:[#allocation2 + $0xbe0] sm:$0xff]  ;;  %v5746_v20 = vcombine.low %v505_v5, %v509_v6  ;;  %v5417_v5 = vcombine.high %v172_v61, %v176_v63  ;;  %v184_v6 = vld [vmem:[#allocation2 + $0x178] sm:$0xff] }
 0x133   :  { %2601 = vmatpush1.bf16.msra.mxu0 %v5690_v22  ;;  %2724 = vmatpush1.bf16.msra.mxu1 %v5692_v53  ;;  %v5755_v22 = vcombine.high %v513_v14, %v517_v16  ;;  %v139_v53 = vld [vmem:[#allocation2 + $0x10] sm:$0xff] }
 0x134   :  { %2602 = vmatprep.subr.bf16.mxu0 %v5699_v26  ;;  %2725 = vmatprep.subr.bf16.mxu1 %v5701_v30  ;;  %v143_v26 = vld [vmem:[#allocation2 + $0x30] sm:$0xff]  ;;  %v5754_v30 = vcombine.low %v513_v14, %v517_v16  ;;  %v192_v16 = vld [vmem:[#allocation2 + $0x1b8] sm:$0xff] }
 0x135   :  { %v5382_v39 = vcombine.low %v139_v53, %v143_v26 }
 0x137   :  { %2603 = vmatpush1.bf16.msra.mxu0 %v5698_v32  ;;  %2726 = vmatpush1.bf16.msra.mxu1 %v5700_v33  ;;  %v5383_v32 = vcombine.high %v139_v53, %v143_v26  ;;  %v147_v33 = vld [vmem:[#allocation2 + $0x50] sm:$0xff]  ;;  %v200_v26 = vld [vmem:[#allocation2 + $0x1f8] sm:$0xff] }
 0x138   :  { %2604 = vmatprep.subr.bf16.mxu0 %v5707_v15  ;;  %2727 = vmatprep.subr.bf16.mxu1 %v5709_v38  ;;  %v151_v15 = vld [vmem:[#allocation2 + $0x70] sm:$0xff]  ;;  %v7050_v38 = vcombine.low %v7034_v24, %v7034_v24  ;;  %v5392_v24 = vcombine.low %v148_v35, %v152_v37 }
 0x139   :  { %v5390_v47 = vcombine.low %v147_v33, %v151_v15 }
 0x13b   :  { %2605 = vmatpush1.bf16.msra.mxu0 %v5706_v40  ;;  %2728 = vmatpush1.bf16.msra.mxu1 %v5708_v41  ;;  %v5384_v40 = vcombine.low %v140_v27, %v144_v29  ;;  %v5391_v41 = vcombine.high %v147_v33, %v151_v15  ;;  %v208_v15 = vld [vmem:[#allocation2 + $0x238] sm:$0xff] }
 0x13c   :  { %2606 = vmatprep.subr.bf16.mxu0 %v5715_v42  ;;  %2729 = vmatprep.subr.bf16.mxu1 %v5717_v46  ;;  %v155_v42 = vld [vmem:[#allocation2 + $0x90] sm:$0xff]  ;;  %v160_v46 = vld [vmem:[#allocation2 + $0xb8] sm:$0xff] }
 0x13d   :  { %v5401_v52 = vcombine.high %v156_v44, %v160_v46  ;;  %v5400_v56 = vcombine.low %v156_v44, %v160_v46 }
 0x13f   :  { %2607 = vmatpush1.bf16.msra.mxu0 %v5714_v48  ;;  %2730 = vmatpush1.bf16.msra.mxu1 %v5716_v49  ;;  %v5399_v48 = vcombine.high %v155_v42, %v159_v43  ;;  %v163_v49 = vld [vmem:[#allocation2 + $0xd0] sm:$0xff] }
 0x140   :  { %2608 = vmatprep.subr.bf16.mxu0 %v5723_v50  ;;  %2731 = vmatprep.subr.bf16.mxu1 %v5725_v55  ;;  %v167_v50 = vld [vmem:[#allocation2 + $0xf0] sm:$0xff]  ;;  %v5398_v55 = vcombine.low %v155_v42, %v159_v43  ;;  %v216_v43 = vld [vmem:[#allocation2 + $0x278] sm:$0xff] }
 0x143   :  { %2609 = vmatpush1.bf16.msra.mxu0 %v5722_v58  ;;  %2732 = vmatpush1.bf16.msra.mxu1 %v5724_v59  ;;  %v5407_v58 = vcombine.high %v163_v49, %v167_v50  ;;  %v171_v59 = vld [vmem:[#allocation2 + $0x110] sm:$0xff] }
 0x144   :  { %2610 = vmatprep.subr.bf16.mxu0 %v5731_v60  ;;  %2733 = vmatprep.subr.bf16.mxu1 %v5733_v0  ;;  %v175_v60 = vld [vmem:[#allocation2 + $0x130] sm:$0xff]  ;;  %v5406_v0 = vcombine.low %v163_v49, %v167_v50  ;;  %v224_v50 = vld [vmem:[#allocation2 + $0x2b8] sm:$0xff] }
 0x145   :  { %v5414_v7 = vcombine.low %v171_v59, %v175_v60 }
 0x147   :  { %2611 = vmatpush1.bf16.msra.mxu0 %v5730_v2  ;;  %2734 = vmatpush1.bf16.msra.mxu1 %v5732_v3  ;;  %v5415_v2 = vcombine.high %v171_v59, %v175_v60  ;;  %v179_v3 = vld [vmem:[#allocation2 + $0x150] sm:$0xff]  ;;  %v232_v60 = vld [vmem:[#allocation2 + $0x2f8] sm:$0xff] }
 0x148   :  { %2612 = vmatprep.subr.bf16.mxu0 %v5739_v4  ;;  %2735 = vmatprep.subr.bf16.mxu1 %v5741_v8  ;;  %v180_v4 = vld [vmem:[#allocation2 + $0x158] sm:$0xff]  ;;  %v5416_v8 = vcombine.low %v172_v61, %v176_v63 }
 0x149   :  { %v5425_v14 = vcombine.high %v180_v4, %v184_v6 }
 0x14b   :  { %2613 = vmatpush1.bf16.msra.mxu0 %v5738_v10  ;;  %2736 = vmatpush1.bf16.msra.mxu1 %v5740_v11  ;;  %v187_v10 = vld [vmem:[#allocation2 + $0x190] sm:$0xff] }
 0x14c   :  { %2614 = vmatprep.subr.bf16.mxu0 %v5747_v13  ;;  %2737 = vmatprep.subr.bf16.mxu1 %v5749_v18  ;;  %v191_v11 = vld [vmem:[#allocation2 + $0x1b0] sm:$0xff]  ;;  %v188_v13 = vld [vmem:[#allocation2 + $0x198] sm:$0xff]  ;;  %v5424_v18 = vcombine.low %v180_v4, %v184_v6 }
 0x14d   :  { %v5431_v19 = vcombine.high %v187_v10, %v191_v11  ;;  %v5433_v53 = vcombine.high %v188_v13, %v192_v16  ;;  %v5430_v27 = vcombine.low %v187_v10, %v191_v11  ;;  %v244_v10 = vld [vmem:[#allocation2 + $0x358] sm:$0xff] }
 0x14e   :  { %v248_v11 = vld [vmem:[#allocation2 + $0x378] sm:$0xff] }
 0x14f   :  { %2615 = vmatpush1.bf16.msra.mxu0 %v5746_v20  ;;  %2738 = vmatpush1.bf16.msra.mxu1 %v5748_v21  ;;  %v195_v20 = vld [vmem:[#allocation2 + $0x1d0] sm:$0xff] }
 0x150   :  { %2616 = vmatprep.subr.bf16.mxu0 %v5755_v22  ;;  %2739 = vmatprep.subr.bf16.mxu1 %v5757_v28  ;;  %v199_v21 = vld [vmem:[#allocation2 + $0x1f0] sm:$0xff]  ;;  %v196_v22 = vld [vmem:[#allocation2 + $0x1d8] sm:$0xff]  ;;  %v5432_v28 = vcombine.low %v188_v13, %v192_v16 }
 0x151   :  { %v5439_v29 = vcombine.high %v195_v20, %v199_v21  ;;  %v5441_v33 = vcombine.high %v196_v22, %v200_v26  ;;  %v5438_v35 = vcombine.low %v195_v20, %v199_v21  ;;  %v252_v20 = vld [vmem:[#allocation2 + $0x398] sm:$0xff] }
 0x152   :  { %v256_v21 = vld [vmem:[#allocation2 + $0x3b8] sm:$0xff] }
 0x153   :  { %2617 = vmatpush1.bf16.msra.mxu0 %v5754_v30  ;;  %2740 = vmatpush1.bf16.msra.mxu1 %v5756_v31  ;;  %v203_v30 = vld [vmem:[#allocation2 + $0x210] sm:$0xff] }
 0x154   :  { %2750 = vmatprep.subr.bf16.mxu0 %v5383_v32  ;;  %2873 = vmatprep.subr.bf16.mxu1 %v5385_v36  ;;  %v207_v31 = vld [vmem:[#allocation2 + $0x230] sm:$0xff]  ;;  %v204_v32 = vld [vmem:[#allocation2 + $0x218] sm:$0xff]  ;;  %v5440_v36 = vcombine.low %v196_v22, %v200_v26 }
 0x155   :  { %v5447_v37 = vcombine.high %v203_v30, %v207_v31  ;;  %v5449_v42 = vcombine.high %v204_v32, %v208_v15  ;;  %v5446_v44 = vcombine.low %v203_v30, %v207_v31  ;;  %v260_v30 = vld [vmem:[#allocation2 + $0x3d8] sm:$0xff] }
 0x156   :  { %2619 = vmatmul.mubr.bf16.vlgmr.msra.gmra.mrb[0].mxu0 %v7050_v38  ;;  %2742 = vmatmul.mubr.bf16.vlgmr.msra.gmra.mrb[0].mxu1 %v7050_v38  ;;  %v264_v31 = vld [vmem:[#allocation2 + $0x3f8] sm:$0xff] }
 0x157   :  { %2751 = vmatpush1.bf16.msra.mxu0 %v5382_v39  ;;  %2874 = vmatpush1.bf16.msra.mxu1 %v5384_v40  ;;  %v211_v39 = vld [vmem:[#allocation2 + $0x250] sm:$0xff] }
 0x158   :  { %2752 = vmatprep.subr.bf16.mxu0 %v5391_v41  ;;  %2875 = vmatprep.subr.bf16.mxu1 %v5393_v45  ;;  %v215_v40 = vld [vmem:[#allocation2 + $0x270] sm:$0xff]  ;;  %v212_v41 = vld [vmem:[#allocation2 + $0x258] sm:$0xff]  ;;  %v5448_v45 = vcombine.low %v204_v32, %v208_v15 }
 0x159   :  { %2782 = vmatprep.mubr.bf16.mxu0 %v7010_v57  ;;  %2905 = vmatprep.mubr.bf16.mxu1 %v7010_v57  ;;  %v183_v57 = vld [vmem:[#allocation2 + $0x170] sm:$0xff]  ;;  %v5455_v46 = vcombine.high %v211_v39, %v215_v40  ;;  %v5457_v49 = vcombine.high %v212_v41, %v216_v43  ;;  %v5454_v51 = vcombine.low %v211_v39, %v215_v40  ;;  %v268_v39 = vld [vmem:[#allocation2 + $0x418] sm:$0xff] }
 0x15a   :  { %v5423_v9 = vcombine.high %v179_v3, %v183_v57  ;;  %v5422_v17 = vcombine.low %v179_v3, %v183_v57  ;;  %v236_v3 = vld [vmem:[#allocation2 + $0x318] sm:$0xff] }
 0x15b   :  { %2753 = vmatpush1.bf16.msra.mxu0 %v5390_v47  ;;  %2876 = vmatpush1.bf16.msra.mxu1 %v5392_v24  ;;  %v219_v47 = vld [vmem:[#allocation2 + $0x290] sm:$0xff]  ;;  %v240_v57 = vld [vmem:[#allocation2 + $0x338] sm:$0xff] }
 0x15c   :  { %2754 = vmatprep.subr.bf16.mxu0 %v5399_v48  ;;  %2877 = vmatprep.subr.bf16.mxu1 %v5401_v52  ;;  %v223_v24 = vld [vmem:[#allocation2 + $0x2b0] sm:$0xff]  ;;  %v220_v48 = vld [vmem:[#allocation2 + $0x298] sm:$0xff]  ;;  %v5456_v52 = vcombine.low %v212_v41, %v216_v43 }
 0x15d   :  { %v5463_v54 = vcombine.high %v219_v47, %v223_v24  ;;  %v5465_v59 = vcombine.high %v220_v48, %v224_v50  ;;  %v5462_v61 = vcombine.low %v219_v47, %v223_v24  ;;  %v272_v40 = vld [vmem:[#allocation2 + $0x438] sm:$0xff] }
 0x15e   :  { %v276_v47 = vld [vmem:[#allocation2 + $0x458] sm:$0xff] }
 0x15f   :  { %2755 = vmatpush1.bf16.msra.mxu0 %v5398_v55  ;;  %2878 = vmatpush1.bf16.msra.mxu1 %v5400_v56  ;;  %v227_v55 = vld [vmem:[#allocation2 + $0x2d0] sm:$0xff]  ;;  %v280_v24 = vld [vmem:[#allocation2 + $0x478] sm:$0xff] }
 0x160   :  { %2756 = vmatprep.subr.bf16.mxu0 %v5407_v58  ;;  %2879 = vmatprep.subr.bf16.mxu1 %v5409_v62  ;;  %v231_v56 = vld [vmem:[#allocation2 + $0x2f0] sm:$0xff]  ;;  %v228_v58 = vld [vmem:[#allocation2 + $0x2d8] sm:$0xff]  ;;  %v5464_v62 = vcombine.low %v220_v48, %v224_v50 }
 0x161   :  { %v5471_v63 = vcombine.high %v227_v55, %v231_v56  ;;  %v5470_v4 = vcombine.low %v227_v55, %v231_v56  ;;  %v284_v55 = vld [vmem:[#allocation2 + $0x498] sm:$0xff] }
 0x162   :  { %v288_v56 = vld [vmem:[#allocation2 + $0x4b8] sm:$0xff] }
 0x163   :  { %2757 = vmatpush1.bf16.msra.mxu0 %v5406_v0  ;;  %2880 = vmatpush1.bf16.msra.mxu1 %v5408_v1  ;;  %v5473_v0 = vcombine.high %v228_v58, %v232_v60  ;;  %v235_v1 = vld [vmem:[#allocation2 + $0x310] sm:$0xff] }
 0x164   :  { %2758 = vmatprep.subr.bf16.mxu0 %v5415_v2  ;;  %2881 = vmatprep.subr.bf16.mxu1 %v5417_v5  ;;  %v239_v2 = vld [vmem:[#allocation2 + $0x330] sm:$0xff]  ;;  %v5472_v5 = vcombine.low %v228_v58, %v232_v60 }
 0x165   :  { %v5479_v6 = vcombine.high %v235_v1, %v239_v2  ;;  %v5478_v13 = vcombine.low %v235_v1, %v239_v2  ;;  %v296_v1 = vld [vmem:[#allocation2 + $0x4f8] sm:$0xff] }
 0x167   :  { %2759 = vmatpush1.bf16.msra.mxu0 %v5414_v7  ;;  %2882 = vmatpush1.bf16.msra.mxu1 %v5416_v8  ;;  %v5481_v7 = vcombine.high %v236_v3, %v240_v57  ;;  %v243_v8 = vld [vmem:[#allocation2 + $0x350] sm:$0xff] }
 0x168   :  { %2760 = vmatprep.subr.bf16.mxu0 %v5423_v9  ;;  %2883 = vmatprep.subr.bf16.mxu1 %v5425_v14  ;;  %v247_v9 = vld [vmem:[#allocation2 + $0x370] sm:$0xff]  ;;  %v5480_v14 = vcombine.low %v236_v3, %v240_v57 }
 0x169   :  { %v5487_v16 = vcombine.high %v243_v8, %v247_v9  ;;  %v5486_v22 = vcombine.low %v243_v8, %v247_v9 }
 0x16b   :  { %2761 = vmatpush1.bf16.msra.mxu0 %v5422_v17  ;;  %2884 = vmatpush1.bf16.msra.mxu1 %v5424_v18  ;;  %v5489_v17 = vcombine.high %v244_v10, %v248_v11  ;;  %v251_v18 = vld [vmem:[#allocation2 + $0x390] sm:$0xff] }
 0x16c   :  { %2762 = vmatprep.subr.bf16.mxu0 %v5431_v19  ;;  %2885 = vmatprep.subr.bf16.mxu1 %v5433_v53  ;;  %v255_v19 = vld [vmem:[#allocation2 + $0x3b0] sm:$0xff]  ;;  %v5488_v53 = vcombine.low %v244_v10, %v248_v11 }
 0x16d   :  { %v5495_v26 = vcombine.high %v251_v18, %v255_v19  ;;  %v5494_v32 = vcombine.low %v251_v18, %v255_v19  ;;  %v307_v11 = vld [vmem:[#allocation2 + $0x550] sm:$0xff] }
 0x16f   :  { %2763 = vmatpush1.bf16.msra.mxu0 %v5430_v27  ;;  %2886 = vmatpush1.bf16.msra.mxu1 %v5432_v28  ;;  %v5497_v27 = vcombine.high %v252_v20, %v256_v21  ;;  %v259_v28 = vld [vmem:[#allocation2 + $0x3d0] sm:$0xff] }
 0x170   :  { %2764 = vmatprep.subr.bf16.mxu0 %v5439_v29  ;;  %2887 = vmatprep.subr.bf16.mxu1 %v5441_v33  ;;  %v263_v29 = vld [vmem:[#allocation2 + $0x3f0] sm:$0xff]  ;;  %v5496_v33 = vcombine.low %v252_v20, %v256_v21 }
 0x171   :  { %v5503_v15 = vcombine.high %v259_v28, %v263_v29  ;;  %v5502_v41 = vcombine.low %v259_v28, %v263_v29  ;;  %v315_v21 = vld [vmem:[#allocation2 + $0x590] sm:$0xff] }
 0x173   :  { %2765 = vmatpush1.bf16.msra.mxu0 %v5438_v35  ;;  %2888 = vmatpush1.bf16.msra.mxu1 %v5440_v36  ;;  %v5505_v35 = vcombine.high %v260_v30, %v264_v31  ;;  %v267_v36 = vld [vmem:[#allocation2 + $0x410] sm:$0xff] }
 0x174   :  { %2766 = vmatprep.subr.bf16.mxu0 %v5447_v37  ;;  %2889 = vmatprep.subr.bf16.mxu1 %v5449_v42  ;;  %v271_v37 = vld [vmem:[#allocation2 + $0x430] sm:$0xff]  ;;  %v5504_v42 = vcombine.low %v260_v30, %v264_v31 }
 0x175   :  { %v5511_v43 = vcombine.high %v267_v36, %v271_v37  ;;  %v5510_v48 = vcombine.low %v267_v36, %v271_v37  ;;  %v323_v31 = vld [vmem:[#allocation2 + $0x5d0] sm:$0xff] }
 0x177   :  { %2767 = vmatpush1.bf16.msra.mxu0 %v5446_v44  ;;  %2890 = vmatpush1.bf16.msra.mxu1 %v5448_v45  ;;  %v5513_v44 = vcombine.high %v268_v39, %v272_v40  ;;  %v275_v45 = vld [vmem:[#allocation2 + $0x450] sm:$0xff] }
 0x178   :  { %2768 = vmatprep.subr.bf16.mxu0 %v5455_v46  ;;  %2891 = vmatprep.subr.bf16.mxu1 %v5457_v49  ;;  %v279_v46 = vld [vmem:[#allocation2 + $0x470] sm:$0xff]  ;;  %v5512_v49 = vcombine.low %v268_v39, %v272_v40 }
 0x179   :  { %v5519_v50 = vcombine.high %v275_v45, %v279_v46  ;;  %v5518_v58 = vcombine.low %v275_v45, %v279_v46  ;;  %v331_v40 = vld [vmem:[#allocation2 + $0x610] sm:$0xff] }
 0x17b   :  { %2769 = vmatpush1.bf16.msra.mxu0 %v5454_v51  ;;  %2892 = vmatpush1.bf16.msra.mxu1 %v5456_v52  ;;  %v5521_v51 = vcombine.high %v276_v47, %v280_v24  ;;  %v283_v52 = vld [vmem:[#allocation2 + $0x490] sm:$0xff] }
 0x17c   :  { %2770 = vmatprep.subr.bf16.mxu0 %v5463_v54  ;;  %2893 = vmatprep.subr.bf16.mxu1 %v5465_v59  ;;  %v287_v54 = vld [vmem:[#allocation2 + $0x4b0] sm:$0xff]  ;;  %v5520_v59 = vcombine.low %v276_v47, %v280_v24 }
 0x17d   :  { %v5527_v60 = vcombine.high %v283_v52, %v287_v54  ;;  %v5526_v2 = vcombine.low %v283_v52, %v287_v54  ;;  %v339_v24 = vld [vmem:[#allocation2 + $0x650] sm:$0xff] }
 0x17f   :  { %2771 = vmatpush1.bf16.msra.mxu0 %v5462_v61  ;;  %2894 = vmatpush1.bf16.msra.mxu1 %v5464_v62  ;;  %v5529_v61 = vcombine.high %v284_v55, %v288_v56  ;;  %v291_v62 = vld [vmem:[#allocation2 + $0x4d0] sm:$0xff] }
 0x180   :  { %2772 = vmatprep.subr.bf16.mxu0 %v5471_v63  ;;  %2895 = vmatprep.subr.bf16.mxu1 %v5473_v0  ;;  %v295_v63 = vld [vmem:[#allocation2 + $0x4f0] sm:$0xff]  ;;  %v292_v0 = vld [vmem:[#allocation2 + $0x4d8] sm:$0xff] }
 0x181   :  { %v5535_v3 = vcombine.high %v291_v62, %v295_v63  ;;  %v5537_v57 = vcombine.high %v292_v0, %v296_v1  ;;  %v5534_v8 = vcombine.low %v291_v62, %v295_v63  ;;  %v5536_v9 = vcombine.low %v292_v0, %v296_v1  ;;  %v355_v1 = vld [vmem:[#allocation2 + $0x6d0] sm:$0xff] }
 0x183   :  { %2773 = vmatpush1.bf16.msra.mxu0 %v5470_v4  ;;  %2896 = vmatpush1.bf16.msra.mxu1 %v5472_v5  ;;  %v299_v4 = vld [vmem:[#allocation2 + $0x510] sm:$0xff] }
 0x184   :  { %2774 = vmatprep.subr.bf16.mxu0 %v5479_v6  ;;  %2897 = vmatprep.subr.bf16.mxu1 %v5481_v7  ;;  %v303_v5 = vld [vmem:[#allocation2 + $0x530] sm:$0xff]  ;;  %v300_v6 = vld [vmem:[#allocation2 + $0x518] sm:$0xff] }
 0x185   :  { %v304_v7 = vld [vmem:[#allocation2 + $0x538] sm:$0xff]  ;;  %v5543_v10 = vcombine.high %v299_v4, %v303_v5 }
 0x186   :  { %v5544_v18 = vcombine.low %v300_v6, %v304_v7 }
 0x187   :  { %2775 = vmatpush1.bf16.msra.mxu0 %v5478_v13  ;;  %2898 = vmatpush1.bf16.msra.mxu1 %v5480_v14  ;;  %v311_v13 = vld [vmem:[#allocation2 + $0x570] sm:$0xff]  ;;  %v308_v14 = vld [vmem:[#allocation2 + $0x558] sm:$0xff] }
 0x188   :  { %2776 = vmatprep.subr.bf16.mxu0 %v5487_v16  ;;  %2899 = vmatprep.subr.bf16.mxu1 %v5489_v17  ;;  %v312_v16 = vld [vmem:[#allocation2 + $0x578] sm:$0xff]  ;;  %v5542_v17 = vcombine.low %v299_v4, %v303_v5  ;;  %v5551_v19 = vcombine.high %v307_v11, %v311_v13 }
 0x189   :  { %v5553_v20 = vcombine.high %v308_v14, %v312_v16  ;;  %v5552_v28 = vcombine.low %v308_v14, %v312_v16  ;;  %v371_v16 = vld [vmem:[#allocation2 + $0x750] sm:$0xff] }
 0x18b   :  { %2777 = vmatpush1.bf16.msra.mxu0 %v5486_v22  ;;  %2900 = vmatpush1.bf16.msra.mxu1 %v5488_v53  ;;  %v319_v22 = vld [vmem:[#allocation2 + $0x5b0] sm:$0xff]  ;;  %v316_v53 = vld [vmem:[#allocation2 + $0x598] sm:$0xff] }
 0x18c   :  { %2778 = vmatprep.subr.bf16.mxu0 %v5495_v26  ;;  %2901 = vmatprep.subr.bf16.mxu1 %v5497_v27  ;;  %v320_v26 = vld [vmem:[#allocation2 + $0x5b8] sm:$0xff]  ;;  %v5550_v27 = vcombine.low %v307_v11, %v311_v13  ;;  %v5559_v29 = vcombine.high %v315_v21, %v319_v22 }
 0x18d   :  { %v5561_v30 = vcombine.high %v316_v53, %v320_v26  ;;  %v5560_v36 = vcombine.low %v316_v53, %v320_v26  ;;  %v379_v26 = vld [vmem:[#allocation2 + $0x790] sm:$0xff] }
 0x18f   :  { %2779 = vmatpush1.bf16.msra.mxu0 %v5494_v32  ;;  %2902 = vmatpush1.bf16.msra.mxu1 %v5496_v33  ;;  %v327_v32 = vld [vmem:[#allocation2 + $0x5f0] sm:$0xff]  ;;  %v324_v33 = vld [vmem:[#allocation2 + $0x5d8] sm:$0xff] }
 0x190   :  { %2780 = vmatprep.subr.bf16.mxu0 %v5503_v15  ;;  %2903 = vmatprep.subr.bf16.mxu1 %v5505_v35  ;;  %v328_v15 = vld [vmem:[#allocation2 + $0x5f8] sm:$0xff]  ;;  %v5558_v35 = vcombine.low %v315_v21, %v319_v22  ;;  %v5567_v37 = vcombine.high %v323_v31, %v327_v32 }
 0x191   :  { %v5569_v39 = vcombine.high %v324_v33, %v328_v15  ;;  %v5568_v45 = vcombine.low %v324_v33, %v328_v15  ;;  %v387_v15 = vld [vmem:[#allocation2 + $0x7d0] sm:$0xff] }
 0x193   :  { %2781 = vmatpush1.bf16.msra.mxu0 %v5502_v41  ;;  %2904 = vmatpush1.bf16.msra.mxu1 %v5504_v42  ;;  %v335_v41 = vld [vmem:[#allocation2 + $0x630] sm:$0xff]  ;;  %v332_v42 = vld [vmem:[#allocation2 + $0x618] sm:$0xff] }
 0x194   :  { %2791 = vmatprep.subr.bf16.mxu0 %v5511_v43  ;;  %2914 = vmatprep.subr.bf16.mxu1 %v5513_v44  ;;  %v336_v43 = vld [vmem:[#allocation2 + $0x638] sm:$0xff]  ;;  %v5566_v44 = vcombine.low %v323_v31, %v327_v32  ;;  %v5575_v46 = vcombine.high %v331_v40, %v335_v41 }
 0x195   :  { %v5577_v47 = vcombine.high %v332_v42, %v336_v43  ;;  %v5576_v52 = vcombine.low %v332_v42, %v336_v43  ;;  %v395_v43 = vld [vmem:[#allocation2 + $0x810] sm:$0xff] }
 0x196   :  { %2783 = vmatmul.mubr.bf16.vlgmr.msra.gmra.mrb[4].mxu0 %v7016_v12  ;;  %2906 = vmatmul.mubr.bf16.vlgmr.msra.gmra.mrb[4].mxu1 %v7016_v12  ;;  %v5528_v12 = vcombine.low %v284_v55, %v288_v56  ;;  %v347_v56 = vld [vmem:[#allocation2 + $0x690] sm:$0xff] }
 0x197   :  { %2792 = vmatpush1.bf16.msra.mxu0 %v5510_v48  ;;  %2915 = vmatpush1.bf16.msra.mxu1 %v5512_v49  ;;  %v343_v48 = vld [vmem:[#allocation2 + $0x670] sm:$0xff]  ;;  %v340_v49 = vld [vmem:[#allocation2 + $0x658] sm:$0xff] }
 0x198   :  { %2793 = vmatprep.subr.bf16.mxu0 %v5519_v50  ;;  %2916 = vmatprep.subr.bf16.mxu1 %v5521_v51  ;;  %v344_v50 = vld [vmem:[#allocation2 + $0x678] sm:$0xff]  ;;  %v5574_v51 = vcombine.low %v331_v40, %v335_v41  ;;  %v5583_v54 = vcombine.high %v339_v24, %v343_v48 }
 0x199   :  { %2823 = vmatprep.mubr.bf16.mxu0 %v7025_v23  ;;  %2946 = vmatprep.mubr.bf16.mxu1 %v7025_v23  ;;  %v5545_v23 = vcombine.high %v300_v6, %v304_v7  ;;  %v5585_v55 = vcombine.high %v340_v49, %v344_v50  ;;  %v5584_v62 = vcombine.low %v340_v49, %v344_v50  ;;  %v363_v7 = vld [vmem:[#allocation2 + $0x710] sm:$0xff] }
 0x19a   :  { %v403_v50 = vld [vmem:[#allocation2 + $0x850] sm:$0xff] }
 0x19b   :  { %2794 = vmatpush1.bf16.msra.mxu0 %v5518_v58  ;;  %2917 = vmatpush1.bf16.msra.mxu1 %v5520_v59  ;;  %v351_v58 = vld [vmem:[#allocation2 + $0x6b0] sm:$0xff]  ;;  %v348_v59 = vld [vmem:[#allocation2 + $0x698] sm:$0xff] }
 0x19c   :  { %2795 = vmatprep.subr.bf16.mxu0 %v5527_v60  ;;  %2918 = vmatprep.subr.bf16.mxu1 %v5529_v61  ;;  %v352_v60 = vld [vmem:[#allocation2 + $0x6b8] sm:$0xff]  ;;  %v5582_v61 = vcombine.low %v339_v24, %v343_v48  ;;  %v5591_v63 = vcombine.high %v347_v56, %v351_v58 }
 0x19d   :  { %v5593_v0 = vcombine.high %v348_v59, %v352_v60  ;;  %v5592_v4 = vcombine.low %v348_v59, %v352_v60  ;;  %v411_v60 = vld [vmem:[#allocation2 + $0x890] sm:$0xff] }
 0x19f   :  { %2796 = vmatpush1.bf16.msra.mxu0 %v5526_v2  ;;  %2919 = vmatpush1.bf16.msra.mxu1 %v5528_v12  ;;  %v359_v2 = vld [vmem:[#allocation2 + $0x6f0] sm:$0xff]  ;;  %v356_v12 = vld [vmem:[#allocation2 + $0x6d8] sm:$0xff] }
 0x1a0   :  { %2797 = vmatprep.subr.bf16.mxu0 %v5535_v3  ;;  %2920 = vmatprep.subr.bf16.mxu1 %v5537_v57  ;;  %v360_v3 = vld [vmem:[#allocation2 + $0x6f8] sm:$0xff]  ;;  %v5590_v57 = vcombine.low %v347_v56, %v351_v58  ;;  %v5599_v5 = vcombine.high %v355_v1, %v359_v2 }
 0x1a1   :  { %v5601_v6 = vcombine.high %v356_v12, %v360_v3  ;;  %v5600_v11 = vcombine.low %v356_v12, %v360_v3  ;;  %v419_v3 = vld [vmem:[#allocation2 + $0x8d0] sm:$0xff] }
 0x1a3   :  { %2798 = vmatpush1.bf16.msra.mxu0 %v5534_v8  ;;  %2921 = vmatpush1.bf16.msra.mxu1 %v5536_v9  ;;  %v367_v8 = vld [vmem:[#allocation2 + $0x730] sm:$0xff]  ;;  %v364_v9 = vld [vmem:[#allocation2 + $0x718] sm:$0xff] }
 0x1a4   :  { %2799 = vmatprep.subr.bf16.mxu0 %v5543_v10  ;;  %2922 = vmatprep.subr.bf16.mxu1 %v5545_v23  ;;  %v368_v10 = vld [vmem:[#allocation2 + $0x738] sm:$0xff]  ;;  %v5598_v23 = vcombine.low %v355_v1, %v359_v2  ;;  %v5607_v13 = vcombine.high %v363_v7, %v367_v8 }
 0x1a5   :  { %v5609_v14 = vcombine.high %v364_v9, %v368_v10  ;;  %v5608_v21 = vcombine.low %v364_v9, %v368_v10  ;;  %v427_v9 = vld [vmem:[#allocation2 + $0x910] sm:$0xff] }
 0x1a6   :  { %v431_v10 = vld [vmem:[#allocation2 + $0x930] sm:$0xff] }
 0x1a7   :  { %2800 = vmatpush1.bf16.msra.mxu0 %v5542_v17  ;;  %2923 = vmatpush1.bf16.msra.mxu1 %v5544_v18  ;;  %v375_v17 = vld [vmem:[#allocation2 + $0x770] sm:$0xff]  ;;  %v372_v18 = vld [vmem:[#allocation2 + $0x758] sm:$0xff] }
 0x1a8   :  { %2801 = vmatprep.subr.bf16.mxu0 %v5551_v19  ;;  %2924 = vmatprep.subr.bf16.mxu1 %v5553_v20  ;;  %v376_v19 = vld [vmem:[#allocation2 + $0x778] sm:$0xff]  ;;  %v5606_v20 = vcombine.low %v363_v7, %v367_v8  ;;  %v5615_v22 = vcombine.high %v371_v16, %v375_v17 }
 0x1a9   :  { %v5617_v53 = vcombine.high %v372_v18, %v376_v19  ;;  %v5616_v31 = vcombine.low %v372_v18, %v376_v19  ;;  %v439_v18 = vld [vmem:[#allocation2 + $0x970] sm:$0xff]  ;;  %v436_v19 = vld [vmem:[#allocation2 + $0x958] sm:$0xff] }
 0x1ab   :  { %2802 = vmatpush1.bf16.msra.mxu0 %v5550_v27  ;;  %2925 = vmatpush1.bf16.msra.mxu1 %v5552_v28  ;;  %v383_v27 = vld [vmem:[#allocation2 + $0x7b0] sm:$0xff]  ;;  %v380_v28 = vld [vmem:[#allocation2 + $0x798] sm:$0xff] }
 0x1ac   :  { %2803 = vmatprep.subr.bf16.mxu0 %v5559_v29  ;;  %2926 = vmatprep.subr.bf16.mxu1 %v5561_v30  ;;  %v384_v29 = vld [vmem:[#allocation2 + $0x7b8] sm:$0xff]  ;;  %v5614_v30 = vcombine.low %v371_v16, %v375_v17  ;;  %v5623_v32 = vcombine.high %v379_v26, %v383_v27  ;;  %v5671_v16 = vcombine.high %v427_v9, %v431_v10  ;;  %v435_v17 = vld [vmem:[#allocation2 + $0x950] sm:$0xff] }
 0x1ad   :  { %v5625_v33 = vcombine.high %v380_v28, %v384_v29  ;;  %v5624_v40 = vcombine.low %v380_v28, %v384_v29  ;;  %v447_v28 = vld [vmem:[#allocation2 + $0x9b0] sm:$0xff]  ;;  %v444_v29 = vld [vmem:[#allocation2 + $0x998] sm:$0xff] }
 0x1af   :  { %2804 = vmatpush1.bf16.msra.mxu0 %v5558_v35  ;;  %2927 = vmatpush1.bf16.msra.mxu1 %v5560_v36  ;;  %v391_v35 = vld [vmem:[#allocation2 + $0x7f0] sm:$0xff]  ;;  %v388_v36 = vld [vmem:[#allocation2 + $0x7d8] sm:$0xff] }
 0x1b0   :  { %2805 = vmatprep.subr.bf16.mxu0 %v5567_v37  ;;  %2928 = vmatprep.subr.bf16.mxu1 %v5569_v39  ;;  %v392_v37 = vld [vmem:[#allocation2 + $0x7f8] sm:$0xff]  ;;  %v5622_v39 = vcombine.low %v379_v26, %v383_v27  ;;  %v5631_v41 = vcombine.high %v387_v15, %v391_v35  ;;  %v443_v27 = vld [vmem:[#allocation2 + $0x990] sm:$0xff] }
 0x1b1   :  { %v5633_v42 = vcombine.high %v388_v36, %v392_v37  ;;  %v5632_v24 = vcombine.low %v388_v36, %v392_v37  ;;  %v455_v36 = vld [vmem:[#allocation2 + $0x9f0] sm:$0xff]  ;;  %v452_v37 = vld [vmem:[#allocation2 + $0x9d8] sm:$0xff] }
 0x1b3   :  { %2806 = vmatpush1.bf16.msra.mxu0 %v5566_v44  ;;  %2929 = vmatpush1.bf16.msra.mxu1 %v5568_v45  ;;  %v399_v44 = vld [vmem:[#allocation2 + $0x830] sm:$0xff]  ;;  %v396_v45 = vld [vmem:[#allocation2 + $0x818] sm:$0xff] }
 0x1b4   :  { %2807 = vmatprep.subr.bf16.mxu0 %v5575_v46  ;;  %2930 = vmatprep.subr.bf16.mxu1 %v5577_v47  ;;  %v400_v46 = vld [vmem:[#allocation2 + $0x838] sm:$0xff]  ;;  %v5630_v47 = vcombine.low %v387_v15, %v391_v35  ;;  %v5639_v48 = vcombine.high %v395_v43, %v399_v44  ;;  %v451_v35 = vld [vmem:[#allocation2 + $0x9d0] sm:$0xff] }
 0x1b5   :  { %v5641_v49 = vcombine.high %v396_v45, %v400_v46  ;;  %v5640_v56 = vcombine.low %v396_v45, %v400_v46  ;;  %v463_v45 = vld [vmem:[#allocation2 + $0xa30] sm:$0xff]  ;;  %v460_v46 = vld [vmem:[#allocation2 + $0xa18] sm:$0xff] }
 0x1b7   :  { %2808 = vmatpush1.bf16.msra.mxu0 %v5574_v51  ;;  %2931 = vmatpush1.bf16.msra.mxu1 %v5576_v52  ;;  %v407_v51 = vld [vmem:[#allocation2 + $0x870] sm:$0xff]  ;;  %v404_v52 = vld [vmem:[#allocation2 + $0x858] sm:$0xff] }
 0x1b8   :  { %2809 = vmatprep.subr.bf16.mxu0 %v5583_v54  ;;  %2932 = vmatprep.subr.bf16.mxu1 %v5585_v55  ;;  %v408_v54 = vld [vmem:[#allocation2 + $0x878] sm:$0xff]  ;;  %v5638_v55 = vcombine.low %v395_v43, %v399_v44  ;;  %v5647_v58 = vcombine.high %v403_v50, %v407_v51  ;;  %v459_v44 = vld [vmem:[#allocation2 + $0xa10] sm:$0xff] }
 0x1b9   :  { %v5649_v59 = vcombine.high %v404_v52, %v408_v54  ;;  %v5648_v1 = vcombine.low %v404_v52, %v408_v54  ;;  %v471_v52 = vld [vmem:[#allocation2 + $0xa70] sm:$0xff]  ;;  %v468_v54 = vld [vmem:[#allocation2 + $0xa58] sm:$0xff] }
 0x1bb   :  { %2810 = vmatpush1.bf16.msra.mxu0 %v5582_v61  ;;  %2933 = vmatpush1.bf16.msra.mxu1 %v5584_v62  ;;  %v415_v61 = vld [vmem:[#allocation2 + $0x8b0] sm:$0xff]  ;;  %v412_v62 = vld [vmem:[#allocation2 + $0x898] sm:$0xff] }
 0x1bc   :  { %2811 = vmatprep.subr.bf16.mxu0 %v5591_v63  ;;  %2934 = vmatprep.subr.bf16.mxu1 %v5593_v0  ;;  %v416_v63 = vld [vmem:[#allocation2 + $0x8b8] sm:$0xff]  ;;  %v5646_v0 = vcombine.low %v403_v50, %v407_v51  ;;  %v5655_v2 = vcombine.high %v411_v60, %v415_v61  ;;  %v467_v51 = vld [vmem:[#allocation2 + $0xa50] sm:$0xff] }
 0x1bd   :  { %v5657_v12 = vcombine.high %v412_v62, %v416_v63 }
 0x1bf   :  { %2812 = vmatpush1.bf16.msra.mxu0 %v5590_v57  ;;  %2935 = vmatpush1.bf16.msra.mxu1 %v5592_v4  ;;  %v423_v57 = vld [vmem:[#allocation2 + $0x8f0] sm:$0xff]  ;;  %v420_v4 = vld [vmem:[#allocation2 + $0x8d8] sm:$0xff] }
 0x1c0   :  { %2813 = vmatprep.subr.bf16.mxu0 %v5599_v5  ;;  %2936 = vmatprep.subr.bf16.mxu1 %v5601_v6  ;;  %v424_v5 = vld [vmem:[#allocation2 + $0x8f8] sm:$0xff]  ;;  %v5654_v6 = vcombine.low %v411_v60, %v415_v61  ;;  %v5663_v7 = vcombine.high %v419_v3, %v423_v57  ;;  %v475_v61 = vld [vmem:[#allocation2 + $0xa90] sm:$0xff] }
 0x1c1   :  { %v5665_v8 = vcombine.high %v420_v4, %v424_v5 }
 0x1c3   :  { %2814 = vmatpush1.bf16.msra.mxu0 %v5598_v23  ;;  %2937 = vmatpush1.bf16.msra.mxu1 %v5600_v11  ;;  %v428_v23 = vld [vmem:[#allocation2 + $0x918] sm:$0xff] }
 0x1c4   :  { %2815 = vmatprep.subr.bf16.mxu0 %v5607_v13  ;;  %2938 = vmatprep.subr.bf16.mxu1 %v5609_v14  ;;  %v432_v11 = vld [vmem:[#allocation2 + $0x938] sm:$0xff]  ;;  %v5662_v13 = vcombine.low %v419_v3, %v423_v57  ;;  %v5664_v14 = vcombine.low %v420_v4, %v424_v5  ;;  %v483_v57 = vld [vmem:[#allocation2 + $0xad0] sm:$0xff] }
 0x1c5   :  { %v487_v4 = vld [vmem:[#allocation2 + $0xaf0] sm:$0xff]  ;;  %v484_v5 = vld [vmem:[#allocation2 + $0xad8] sm:$0xff] }
 0x1c7   :  { %2816 = vmatpush1.bf16.msra.mxu0 %v5606_v20  ;;  %2939 = vmatpush1.bf16.msra.mxu1 %v5608_v21  ;;  %v440_v20 = vld [vmem:[#allocation2 + $0x978] sm:$0xff]  ;;  %v5670_v21 = vcombine.low %v427_v9, %v431_v10  ;;  %v491_v10 = vld [vmem:[#allocation2 + $0xb10] sm:$0xff] }
 0x1c8   :  { %2817 = vmatprep.subr.bf16.mxu0 %v5615_v22  ;;  %2940 = vmatprep.subr.bf16.mxu1 %v5617_v53  ;;  %v5672_v22 = vcombine.low %v428_v23, %v432_v11  ;;  %v5679_v53 = vcombine.high %v435_v17, %v439_v18  ;;  %v5681_v26 = vcombine.high %v436_v19, %v440_v20 }
 0x1cb   :  { %2818 = vmatpush1.bf16.msra.mxu0 %v5614_v30  ;;  %2941 = vmatpush1.bf16.msra.mxu1 %v5616_v31  ;;  %v448_v30 = vld [vmem:[#allocation2 + $0x9b8] sm:$0xff]  ;;  %v5678_v31 = vcombine.low %v435_v17, %v439_v18  ;;  %v499_v18 = vld [vmem:[#allocation2 + $0xb50] sm:$0xff] }
 0x1cc   :  { %2819 = vmatprep.subr.bf16.mxu0 %v5623_v32  ;;  %2942 = vmatprep.subr.bf16.mxu1 %v5625_v33  ;;  %v5680_v32 = vcombine.low %v436_v19, %v440_v20  ;;  %v5687_v33 = vcombine.high %v443_v27, %v447_v28  ;;  %v5689_v15 = vcombine.high %v444_v29, %v448_v30  ;;  %v503_v19 = vld [vmem:[#allocation2 + $0xb70] sm:$0xff]  ;;  %v500_v20 = vld [vmem:[#allocation2 + $0xb58] sm:$0xff] }
 0x1cf   :  { %2820 = vmatpush1.bf16.msra.mxu0 %v5622_v39  ;;  %2943 = vmatpush1.bf16.msra.mxu1 %v5624_v40  ;;  %v456_v39 = vld [vmem:[#allocation2 + $0x9f8] sm:$0xff]  ;;  %v5686_v40 = vcombine.low %v443_v27, %v447_v28  ;;  %v507_v28 = vld [vmem:[#allocation2 + $0xb90] sm:$0xff] }
 0x1d0   :  { %2821 = vmatprep.subr.bf16.mxu0 %v5631_v41  ;;  %2944 = vmatprep.subr.bf16.mxu1 %v5633_v42  ;;  %v5688_v41 = vcombine.low %v444_v29, %v448_v30  ;;  %v5695_v42 = vcombine.high %v451_v35, %v455_v36  ;;  %v5697_v43 = vcombine.high %v452_v37, %v456_v39  ;;  %v511_v29 = vld [vmem:[#allocation2 + $0xbb0] sm:$0xff]  ;;  %v508_v30 = vld [vmem:[#allocation2 + $0xb98] sm:$0xff] }
 0x1d3   :  { %2822 = vmatpush1.bf16.msra.mxu0 %v5630_v47  ;;  %2945 = vmatpush1.bf16.msra.mxu1 %v5632_v24  ;;  %v464_v47 = vld [vmem:[#allocation2 + $0xa38] sm:$0xff]  ;;  %v5694_v24 = vcombine.low %v451_v35, %v455_v36  ;;  %v515_v36 = vld [vmem:[#allocation2 + $0xbd0] sm:$0xff] }
 0x1d4   :  { %2832 = vmatprep.subr.bf16.mxu0 %v5639_v48  ;;  %2955 = vmatprep.subr.bf16.mxu1 %v5641_v49  ;;  %v5696_v48 = vcombine.low %v452_v37, %v456_v39  ;;  %v5703_v49 = vcombine.high %v459_v44, %v463_v45  ;;  %v5705_v50 = vcombine.high %v460_v46, %v464_v47  ;;  %v519_v37 = vld [vmem:[#allocation2 + $0xbf0] sm:$0xff]  ;;  %v516_v39 = vld [vmem:[#allocation2 + $0xbd8] sm:$0xff] }
 0x1d6   :  { %2824 = vmatmul.mubr.bf16.vlgmr.msra.gmra.mrb[4].mxu0 %v7038_v25  ;;  %2947 = vmatmul.mubr.bf16.vlgmr.msra.gmra.mrb[4].mxu1 %v7038_v25  ;;  %v5656_v25 = vcombine.low %v412_v62, %v416_v63  ;;  %v479_v62 = vld [vmem:[#allocation2 + $0xab0] sm:$0xff]  ;;  %v476_v63 = vld [vmem:[#allocation2 + $0xa98] sm:$0xff] }
 0x1d7   :  { %2833 = vmatpush1.bf16.msra.mxu0 %v5638_v55  ;;  %2956 = vmatpush1.bf16.msra.mxu1 %v5640_v56  ;;  %v472_v55 = vld [vmem:[#allocation2 + $0xa78] sm:$0xff]  ;;  %v5702_v56 = vcombine.low %v459_v44, %v463_v45  ;;  %v5758_v45 = vcombine.low %v515_v36, %v519_v37 }
 0x1d8   :  { %2834 = vmatprep.subr.bf16.mxu0 %v5647_v58  ;;  %2957 = vmatprep.subr.bf16.mxu1 %v5649_v59  ;;  %v5704_v58 = vcombine.low %v460_v46, %v464_v47  ;;  %v5711_v59 = vcombine.high %v467_v51, %v471_v52  ;;  %v5713_v60 = vcombine.high %v468_v54, %v472_v55  ;;  %v6225_v47 = vld [vmem:[#allocation6 + $0x4] ss:$16 sps:$4 sm:$0xff]  }
 0x1d9   :  { %2864 = vmatprep.mubr.bf16.mxu0 %v7042_v34  ;;  %2987 = vmatprep.mubr.bf16.mxu1 %v7042_v34  ;;  %v5673_v34 = vcombine.high %v428_v23, %v432_v11  ;;  %v495_v23 = vld [vmem:[#allocation2 + $0xb30] sm:$0xff]  ;;  %v492_v11 = vld [vmem:[#allocation2 + $0xb18] sm:$0xff] }
 0x1db   :  { %2835 = vmatpush1.bf16.msra.mxu0 %v5646_v0  ;;  %2958 = vmatpush1.bf16.msra.mxu1 %v5648_v1  ;;  %v480_v0 = vld [vmem:[#allocation2 + $0xab8] sm:$0xff]  ;;  %v5710_v1 = vcombine.low %v467_v51, %v471_v52  ;;  %v6234_v51 = vld [vmem:[#allocation6 + $0x2c] ss:$16 sps:$4 sm:$0xff]  }
 0x1dc   :  { %2836 = vmatprep.subr.bf16.mxu0 %v5655_v2  ;;  %2959 = vmatprep.subr.bf16.mxu1 %v5657_v12  ;;  %v5712_v2 = vcombine.low %v468_v54, %v472_v55  ;;  %v5719_v12 = vcombine.high %v475_v61, %v479_v62  ;;  %v5721_v3 = vcombine.high %v476_v63, %v480_v0  ;;  %v6229_v52 = vld [vmem:[#allocation6 + $0x20] ss:$16 sps:$4 sm:$0xff]   ;;  %v6232_v54 = vld [vmem:[#allocation6 + $0x28] ss:$16 sps:$4 sm:$0xff]   ;;  %v6237_v55 = vld [vmem:[#allocation6 + $0x44] ss:$16 sps:$4 sm:$0xff]  }
 0x1df   :  { %2837 = vmatpush1.bf16.msra.mxu0 %v5654_v6  ;;  %2960 = vmatpush1.bf16.msra.mxu1 %v5656_v25  ;;  %v488_v6 = vld [vmem:[#allocation2 + $0xaf8] sm:$0xff]  ;;  %v5718_v25 = vcombine.low %v475_v61, %v479_v62  ;;  %v6246_v62 = vld [vmem:[#allocation6 + $0x6c] ss:$16 sps:$4 sm:$0xff]  }
 0x1e0   :  { %2838 = vmatprep.subr.bf16.mxu0 %v5663_v7  ;;  %2961 = vmatprep.subr.bf16.mxu1 %v5665_v8  ;;  %v5720_v7 = vcombine.low %v476_v63, %v480_v0  ;;  %v5727_v8 = vcombine.high %v483_v57, %v487_v4  ;;  %v5729_v9 = vcombine.high %v484_v5, %v488_v6  ;;  %v6243_v61 = vld [vmem:[#allocation6 + $0x64] ss:$16 sps:$4 sm:$0xff]   ;;  %v6241_v63 = vld [vmem:[#allocation6 + $0x60] ss:$16 sps:$4 sm:$0xff]   ;;  %v6244_v0 = vld [vmem:[#allocation6 + $0x68] ss:$16 sps:$4 sm:$0xff]  }
 0x1e3   :  { %2839 = vmatpush1.bf16.msra.mxu0 %v5662_v13  ;;  %2962 = vmatpush1.bf16.msra.mxu1 %v5664_v14  ;;  %v496_v13 = vld [vmem:[#allocation2 + $0xb38] sm:$0xff]  ;;  %v5726_v14 = vcombine.low %v483_v57, %v487_v4  ;;  %v6250_v57 = vld [vmem:[#allocation6 + $0x88] ss:$16 sps:$4 sm:$0xff]  }
 0x1e4   :  { %2840 = vmatprep.subr.bf16.mxu0 %v5671_v16  ;;  %2963 = vmatprep.subr.bf16.mxu1 %v5673_v34  ;;  %v5728_v16 = vcombine.low %v484_v5, %v488_v6  ;;  %v5735_v34 = vcombine.high %v491_v10, %v495_v23  ;;  %v5737_v17 = vcombine.high %v492_v11, %v496_v13  ;;  %v7069_v4 = vld [vmem:[#allocation4] sm:$0xff]  ;;  %v6255_v5 = vld [vmem:[#allocation6 + $0xa4] ss:$16 sps:$4 sm:$0xff]  }
 0x1e5   :  { %v6258_v6 = vld [vmem:[#allocation6 + $0xac] ss:$16 sps:$4 sm:$0xff]  }
 0x1e7   :  { %2841 = vmatpush1.bf16.msra.mxu0 %v5670_v21  ;;  %2964 = vmatpush1.bf16.msra.mxu1 %v5672_v22  ;;  %v504_v21 = vld [vmem:[#allocation2 + $0xb78] sm:$0xff]  ;;  %v5734_v22 = vcombine.low %v491_v10, %v495_v23  ;;  %v6264_v23 = vld [vmem:[#allocation6 + $0xcc] ss:$16 sps:$4 sm:$0xff]  }
 0x1e8   :  { %2842 = vmatprep.subr.bf16.mxu0 %v5679_v53  ;;  %2965 = vmatprep.subr.bf16.mxu1 %v5681_v26  ;;  %v5736_v53 = vcombine.low %v492_v11, %v496_v13  ;;  %v5743_v26 = vcombine.high %v499_v18, %v503_v19  ;;  %v5745_v27 = vcombine.high %v500_v20, %v504_v21 }
 0x1eb   :  { %2843 = vmatpush1.bf16.msra.mxu0 %v5678_v31  ;;  %2966 = vmatpush1.bf16.msra.mxu1 %v5680_v32  ;;  %v512_v31 = vld [vmem:[#allocation2 + $0xbb8] sm:$0xff]  ;;  %v5742_v32 = vcombine.low %v499_v18, %v503_v19 }
 0x1ec   :  { %2844 = vmatprep.subr.bf16.mxu0 %v5687_v33  ;;  %2967 = vmatprep.subr.bf16.mxu1 %v5689_v15  ;;  %v5744_v33 = vcombine.low %v500_v20, %v504_v21  ;;  %v5751_v15 = vcombine.high %v507_v28, %v511_v29  ;;  %v5753_v35 = vcombine.high %v508_v30, %v512_v31  ;;  %v6262_v20 = vld [vmem:[#allocation6 + $0xc8] ss:$16 sps:$4 sm:$0xff]   ;;  %v6267_v21 = vld [vmem:[#allocation6 + $0xe4] ss:$16 sps:$4 sm:$0xff]  }
 0x1ef   :  { %2845 = vmatpush1.bf16.msra.mxu0 %v5686_v40  ;;  %2968 = vmatpush1.bf16.msra.mxu1 %v5688_v41  ;;  %v520_v40 = vld [vmem:[#allocation2 + $0xbf8] sm:$0xff]  ;;  %v5750_v41 = vcombine.low %v507_v28, %v511_v29  ;;  %v6268_v29 = vld [vmem:[#allocation6 + $0xe8] ss:$16 sps:$4 sm:$0xff]  }
 0x1f0   :  { %2846 = vmatprep.subr.bf16.mxu0 %v5695_v42  ;;  %2969 = vmatprep.subr.bf16.mxu1 %v5697_v43  ;;  %v5752_v42 = vcombine.low %v508_v30, %v512_v31  ;;  %v5759_v43 = vcombine.high %v515_v36, %v519_v37  ;;  %v5761_v44 = vcombine.high %v516_v39, %v520_v40  ;;  %v6265_v28 = vld [vmem:[#allocation6 + $0xe0] ss:$16 sps:$4 sm:$0xff]   ;;  %v6273_v30 = vld [vmem:[#allocation6 + $0x104] ss:$16 sps:$4 sm:$0xff]   ;;  %v6276_v31 = vld [vmem:[#allocation6 + $0x10c] ss:$16 sps:$4 sm:$0xff]  }
 0x1f1   :  { %v5760_v46 = vcombine.low %v516_v39, %v520_v40  ;;  %v6277_v36 = vld [vmem:[#allocation6 + $0x120] ss:$16 sps:$4 sm:$0xff]   ;;  %v6280_v37 = vld [vmem:[#allocation6 + $0x128] ss:$16 sps:$4 sm:$0xff]   ;;  %v6285_v39 = vld [vmem:[#allocation6 + $0x144] ss:$16 sps:$4 sm:$0xff]  }
 0x1f2   :  { %v6288_v40 = vld [vmem:[#allocation6 + $0x14c] ss:$16 sps:$4 sm:$0xff]  }
 0x1f3   :  { %2847 = vmatpush1.bf16.msra.mxu0 %v5694_v24  ;;  %2970 = vmatpush1.bf16.msra.mxu1 %v5696_v48  ;;  %v6228_v24 = vld [vmem:[#allocation6 + $0xc] ss:$16 sps:$4 sm:$0xff]   ;;  %v6223_v48 = vld [vmem:[#allocation6] ss:$16 sps:$4 sm:$0xff]  }
 0x1f4   :  { %2848 = vmatprep.subr.bf16.mxu0 %v5703_v49  ;;  %2971 = vmatprep.subr.bf16.mxu1 %v5705_v50  ;;  %v6226_v49 = vld [vmem:[#allocation6 + $0x8] ss:$16 sps:$4 sm:$0xff]   ;;  %v6231_v50 = vld [vmem:[#allocation6 + $0x24] ss:$16 sps:$4 sm:$0xff]  }
 0x1f7   :  { %2849 = vmatpush1.bf16.msra.mxu0 %v5702_v56  ;;  %2972 = vmatpush1.bf16.msra.mxu1 %v5704_v58  ;;  %v6240_v56 = vld [vmem:[#allocation6 + $0x4c] ss:$16 sps:$4 sm:$0xff]   ;;  %v6235_v58 = vld [vmem:[#allocation6 + $0x40] ss:$16 sps:$4 sm:$0xff]  }
 0x1f8   :  { %2850 = vmatprep.subr.bf16.mxu0 %v5711_v59  ;;  %2973 = vmatprep.subr.bf16.mxu1 %v5713_v60  ;;  %v523_v59 = vlaneseq  ;;  %v6238_v60 = vld [vmem:[#allocation6 + $0x48] ss:$16 sps:$4 sm:$0xff]  }
 0x1fb   :  { %2851 = vmatpush1.bf16.msra.mxu0 %v5710_v1  ;;  %2974 = vmatpush1.bf16.msra.mxu1 %v5712_v2  ;;  %v6249_v1 = vld [vmem:[#allocation6 + $0x84] ss:$16 sps:$4 sm:$0xff]   ;;  %v6252_v2 = vld [vmem:[#allocation6 + $0x8c] ss:$16 sps:$4 sm:$0xff]  }
 0x1fc   :  { %2852 = vmatprep.subr.bf16.mxu0 %v5719_v12  ;;  %2975 = vmatprep.subr.bf16.mxu1 %v5721_v3  ;;  %v6247_v12 = vld [vmem:[#allocation6 + $0x80] ss:$16 sps:$4 sm:$0xff]  }
 0x1ff   :  { %2853 = vmatpush1.bf16.msra.mxu0 %v5718_v25  ;;  %2976 = vmatpush1.bf16.msra.mxu1 %v5720_v7  ;;  %v6253_v7 = vld [vmem:[#allocation6 + $0xa0] ss:$16 sps:$4 sm:$0xff]  }
 0x200   :  { %2854 = vmatprep.subr.bf16.mxu0 %v5727_v8  ;;  %2977 = vmatprep.subr.bf16.mxu1 %v5729_v9  ;;  %v6256_v8 = vld [vmem:[#allocation6 + $0xa8] ss:$16 sps:$4 sm:$0xff]   ;;  %v6261_v9 = vld [vmem:[#allocation6 + $0xc4] ss:$16 sps:$4 sm:$0xff]  }
 0x203   :  { %2855 = vmatpush1.bf16.msra.mxu0 %v5726_v14  ;;  %2978 = vmatpush1.bf16.msra.mxu1 %v5728_v16 }
 0x204   :  { %2856 = vmatprep.subr.bf16.mxu0 %v5735_v34  ;;  %2979 = vmatprep.subr.bf16.mxu1 %v5737_v17  ;;  %v6259_v17 = vld [vmem:[#allocation6 + $0xc0] ss:$16 sps:$4 sm:$0xff]  }
 0x207   :  { %2857 = vmatpush1.bf16.msra.mxu0 %v5734_v22  ;;  %2980 = vmatpush1.bf16.msra.mxu1 %v5736_v53 }
 0x208   :  { %2858 = vmatprep.subr.bf16.mxu0 %v5743_v26  ;;  %2981 = vmatprep.subr.bf16.mxu1 %v5745_v27  ;;  %v6270_v26 = vld [vmem:[#allocation6 + $0xec] ss:$16 sps:$4 sm:$0xff]  }
 0x20b   :  { %2859 = vmatpush1.bf16.msra.mxu0 %v5742_v32  ;;  %2982 = vmatpush1.bf16.msra.mxu1 %v5744_v33  ;;  %v6271_v32 = vld [vmem:[#allocation6 + $0x100] ss:$16 sps:$4 sm:$0xff]   ;;  %v6274_v33 = vld [vmem:[#allocation6 + $0x108] ss:$16 sps:$4 sm:$0xff]  }
 0x20c   :  { %2860 = vmatprep.subr.bf16.mxu0 %v5751_v15  ;;  %2983 = vmatprep.subr.bf16.mxu1 %v5753_v35  ;;  %v6279_v15 = vld [vmem:[#allocation6 + $0x124] ss:$16 sps:$4 sm:$0xff]   ;;  %v6282_v35 = vld [vmem:[#allocation6 + $0x12c] ss:$16 sps:$4 sm:$0xff]  }
 0x20f   :  { %2861 = vmatpush1.bf16.msra.mxu0 %v5750_v41  ;;  %2984 = vmatpush1.bf16.msra.mxu1 %v5752_v42  ;;  %v6283_v41 = vld [vmem:[#allocation6 + $0x140] ss:$16 sps:$4 sm:$0xff]   ;;  %v6286_v42 = vld [vmem:[#allocation6 + $0x148] ss:$16 sps:$4 sm:$0xff]  }
 0x210   :  { %2862 = vmatprep.subr.bf16.mxu0 %v5759_v43  ;;  %2985 = vmatprep.subr.bf16.mxu1 %v5761_v44  ;;  %v6291_v43 = vld [vmem:[#allocation6 + $0x164] ss:$16 sps:$4 sm:$0xff]   ;;  %v6294_v44 = vld [vmem:[#allocation6 + $0x16c] ss:$16 sps:$4 sm:$0xff]  }
 0x213   :  { %2863 = vmatpush1.bf16.msra.mxu0 %v5758_v45  ;;  %2986 = vmatpush1.bf16.msra.mxu1 %v5760_v46  ;;  %v6289_v45 = vld [vmem:[#allocation6 + $0x160] ss:$16 sps:$4 sm:$0xff]   ;;  %v6292_v46 = vld [vmem:[#allocation6 + $0x168] ss:$16 sps:$4 sm:$0xff]  }
 0x214   :  { %4570 = vmatprep.subr.bf16.mxu0 %v6225_v47  ;;  %4734 = vmatprep.subr.bf16.mxu1 %v6228_v24  ;;  %v6297_v47 = vld [vmem:[#allocation6 + $0x184] ss:$16 sps:$4 sm:$0xff]   ;;  %v6300_v24 = vld [vmem:[#allocation6 + $0x18c] ss:$16 sps:$4 sm:$0xff]  }
 0x216   :  { %2865 = vmatmul.mubr.bf16.vlgmr.msra.gmra.mrb[4].mxu0 %v7050_v38  ;;  %2988 = vmatmul.mubr.bf16.vlgmr.msra.gmra.mrb[4].mxu1 %v7050_v38  ;;  %v7066_v38 = vshrl.u32 %v523_v59, 7  ;;  %v6309_v59 = vld [vmem:[#allocation6 + $0x1c4] ss:$16 sps:$4 sm:$0xff]  }
 0x217   :  { %4571 = vmatpush1.bf16.msra.mxu0 %v6223_v48  ;;  %4735 = vmatpush1.bf16.msra.mxu1 %v6226_v49  ;;  %v6295_v48 = vld [vmem:[#allocation6 + $0x180] ss:$16 sps:$4 sm:$0xff]  }
 0x218   :  { %4572 = vmatprep.subr.bf16.mxu0 %v6231_v50  ;;  %4736 = vmatprep.subr.bf16.mxu1 %v6234_v51  ;;  %v529_v3 = vsub.s32 1, %v7066_v38  ;;  %v525_v49 = vsub.s32 0, %v7066_v38  ;;  %v6298_v50 = vld [vmem:[#allocation6 + $0x188] ss:$16 sps:$4 sm:$0xff]   ;;  %v6303_v51 = vld [vmem:[#allocation6 + $0x1a4] ss:$16 sps:$4 sm:$0xff]  }
 0x21a   :  { %v530_v25 = vrot.slane %v7069_v4, %v529_v3 }
 0x21b   :  { %4573 = vmatpush1.bf16.msra.mxu0 %v6229_v52  ;;  %4737 = vmatpush1.bf16.msra.mxu1 %v6232_v54  ;;  %v6306_v52 = vld [vmem:[#allocation6 + $0x1ac] ss:$16 sps:$4 sm:$0xff]   ;;  %v537_v54 = vsub.s32 3, %v7066_v38 }
 0x21c   :  { %4574 = vmatprep.subr.bf16.mxu0 %v6237_v55  ;;  %4738 = vmatprep.subr.bf16.mxu1 %v6240_v56  ;;  %v6301_v55 = vld [vmem:[#allocation6 + $0x1a0] ss:$16 sps:$4 sm:$0xff]   ;;  %v526_v56 = vrot.slane %v7069_v4, %v525_v49 }
 0x21f   :  { %4575 = vmatpush1.bf16.msra.mxu0 %v6235_v58  ;;  %4739 = vmatpush1.bf16.msra.mxu1 %v6238_v60  ;;  %v6304_v58 = vld [vmem:[#allocation6 + $0x1a8] ss:$16 sps:$4 sm:$0xff]   ;;  %v6312_v60 = vld [vmem:[#allocation6 + $0x1cc] ss:$16 sps:$4 sm:$0xff]  }
 0x220   :  { %4576 = vmatprep.subr.bf16.mxu0 %v6243_v61  ;;  %4740 = vmatprep.subr.bf16.mxu1 %v6246_v62  ;;  %v538_v61 = vrot.slane %v7069_v4, %v537_v54  ;;  %v6307_v62 = vld [vmem:[#allocation6 + $0x1c0] ss:$16 sps:$4 sm:$0xff]  }
 0x223   :  { %4577 = vmatpush1.bf16.msra.mxu0 %v6241_v63  ;;  %4741 = vmatpush1.bf16.msra.mxu1 %v6244_v0  ;;  %v6310_v0 = vld [vmem:[#allocation6 + $0x1c8] ss:$16 sps:$4 sm:$0xff]  }
 0x224   :  { %4578 = vmatprep.subr.bf16.mxu0 %v6249_v1  ;;  %4742 = vmatprep.subr.bf16.mxu1 %v6252_v2  ;;  %v6315_v1 = vld [vmem:[#allocation6 + $0x1e4] ss:$16 sps:$4 sm:$0xff]   ;;  %v6318_v2 = vld [vmem:[#allocation6 + $0x1ec] ss:$16 sps:$4 sm:$0xff]  }
 0x227   :  { %4579 = vmatpush1.bf16.msra.mxu0 %v6247_v12  ;;  %4743 = vmatpush1.bf16.msra.mxu1 %v6250_v57  ;;  %v6313_v57 = vld [vmem:[#allocation6 + $0x1e0] ss:$16 sps:$4 sm:$0xff]  }
 0x228   :  { %4580 = vmatprep.subr.bf16.mxu0 %v6255_v5  ;;  %4744 = vmatprep.subr.bf16.mxu1 %v6258_v6  ;;  %v6316_v6 = vld [vmem:[#allocation6 + $0x1e8] ss:$16 sps:$4 sm:$0xff]  }
 0x229   :  { %v7074_v10 = vpop.f32.mrb[0].mxu0  ;;  %v7076_v11 = vpop.f32.mrb[0].mxu1 }
 0x22a   :  { %v2622_v13 = vpop.f32.mrb[1].mxu0  ;;  %v7078_v16 = vpop.f32.mrb[1].mxu1  ;;  %v6133_v63 = vadd.f32 %v7074_v10, %v526_v56  ;;  %v6384_v56 = vld [vmem:[#allocation6 + $0x34c] ss:$16 sps:$4 sm:$0xff]  }
 0x22b   :  { %v6134_v14 = vadd.f32 %v2622_v13, %v530_v25  ;;  %v2624_v34 = vpop.f32.mrb[2].mxu0  ;;  %4581 = vmatpush1.bf16.msra.mxu0 %v6253_v7  ;;  %v2747_v18 = vpop.f32.mrb[2].mxu1  ;;  %4745 = vmatpush1.bf16.msra.mxu1 %v6256_v8  ;;  %v6136_v12 = vadd.f32 %v7078_v16, %v538_v61  ;;  %v6321_v25 = vld [vmem:[#allocation6 + $0x204] ss:$16 sps:$4 sm:$0xff]   ;;  %v6324_v7 = vld [vmem:[#allocation6 + $0x20c] ss:$16 sps:$4 sm:$0xff]  }
 0x22c   :  { %v2625_v19 = vpop.f32.mrb[3].mxu0  ;;  %4582 = vmatprep.subr.bf16.mxu0 %v6261_v9  ;;  %v2748_v53 = vpop.f32.mrb[3].mxu1  ;;  %4746 = vmatprep.subr.bf16.mxu1 %v6264_v23  ;;  %v2996_v5 = vmax.f32 %v6133_v63, 0.0  ;;  %v6319_v9 = vld [vmem:[#allocation6 + $0x200] ss:$16 sps:$4 sm:$0xff]  }
 0x22d   :  { %v2997_v22 = vmax.f32 %v6134_v14, 0.0  ;;  %v2999_v8 = vmax.f32 %v6136_v12, 0.0  ;;  %v6322_v23 = vld [vmem:[#allocation6 + $0x208] ss:$16 sps:$4 sm:$0xff]   ;;  %v6327_v13 = vld [vmem:[#allocation6 + $0x224] ss:$16 sps:$4 sm:$0xff]  }
 0x22e   :  { %v3004_v10 = vpack.c.bf16 %v2996_v5, %v2996_v5  ;;  %v6330_v16 = vld [vmem:[#allocation6 + $0x22c] ss:$16 sps:$4 sm:$0xff]   ;;  %v6325_v34 = vld [vmem:[#allocation6 + $0x220] ss:$16 sps:$4 sm:$0xff]   ;;  %v6333_v18 = vld [vmem:[#allocation6 + $0x244] ss:$16 sps:$4 sm:$0xff]  }
 0x22f   :  { %v3005_v27 = vpack.c.bf16 %v2997_v22, %v2997_v22  ;;  %4583 = vmatpush1.bf16.msra.mxu0 %v6259_v17  ;;  %4747 = vmatpush1.bf16.msra.mxu1 %v6262_v20  ;;  %v3007_v14 = vpack.c.bf16 %v2999_v8, %v2999_v8  ;;  %v6328_v17 = vld [vmem:[#allocation6 + $0x228] ss:$16 sps:$4 sm:$0xff]   ;;  %v6336_v19 = vld [vmem:[#allocation6 + $0x24c] ss:$16 sps:$4 sm:$0xff]   ;;  %v6331_v20 = vld [vmem:[#allocation6 + $0x240] ss:$16 sps:$4 sm:$0xff]  }
 0x230   :  { %4584 = vmatprep.subr.bf16.mxu0 %v6267_v21  ;;  %4748 = vmatprep.subr.bf16.mxu1 %v6270_v26  ;;  %v6334_v21 = vld [vmem:[#allocation6 + $0x248] ss:$16 sps:$4 sm:$0xff]   ;;  %v6339_v22 = vld [vmem:[#allocation6 + $0x264] ss:$16 sps:$4 sm:$0xff]   ;;  %v6342_v53 = vld [vmem:[#allocation6 + $0x26c] ss:$16 sps:$4 sm:$0xff]  }
 0x231   :  { %4602 = vmatprep.mubr.bf16.mxu0 %v3005_v27  ;;  %4766 = vmatprep.mubr.bf16.mxu1 %v3005_v27  ;;  %v6337_v26 = vld [vmem:[#allocation6 + $0x260] ss:$16 sps:$4 sm:$0xff]   ;;  %v6340_v27 = vld [vmem:[#allocation6 + $0x268] ss:$16 sps:$4 sm:$0xff]   ;;  %v6390_v61 = vld [vmem:[#allocation6 + $0x36c] ss:$16 sps:$4 sm:$0xff]  }
 0x232   :  { %v6388_v63 = vld [vmem:[#allocation6 + $0x368] ss:$16 sps:$4 sm:$0xff]   ;;  %v533_v12 = vsub.s32 2, %v7066_v38  ;;  %v6399_v5 = vld [vmem:[#allocation6 + $0x3a4] ss:$16 sps:$4 sm:$0xff]  }
 0x233   :  { %4585 = vmatpush1.bf16.msra.mxu0 %v6265_v28  ;;  %4749 = vmatpush1.bf16.msra.mxu1 %v6268_v29  ;;  %v6345_v28 = vld [vmem:[#allocation6 + $0x284] ss:$16 sps:$4 sm:$0xff]   ;;  %v6348_v29 = vld [vmem:[#allocation6 + $0x28c] ss:$16 sps:$4 sm:$0xff]   ;;  %v6400_v8 = vld [vmem:[#allocation6 + $0x3a8] ss:$16 sps:$4 sm:$0xff]  }
 0x234   :  { %4586 = vmatprep.subr.bf16.mxu0 %v6273_v30  ;;  %4750 = vmatprep.subr.bf16.mxu1 %v6276_v31  ;;  %v6343_v30 = vld [vmem:[#allocation6 + $0x280] ss:$16 sps:$4 sm:$0xff]   ;;  %v6346_v31 = vld [vmem:[#allocation6 + $0x288] ss:$16 sps:$4 sm:$0xff]  }
 0x237   :  { %4587 = vmatpush1.bf16.msra.mxu0 %v6271_v32  ;;  %4751 = vmatpush1.bf16.msra.mxu1 %v6274_v33  ;;  %v6351_v32 = vld [vmem:[#allocation6 + $0x2a4] ss:$16 sps:$4 sm:$0xff]   ;;  %v6354_v33 = vld [vmem:[#allocation6 + $0x2ac] ss:$16 sps:$4 sm:$0xff]  }
 0x238   :  { %4588 = vmatprep.subr.bf16.mxu0 %v6279_v15  ;;  %4752 = vmatprep.subr.bf16.mxu1 %v6282_v35  ;;  %v6349_v15 = vld [vmem:[#allocation6 + $0x2a0] ss:$16 sps:$4 sm:$0xff]   ;;  %v6352_v35 = vld [vmem:[#allocation6 + $0x2a8] ss:$16 sps:$4 sm:$0xff]  }
 0x23b   :  { %4589 = vmatpush1.bf16.msra.mxu0 %v6277_v36  ;;  %4753 = vmatpush1.bf16.msra.mxu1 %v6280_v37  ;;  %v6357_v36 = vld [vmem:[#allocation6 + $0x2c4] ss:$16 sps:$4 sm:$0xff]   ;;  %v6360_v37 = vld [vmem:[#allocation6 + $0x2cc] ss:$16 sps:$4 sm:$0xff]  }
 0x23c   :  { %4590 = vmatprep.subr.bf16.mxu0 %v6285_v39  ;;  %4754 = vmatprep.subr.bf16.mxu1 %v6288_v40  ;;  %v6355_v39 = vld [vmem:[#allocation6 + $0x2c0] ss:$16 sps:$4 sm:$0xff]   ;;  %v6358_v40 = vld [vmem:[#allocation6 + $0x2c8] ss:$16 sps:$4 sm:$0xff]  }
 0x23f   :  { %4591 = vmatpush1.bf16.msra.mxu0 %v6283_v41  ;;  %4755 = vmatpush1.bf16.msra.mxu1 %v6286_v42  ;;  %v6363_v41 = vld [vmem:[#allocation6 + $0x2e4] ss:$16 sps:$4 sm:$0xff]   ;;  %v6366_v42 = vld [vmem:[#allocation6 + $0x2ec] ss:$16 sps:$4 sm:$0xff]  }
 0x240   :  { %4592 = vmatprep.subr.bf16.mxu0 %v6291_v43  ;;  %4756 = vmatprep.subr.bf16.mxu1 %v6294_v44  ;;  %v6361_v43 = vld [vmem:[#allocation6 + $0x2e0] ss:$16 sps:$4 sm:$0xff]   ;;  %v6364_v44 = vld [vmem:[#allocation6 + $0x2e8] ss:$16 sps:$4 sm:$0xff]  }
 0x243   :  { %4593 = vmatpush1.bf16.msra.mxu0 %v6289_v45  ;;  %4757 = vmatpush1.bf16.msra.mxu1 %v6292_v46  ;;  %v6369_v45 = vld [vmem:[#allocation6 + $0x304] ss:$16 sps:$4 sm:$0xff]   ;;  %v6372_v46 = vld [vmem:[#allocation6 + $0x30c] ss:$16 sps:$4 sm:$0xff]  }
 0x244   :  { %4594 = vmatprep.subr.bf16.mxu0 %v6297_v47  ;;  %4758 = vmatprep.subr.bf16.mxu1 %v6300_v24  ;;  %v6367_v47 = vld [vmem:[#allocation6 + $0x300] ss:$16 sps:$4 sm:$0xff]   ;;  %v6370_v24 = vld [vmem:[#allocation6 + $0x308] ss:$16 sps:$4 sm:$0xff]  }
 0x247   :  { %4595 = vmatpush1.bf16.msra.mxu0 %v6295_v48  ;;  %4759 = vmatpush1.bf16.msra.mxu1 %v6298_v50  ;;  %v6375_v48 = vld [vmem:[#allocation6 + $0x324] ss:$16 sps:$4 sm:$0xff]   ;;  %v6378_v50 = vld [vmem:[#allocation6 + $0x32c] ss:$16 sps:$4 sm:$0xff]  }
 0x248   :  { %4596 = vmatprep.subr.bf16.mxu0 %v6303_v51  ;;  %4760 = vmatprep.subr.bf16.mxu1 %v6306_v52  ;;  %v6373_v51 = vld [vmem:[#allocation6 + $0x320] ss:$16 sps:$4 sm:$0xff]   ;;  %v6376_v52 = vld [vmem:[#allocation6 + $0x328] ss:$16 sps:$4 sm:$0xff]  }
 0x24b   :  { %4597 = vmatpush1.bf16.msra.mxu0 %v6301_v55  ;;  %4761 = vmatpush1.bf16.msra.mxu1 %v6304_v58  ;;  %v6381_v55 = vld [vmem:[#allocation6 + $0x344] ss:$16 sps:$4 sm:$0xff]   ;;  %v6379_v58 = vld [vmem:[#allocation6 + $0x340] ss:$16 sps:$4 sm:$0xff]  }
 0x24c   :  { %4598 = vmatprep.subr.bf16.mxu0 %v6309_v59  ;;  %4762 = vmatprep.subr.bf16.mxu1 %v6312_v60  ;;  %v6382_v59 = vld [vmem:[#allocation6 + $0x348] ss:$16 sps:$4 sm:$0xff]   ;;  %v6387_v60 = vld [vmem:[#allocation6 + $0x364] ss:$16 sps:$4 sm:$0xff]  }
 0x24f   :  { %4599 = vmatpush1.bf16.msra.mxu0 %v6307_v62  ;;  %4763 = vmatpush1.bf16.msra.mxu1 %v6310_v0  ;;  %v6385_v62 = vld [vmem:[#allocation6 + $0x360] ss:$16 sps:$4 sm:$0xff]   ;;  %v6393_v0 = vld [vmem:[#allocation6 + $0x384] ss:$16 sps:$4 sm:$0xff]  }
 0x250   :  { %4600 = vmatprep.subr.bf16.mxu0 %v6315_v1  ;;  %4764 = vmatprep.subr.bf16.mxu1 %v6318_v2  ;;  %v6396_v1 = vld [vmem:[#allocation6 + $0x38c] ss:$16 sps:$4 sm:$0xff]   ;;  %v6391_v2 = vld [vmem:[#allocation6 + $0x380] ss:$16 sps:$4 sm:$0xff]  }
 0x253   :  { %4601 = vmatpush1.bf16.msra.mxu0 %v6313_v57  ;;  %4765 = vmatpush1.bf16.msra.mxu1 %v6316_v6  ;;  %v6394_v57 = vld [vmem:[#allocation6 + $0x388] ss:$16 sps:$4 sm:$0xff]   ;;  %v6402_v6 = vld [vmem:[#allocation6 + $0x3ac] ss:$16 sps:$4 sm:$0xff]  }
 0x254   :  { %4611 = vmatprep.subr.bf16.mxu0 %v6321_v25  ;;  %4775 = vmatprep.subr.bf16.mxu1 %v6324_v7  ;;  %v6397_v25 = vld [vmem:[#allocation6 + $0x3a0] ss:$16 sps:$4 sm:$0xff]   ;;  %v534_v7 = vrot.slane %v7069_v4, %v533_v12 }
 0x256   :  { %4603 = vmatmul.mubr.bf16.vlgmr.msra.gmra.mrb[8].mxu0 %v3004_v10  ;;  %4767 = vmatmul.mubr.bf16.vlgmr.msra.gmra.mrb[8].mxu1 %v3004_v10  ;;  %v6408_v10 = vld [vmem:[#allocation6 + $0x3cc] ss:$16 sps:$4 sm:$0xff]  }
 0x257   :  { %4612 = vmatpush1.bf16.msra.mxu0 %v6319_v9  ;;  %4643 = vmatprep.mubr.bf16.mxu0 %v3007_v14  ;;  %v6405_v9 = vld [vmem:[#allocation6 + $0x3c4] ss:$16 sps:$4 sm:$0xff]  }
 0x258   :  { %4776 = vmatpush1.bf16.msra.mxu1 %v6322_v23  ;;  %4807 = vmatprep.mubr.bf16.mxu1 %v3007_v14  ;;  %v6403_v23 = vld [vmem:[#allocation6 + $0x3c0] ss:$16 sps:$4 sm:$0xff]   ;;  %v6406_v14 = vld [vmem:[#allocation6 + $0x3c8] ss:$16 sps:$4 sm:$0xff]  }
 0x259   :  { %4613 = vmatprep.subr.bf16.mxu0 %v6327_v13  ;;  %4777 = vmatprep.subr.bf16.mxu1 %v6330_v16  ;;  %v6135_v13 = vadd.f32 %v7076_v11, %v534_v7  ;;  %v6411_v16 = vld [vmem:[#allocation6 + $0x3e4] ss:$16 sps:$4 sm:$0xff]   ;;  %v6418_v11 = vld [vmem:[#allocation6 + $0x408] ss:$16 sps:$4 sm:$0xff]   ;;  %v6486_v7 = vld [vmem:[#allocation6 + $0x56c] ss:$16 sps:$4 sm:$0xff]  }
 0x25b   :  { %4614 = vmatpush1.bf16.msra.mxu0 %v6325_v34  ;;  %v6414_v34 = vld [vmem:[#allocation6 + $0x3ec] ss:$16 sps:$4 sm:$0xff]  }
 0x25c   :  { %4778 = vmatpush1.bf16.msra.mxu1 %v6328_v17  ;;  %4615 = vmatprep.subr.bf16.mxu0 %v6333_v18  ;;  %v6409_v17 = vld [vmem:[#allocation6 + $0x3e0] ss:$16 sps:$4 sm:$0xff]   ;;  %v2998_v18 = vmax.f32 %v6135_v13, 0.0 }
 0x25d   :  { %4779 = vmatprep.subr.bf16.mxu1 %v6336_v19  ;;  %v6412_v19 = vld [vmem:[#allocation6 + $0x3e8] ss:$16 sps:$4 sm:$0xff]   ;;  %v6487_v13 = vld [vmem:[#allocation6 + $0x580] ss:$16 sps:$4 sm:$0xff]  }
 0x25f   :  { %4616 = vmatpush1.bf16.msra.mxu0 %v6331_v20  ;;  %v6417_v20 = vld [vmem:[#allocation6 + $0x404] ss:$16 sps:$4 sm:$0xff]  }
 0x260   :  { %4780 = vmatpush1.bf16.msra.mxu1 %v6334_v21  ;;  %4617 = vmatprep.subr.bf16.mxu0 %v6339_v22  ;;  %v6420_v21 = vld [vmem:[#allocation6 + $0x40c] ss:$16 sps:$4 sm:$0xff]   ;;  %v6415_v22 = vld [vmem:[#allocation6 + $0x400] ss:$16 sps:$4 sm:$0xff]  }
 0x261   :  { %4781 = vmatprep.subr.bf16.mxu1 %v6342_v53  ;;  %v3006_v53 = vpack.c.bf16 %v2998_v18, %v2998_v18  ;;  %v6496_v18 = vld [vmem:[#allocation6 + $0x5a8] ss:$16 sps:$4 sm:$0xff]  }
 0x263   :  { %4618 = vmatpush1.bf16.msra.mxu0 %v6337_v26  ;;  %v6423_v26 = vld [vmem:[#allocation6 + $0x424] ss:$16 sps:$4 sm:$0xff]  }
 0x264   :  { %4782 = vmatpush1.bf16.msra.mxu1 %v6340_v27  ;;  %4619 = vmatprep.subr.bf16.mxu0 %v6345_v28  ;;  %v6426_v27 = vld [vmem:[#allocation6 + $0x42c] ss:$16 sps:$4 sm:$0xff]   ;;  %v6421_v28 = vld [vmem:[#allocation6 + $0x420] ss:$16 sps:$4 sm:$0xff]  }
 0x265   :  { %4783 = vmatprep.subr.bf16.mxu1 %v6348_v29  ;;  %v6424_v29 = vld [vmem:[#allocation6 + $0x428] ss:$16 sps:$4 sm:$0xff]  }
 0x267   :  { %4620 = vmatpush1.bf16.msra.mxu0 %v6343_v30  ;;  %v6429_v30 = vld [vmem:[#allocation6 + $0x444] ss:$16 sps:$4 sm:$0xff]  }
 0x268   :  { %4784 = vmatpush1.bf16.msra.mxu1 %v6346_v31  ;;  %4621 = vmatprep.subr.bf16.mxu0 %v6351_v32  ;;  %v6432_v31 = vld [vmem:[#allocation6 + $0x44c] ss:$16 sps:$4 sm:$0xff]   ;;  %v6427_v32 = vld [vmem:[#allocation6 + $0x440] ss:$16 sps:$4 sm:$0xff]  }
 0x269   :  { %4785 = vmatprep.subr.bf16.mxu1 %v6354_v33  ;;  %v6430_v33 = vld [vmem:[#allocation6 + $0x448] ss:$16 sps:$4 sm:$0xff]  }
 0x26b   :  { %4622 = vmatpush1.bf16.msra.mxu0 %v6349_v15  ;;  %v6435_v15 = vld [vmem:[#allocation6 + $0x464] ss:$16 sps:$4 sm:$0xff]  }
 0x26c   :  { %4786 = vmatpush1.bf16.msra.mxu1 %v6352_v35  ;;  %4623 = vmatprep.subr.bf16.mxu0 %v6357_v36  ;;  %v6438_v35 = vld [vmem:[#allocation6 + $0x46c] ss:$16 sps:$4 sm:$0xff]   ;;  %v6433_v36 = vld [vmem:[#allocation6 + $0x460] ss:$16 sps:$4 sm:$0xff]  }
 0x26d   :  { %4787 = vmatprep.subr.bf16.mxu1 %v6360_v37  ;;  %v6436_v37 = vld [vmem:[#allocation6 + $0x468] ss:$16 sps:$4 sm:$0xff]  }
 0x26f   :  { %4624 = vmatpush1.bf16.msra.mxu0 %v6355_v39  ;;  %v6441_v39 = vld [vmem:[#allocation6 + $0x484] ss:$16 sps:$4 sm:$0xff]  }
 0x270   :  { %4788 = vmatpush1.bf16.msra.mxu1 %v6358_v40  ;;  %4625 = vmatprep.subr.bf16.mxu0 %v6363_v41  ;;  %v6444_v40 = vld [vmem:[#allocation6 + $0x48c] ss:$16 sps:$4 sm:$0xff]   ;;  %v6439_v41 = vld [vmem:[#allocation6 + $0x480] ss:$16 sps:$4 sm:$0xff]  }
 0x271   :  { %4789 = vmatprep.subr.bf16.mxu1 %v6366_v42  ;;  %v6442_v42 = vld [vmem:[#allocation6 + $0x488] ss:$16 sps:$4 sm:$0xff]  }
 0x273   :  { %4626 = vmatpush1.bf16.msra.mxu0 %v6361_v43  ;;  %v6447_v43 = vld [vmem:[#allocation6 + $0x4a4] ss:$16 sps:$4 sm:$0xff]  }
 0x274   :  { %4790 = vmatpush1.bf16.msra.mxu1 %v6364_v44  ;;  %4627 = vmatprep.subr.bf16.mxu0 %v6369_v45  ;;  %v6450_v44 = vld [vmem:[#allocation6 + $0x4ac] ss:$16 sps:$4 sm:$0xff]   ;;  %v6445_v45 = vld [vmem:[#allocation6 + $0x4a0] ss:$16 sps:$4 sm:$0xff]  }
 0x275   :  { %4791 = vmatprep.subr.bf16.mxu1 %v6372_v46  ;;  %v6448_v46 = vld [vmem:[#allocation6 + $0x4a8] ss:$16 sps:$4 sm:$0xff]  }
 0x277   :  { %4628 = vmatpush1.bf16.msra.mxu0 %v6367_v47  ;;  %v6453_v47 = vld [vmem:[#allocation6 + $0x4c4] ss:$16 sps:$4 sm:$0xff]  }
 0x278   :  { %4792 = vmatpush1.bf16.msra.mxu1 %v6370_v24  ;;  %4629 = vmatprep.subr.bf16.mxu0 %v6375_v48  ;;  %v6456_v24 = vld [vmem:[#allocation6 + $0x4cc] ss:$16 sps:$4 sm:$0xff]   ;;  %v6451_v48 = vld [vmem:[#allocation6 + $0x4c0] ss:$16 sps:$4 sm:$0xff]  }
 0x279   :  { %4793 = vmatprep.subr.bf16.mxu1 %v6378_v50  ;;  %v6454_v50 = vld [vmem:[#allocation6 + $0x4c8] ss:$16 sps:$4 sm:$0xff]  }
 0x27b   :  { %4630 = vmatpush1.bf16.msra.mxu0 %v6373_v51  ;;  %v6459_v51 = vld [vmem:[#allocation6 + $0x4e4] ss:$16 sps:$4 sm:$0xff]  }
 0x27c   :  { %4794 = vmatpush1.bf16.msra.mxu1 %v6376_v52  ;;  %4631 = vmatprep.subr.bf16.mxu0 %v6381_v55  ;;  %v6462_v52 = vld [vmem:[#allocation6 + $0x4ec] ss:$16 sps:$4 sm:$0xff]   ;;  %v6457_v55 = vld [vmem:[#allocation6 + $0x4e0] ss:$16 sps:$4 sm:$0xff]  }
 0x27d   :  { %4795 = vmatprep.subr.bf16.mxu1 %v6384_v56  ;;  %v6460_v56 = vld [vmem:[#allocation6 + $0x4e8] ss:$16 sps:$4 sm:$0xff]  }
 0x27f   :  { %4632 = vmatpush1.bf16.msra.mxu0 %v6379_v58  ;;  %v6465_v58 = vld [vmem:[#allocation6 + $0x504] ss:$16 sps:$4 sm:$0xff]  }
 0x280   :  { %4796 = vmatpush1.bf16.msra.mxu1 %v6382_v59  ;;  %4633 = vmatprep.subr.bf16.mxu0 %v6387_v60  ;;  %v6468_v59 = vld [vmem:[#allocation6 + $0x50c] ss:$16 sps:$4 sm:$0xff]   ;;  %v6463_v60 = vld [vmem:[#allocation6 + $0x500] ss:$16 sps:$4 sm:$0xff]  }
 0x281   :  { %4797 = vmatprep.subr.bf16.mxu1 %v6390_v61  ;;  %v6466_v61 = vld [vmem:[#allocation6 + $0x508] ss:$16 sps:$4 sm:$0xff]  }
 0x283   :  { %4634 = vmatpush1.bf16.msra.mxu0 %v6385_v62  ;;  %v6471_v62 = vld [vmem:[#allocation6 + $0x524] ss:$16 sps:$4 sm:$0xff]  }
 0x284   :  { %4798 = vmatpush1.bf16.msra.mxu1 %v6388_v63  ;;  %4635 = vmatprep.subr.bf16.mxu0 %v6393_v0  ;;  %v6474_v63 = vld [vmem:[#allocation6 + $0x52c] ss:$16 sps:$4 sm:$0xff]   ;;  %v6469_v0 = vld [vmem:[#allocation6 + $0x520] ss:$16 sps:$4 sm:$0xff]  }
 0x285   :  { %4799 = vmatprep.subr.bf16.mxu1 %v6396_v1  ;;  %v6472_v1 = vld [vmem:[#allocation6 + $0x528] ss:$16 sps:$4 sm:$0xff]  }
 0x287   :  { %4636 = vmatpush1.bf16.msra.mxu0 %v6391_v2  ;;  %v6477_v2 = vld [vmem:[#allocation6 + $0x544] ss:$16 sps:$4 sm:$0xff]  }
 0x288   :  { %4800 = vmatpush1.bf16.msra.mxu1 %v6394_v57  ;;  %4637 = vmatprep.subr.bf16.mxu0 %v6399_v5  ;;  %v6480_v57 = vld [vmem:[#allocation6 + $0x54c] ss:$16 sps:$4 sm:$0xff]   ;;  %v6475_v5 = vld [vmem:[#allocation6 + $0x540] ss:$16 sps:$4 sm:$0xff]  }
 0x289   :  { %4801 = vmatprep.subr.bf16.mxu1 %v6402_v6  ;;  %v6478_v6 = vld [vmem:[#allocation6 + $0x548] ss:$16 sps:$4 sm:$0xff]  }
 0x28b   :  { %4638 = vmatpush1.bf16.msra.mxu0 %v6397_v25  ;;  %v6483_v25 = vld [vmem:[#allocation6 + $0x564] ss:$16 sps:$4 sm:$0xff]  }
 0x28c   :  { %4802 = vmatpush1.bf16.msra.mxu1 %v6400_v8  ;;  %4639 = vmatprep.subr.bf16.mxu0 %v6405_v9  ;;  %v6481_v8 = vld [vmem:[#allocation6 + $0x560] ss:$16 sps:$4 sm:$0xff]   ;;  %v6484_v9 = vld [vmem:[#allocation6 + $0x568] ss:$16 sps:$4 sm:$0xff]  }
 0x28d   :  { %4803 = vmatprep.subr.bf16.mxu1 %v6408_v10  ;;  %v6489_v10 = vld [vmem:[#allocation6 + $0x584] ss:$16 sps:$4 sm:$0xff]  }
 0x28f   :  { %4640 = vmatpush1.bf16.msra.mxu0 %v6403_v23  ;;  %v6492_v23 = vld [vmem:[#allocation6 + $0x58c] ss:$16 sps:$4 sm:$0xff]  }
 0x290   :  { %4804 = vmatpush1.bf16.msra.mxu1 %v6406_v14  ;;  %4641 = vmatprep.subr.bf16.mxu0 %v6411_v16  ;;  %v6490_v14 = vld [vmem:[#allocation6 + $0x588] ss:$16 sps:$4 sm:$0xff]   ;;  %v6495_v16 = vld [vmem:[#allocation6 + $0x5a4] ss:$16 sps:$4 sm:$0xff]  }
 0x291   :  { %4805 = vmatprep.subr.bf16.mxu1 %v6414_v34  ;;  %v6498_v34 = vld [vmem:[#allocation6 + $0x5ac] ss:$16 sps:$4 sm:$0xff]  }
 0x293   :  { %4642 = vmatpush1.bf16.msra.mxu0 %v6409_v17  ;;  %v6493_v17 = vld [vmem:[#allocation6 + $0x5a0] ss:$16 sps:$4 sm:$0xff]  }
 0x294   :  { %4806 = vmatpush1.bf16.msra.mxu1 %v6412_v19  ;;  %4652 = vmatprep.subr.bf16.mxu0 %v6417_v20  ;;  %v6501_v19 = vld [vmem:[#allocation6 + $0x5c4] ss:$16 sps:$4 sm:$0xff]   ;;  %v6504_v20 = vld [vmem:[#allocation6 + $0x5cc] ss:$16 sps:$4 sm:$0xff]  }
 0x295   :  { %4816 = vmatprep.subr.bf16.mxu1 %v6420_v21  ;;  %v6499_v21 = vld [vmem:[#allocation6 + $0x5c0] ss:$16 sps:$4 sm:$0xff]  }
 0x296   :  { %4644 = vmatmul.mubr.bf16.vlgmr.msra.gmra.mrb[8].mxu0 %v3006_v53 }
 0x297   :  { %4808 = vmatmul.mubr.bf16.vlgmr.msra.gmra.mrb[8].mxu1 %v3006_v53  ;;  %4653 = vmatpush1.bf16.msra.mxu0 %v6415_v22  ;;  %v6502_v22 = vld [vmem:[#allocation6 + $0x5c8] ss:$16 sps:$4 sm:$0xff]   ;;  %v6507_v53 = vld [vmem:[#allocation6 + $0x5e4] ss:$16 sps:$4 sm:$0xff]  }
 0x298   :  { %4817 = vmatpush1.bf16.msra.mxu1 %v6418_v11  ;;  %4654 = vmatprep.subr.bf16.mxu0 %v6423_v26  ;;  %v6510_v11 = vld [vmem:[#allocation6 + $0x5ec] ss:$16 sps:$4 sm:$0xff]   ;;  %v6505_v26 = vld [vmem:[#allocation6 + $0x5e0] ss:$16 sps:$4 sm:$0xff]  }
 0x299   :  { %4818 = vmatprep.subr.bf16.mxu1 %v6426_v27  ;;  %v6508_v27 = vld [vmem:[#allocation6 + $0x5e8] ss:$16 sps:$4 sm:$0xff]  }
 0x29b   :  { %4655 = vmatpush1.bf16.msra.mxu0 %v6421_v28  ;;  %v6513_v28 = vld [vmem:[#allocation6 + $0x604] ss:$16 sps:$4 sm:$0xff]  }
 0x29c   :  { %4819 = vmatpush1.bf16.msra.mxu1 %v6424_v29  ;;  %4656 = vmatprep.subr.bf16.mxu0 %v6429_v30  ;;  %v6516_v29 = vld [vmem:[#allocation6 + $0x60c] ss:$16 sps:$4 sm:$0xff]   ;;  %v541_v30 = vsub.s32 4, %v7066_v38 }
 0x29d   :  { %4820 = vmatprep.subr.bf16.mxu1 %v6432_v31  ;;  %v545_v31 = vsub.s32 5, %v7066_v38 }
 0x29f   :  { %4657 = vmatpush1.bf16.msra.mxu0 %v6427_v32  ;;  %v553_v32 = vsub.s32 7, %v7066_v38 }
 0x2a0   :  { %4821 = vmatpush1.bf16.msra.mxu1 %v6430_v33  ;;  %4658 = vmatprep.subr.bf16.mxu0 %v6435_v15  ;;  %v542_v33 = vrot.slane %v7069_v4, %v541_v30  ;;  %v546_v15 = vrot.slane %v7069_v4, %v545_v31  ;;  %v6565_v30 = vld [vmem:[#allocation6 + $0x720] ss:$16 sps:$4 sm:$0xff]   ;;  %v6568_v31 = vld [vmem:[#allocation6 + $0x728] ss:$16 sps:$4 sm:$0xff]  }
 0x2a1   :  { %4822 = vmatprep.subr.bf16.mxu1 %v6438_v35  ;;  %v554_v35 = vrot.slane %v7069_v4, %v553_v32  ;;  %v6519_v4 = vld [vmem:[#allocation6 + $0x624] ss:$16 sps:$4 sm:$0xff]  }
 0x2a2   :  { %v6573_v32 = vld [vmem:[#allocation6 + $0x744] ss:$16 sps:$4 sm:$0xff]  }
 0x2a3   :  { %4659 = vmatpush1.bf16.msra.mxu0 %v6433_v36 }
 0x2a4   :  { %4823 = vmatpush1.bf16.msra.mxu1 %v6436_v37  ;;  %4660 = vmatprep.subr.bf16.mxu0 %v6441_v39 }
 0x2a5   :  { %4824 = vmatprep.subr.bf16.mxu1 %v6444_v40 }
 0x2a7   :  { %4661 = vmatpush1.bf16.msra.mxu0 %v6439_v41 }
 0x2a8   :  { %4825 = vmatpush1.bf16.msra.mxu1 %v6442_v42  ;;  %4662 = vmatprep.subr.bf16.mxu0 %v6447_v43 }
 0x2a9   :  { %4826 = vmatprep.subr.bf16.mxu1 %v6450_v44 }
 0x2ab   :  { %4663 = vmatpush1.bf16.msra.mxu0 %v6445_v45 }
 0x2ac   :  { %4827 = vmatpush1.bf16.msra.mxu1 %v6448_v46  ;;  %4664 = vmatprep.subr.bf16.mxu0 %v6453_v47 }
 0x2ad   :  { %4828 = vmatprep.subr.bf16.mxu1 %v6456_v24 }
 0x2af   :  { %4665 = vmatpush1.bf16.msra.mxu0 %v6451_v48 }
 0x2b0   :  { %4829 = vmatpush1.bf16.msra.mxu1 %v6454_v50  ;;  %4666 = vmatprep.subr.bf16.mxu0 %v6459_v51 }
 0x2b1   :  { %4830 = vmatprep.subr.bf16.mxu1 %v6462_v52  ;;  %v6511_v52 = vld [vmem:[#allocation6 + $0x600] ss:$16 sps:$4 sm:$0xff]  }
 0x2b3   :  { %4667 = vmatpush1.bf16.msra.mxu0 %v6457_v55  ;;  %v6514_v55 = vld [vmem:[#allocation6 + $0x608] ss:$16 sps:$4 sm:$0xff]  }
 0x2b4   :  { %4831 = vmatpush1.bf16.msra.mxu1 %v6460_v56  ;;  %4668 = vmatprep.subr.bf16.mxu0 %v6465_v58  ;;  %v6522_v58 = vld [vmem:[#allocation6 + $0x62c] ss:$16 sps:$4 sm:$0xff]  }
 0x2b5   :  { %4832 = vmatprep.subr.bf16.mxu1 %v6468_v59 }
 0x2b7   :  { %4669 = vmatpush1.bf16.msra.mxu0 %v6463_v60  ;;  %v6517_v60 = vld [vmem:[#allocation6 + $0x620] ss:$16 sps:$4 sm:$0xff]  }
 0x2b8   :  { %4833 = vmatpush1.bf16.msra.mxu1 %v6466_v61  ;;  %4670 = vmatprep.subr.bf16.mxu0 %v6471_v62  ;;  %v6520_v61 = vld [vmem:[#allocation6 + $0x628] ss:$16 sps:$4 sm:$0xff]   ;;  %v6525_v62 = vld [vmem:[#allocation6 + $0x644] ss:$16 sps:$4 sm:$0xff]  }
 0x2b9   :  { %4834 = vmatprep.subr.bf16.mxu1 %v6474_v63  ;;  %v6528_v63 = vld [vmem:[#allocation6 + $0x64c] ss:$16 sps:$4 sm:$0xff]  }
 0x2bb   :  { %4671 = vmatpush1.bf16.msra.mxu0 %v6469_v0  ;;  %v6523_v0 = vld [vmem:[#allocation6 + $0x640] ss:$16 sps:$4 sm:$0xff]  }
 0x2bc   :  { %4835 = vmatpush1.bf16.msra.mxu1 %v6472_v1  ;;  %4672 = vmatprep.subr.bf16.mxu0 %v6477_v2  ;;  %v6526_v1 = vld [vmem:[#allocation6 + $0x648] ss:$16 sps:$4 sm:$0xff]   ;;  %v6531_v2 = vld [vmem:[#allocation6 + $0x664] ss:$16 sps:$4 sm:$0xff]  }
 0x2bd   :  { %4836 = vmatprep.subr.bf16.mxu1 %v6480_v57  ;;  %v6534_v57 = vld [vmem:[#allocation6 + $0x66c] ss:$16 sps:$4 sm:$0xff]  }
 0x2bf   :  { %4673 = vmatpush1.bf16.msra.mxu0 %v6475_v5  ;;  %v6529_v5 = vld [vmem:[#allocation6 + $0x660] ss:$16 sps:$4 sm:$0xff]  }
 0x2c0   :  { %4837 = vmatpush1.bf16.msra.mxu1 %v6478_v6  ;;  %4674 = vmatprep.subr.bf16.mxu0 %v6483_v25  ;;  %v6532_v6 = vld [vmem:[#allocation6 + $0x668] ss:$16 sps:$4 sm:$0xff]   ;;  %v6537_v25 = vld [vmem:[#allocation6 + $0x684] ss:$16 sps:$4 sm:$0xff]  }
 0x2c1   :  { %4838 = vmatprep.subr.bf16.mxu1 %v6486_v7  ;;  %v6540_v7 = vld [vmem:[#allocation6 + $0x68c] ss:$16 sps:$4 sm:$0xff]  }
 0x2c3   :  { %4675 = vmatpush1.bf16.msra.mxu0 %v6481_v8  ;;  %v6535_v8 = vld [vmem:[#allocation6 + $0x680] ss:$16 sps:$4 sm:$0xff]  }
 0x2c4   :  { %4839 = vmatpush1.bf16.msra.mxu1 %v6484_v9  ;;  %4676 = vmatprep.subr.bf16.mxu0 %v6489_v10  ;;  %v6538_v9 = vld [vmem:[#allocation6 + $0x688] ss:$16 sps:$4 sm:$0xff]   ;;  %v6543_v10 = vld [vmem:[#allocation6 + $0x6a4] ss:$16 sps:$4 sm:$0xff]  }
 0x2c5   :  { %4840 = vmatprep.subr.bf16.mxu1 %v6492_v23  ;;  %v6546_v23 = vld [vmem:[#allocation6 + $0x6ac] ss:$16 sps:$4 sm:$0xff]  }
 0x2c7   :  { %4677 = vmatpush1.bf16.msra.mxu0 %v6487_v13  ;;  %v6541_v13 = vld [vmem:[#allocation6 + $0x6a0] ss:$16 sps:$4 sm:$0xff]  }
 0x2c8   :  { %4841 = vmatpush1.bf16.msra.mxu1 %v6490_v14  ;;  %4678 = vmatprep.subr.bf16.mxu0 %v6495_v16  ;;  %v6544_v14 = vld [vmem:[#allocation6 + $0x6a8] ss:$16 sps:$4 sm:$0xff]   ;;  %v6549_v16 = vld [vmem:[#allocation6 + $0x6c4] ss:$16 sps:$4 sm:$0xff]  }
 0x2c9   :  { %4842 = vmatprep.subr.bf16.mxu1 %v6498_v34  ;;  %v6552_v34 = vld [vmem:[#allocation6 + $0x6cc] ss:$16 sps:$4 sm:$0xff]  }
 0x2cb   :  { %4679 = vmatpush1.bf16.msra.mxu0 %v6493_v17  ;;  %v6547_v17 = vld [vmem:[#allocation6 + $0x6c0] ss:$16 sps:$4 sm:$0xff]  }
 0x2cc   :  { %4843 = vmatpush1.bf16.msra.mxu1 %v6496_v18  ;;  %4680 = vmatprep.subr.bf16.mxu0 %v6501_v19  ;;  %v6550_v18 = vld [vmem:[#allocation6 + $0x6c8] ss:$16 sps:$4 sm:$0xff]   ;;  %v6555_v19 = vld [vmem:[#allocation6 + $0x6e4] ss:$16 sps:$4 sm:$0xff]  }
 0x2cd   :  { %4844 = vmatprep.subr.bf16.mxu1 %v6504_v20  ;;  %v6558_v20 = vld [vmem:[#allocation6 + $0x6ec] ss:$16 sps:$4 sm:$0xff]  }
 0x2cf   :  { %4681 = vmatpush1.bf16.msra.mxu0 %v6499_v21  ;;  %v6553_v21 = vld [vmem:[#allocation6 + $0x6e0] ss:$16 sps:$4 sm:$0xff]  }
 0x2d0   :  { %4845 = vmatpush1.bf16.msra.mxu1 %v6502_v22  ;;  %4682 = vmatprep.subr.bf16.mxu0 %v6507_v53  ;;  %v6556_v22 = vld [vmem:[#allocation6 + $0x6e8] ss:$16 sps:$4 sm:$0xff]   ;;  %v6561_v53 = vld [vmem:[#allocation6 + $0x704] ss:$16 sps:$4 sm:$0xff]  }
 0x2d1   :  { %4846 = vmatprep.subr.bf16.mxu1 %v6510_v11  ;;  %v6564_v11 = vld [vmem:[#allocation6 + $0x70c] ss:$16 sps:$4 sm:$0xff]  }
 0x2d3   :  { %4683 = vmatpush1.bf16.msra.mxu0 %v6505_v26  ;;  %v6559_v26 = vld [vmem:[#allocation6 + $0x700] ss:$16 sps:$4 sm:$0xff]  }
 0x2d4   :  { %4847 = vmatpush1.bf16.msra.mxu1 %v6508_v27  ;;  %4693 = vmatprep.subr.bf16.mxu0 %v6513_v28  ;;  %v6562_v27 = vld [vmem:[#allocation6 + $0x708] ss:$16 sps:$4 sm:$0xff]   ;;  %v6567_v28 = vld [vmem:[#allocation6 + $0x724] ss:$16 sps:$4 sm:$0xff]  }
 0x2d5   :  { %4857 = vmatprep.subr.bf16.mxu1 %v6516_v29  ;;  %v6570_v29 = vld [vmem:[#allocation6 + $0x72c] ss:$16 sps:$4 sm:$0xff]  }
 0x2e9   :  { %v2866_v36 = vpop.f32.mrb[4].mxu0  ;;  %v7101_v39 = vpop.f32.mrb[4].mxu1 }
 0x2ea   :  { %v6137_v37 = vadd.f32 %v2866_v36, %v542_v33  ;;  %v2868_v40 = vpop.f32.mrb[5].mxu0  ;;  %v2991_v42 = vpop.f32.mrb[5].mxu1  ;;  %v6576_v33 = vld [vmem:[#allocation6 + $0x74c] ss:$16 sps:$4 sm:$0xff]   ;;  %v6579_v36 = vld [vmem:[#allocation6 + $0x764] ss:$16 sps:$4 sm:$0xff]  }
 0x2eb   :  { %v6138_v41 = vadd.f32 %v2868_v40, %v546_v15  ;;  %v2870_v43 = vpop.f32.mrb[6].mxu0  ;;  %v6140_v45 = vadd.f32 %v2991_v42, %v554_v35  ;;  %v2993_v46 = vpop.f32.mrb[6].mxu1  ;;  %v6571_v15 = vld [vmem:[#allocation6 + $0x740] ss:$16 sps:$4 sm:$0xff]   ;;  %v6574_v35 = vld [vmem:[#allocation6 + $0x748] ss:$16 sps:$4 sm:$0xff]  }
 0x2ec   :  { %v3000_v44 = vmax.f32 %v6137_v37, 0.0  ;;  %v2871_v47 = vpop.f32.mrb[7].mxu0  ;;  %v2994_v48 = vpop.f32.mrb[7].mxu1  ;;  %v6582_v37 = vld [vmem:[#allocation6 + $0x76c] ss:$16 sps:$4 sm:$0xff]   ;;  %v549_v46 = vsub.s32 6, %v7066_v38 }
 0x2ed   :  { %v3001_v24 = vmax.f32 %v6138_v41, 0.0  ;;  %v3003_v50 = vmax.f32 %v6140_v45, 0.0  ;;  %v6577_v40 = vld [vmem:[#allocation6 + $0x760] ss:$16 sps:$4 sm:$0xff]   ;;  %v6580_v41 = vld [vmem:[#allocation6 + $0x768] ss:$16 sps:$4 sm:$0xff]  }
 0x2ee   :  { %v3008_v56 = vpack.c.bf16 %v3000_v44, %v3000_v44  ;;  %v6585_v42 = vld [vmem:[#allocation6 + $0x784] ss:$16 sps:$4 sm:$0xff]   ;;  %v6588_v43 = vld [vmem:[#allocation6 + $0x78c] ss:$16 sps:$4 sm:$0xff]   ;;  %v6583_v44 = vld [vmem:[#allocation6 + $0x780] ss:$16 sps:$4 sm:$0xff]  }
 0x2ef   :  { %v3009_v51 = vpack.c.bf16 %v3001_v24, %v3001_v24  ;;  %v3011_v59 = vpack.c.bf16 %v3003_v50, %v3003_v50  ;;  %v6586_v45 = vld [vmem:[#allocation6 + $0x788] ss:$16 sps:$4 sm:$0xff]   ;;  %v6591_v47 = vld [vmem:[#allocation6 + $0x7a4] ss:$16 sps:$4 sm:$0xff]   ;;  %v6594_v24 = vld [vmem:[#allocation6 + $0x7ac] ss:$16 sps:$4 sm:$0xff]  }
 0x2f0   :  { %v6589_v48 = vld [vmem:[#allocation6 + $0x7a0] ss:$16 sps:$4 sm:$0xff]   ;;  %v6592_v50 = vld [vmem:[#allocation6 + $0x7a8] ss:$16 sps:$4 sm:$0xff]  }
 0x2f1   :  { %4684 = vmatprep.mubr.bf16.mxu0 %v3009_v51  ;;  %4848 = vmatprep.mubr.bf16.mxu1 %v3009_v51  ;;  %v6647_v51 = vld [vmem:[#allocation4] sm:$0xff]  ;;  %v6639_v38 = vld [vmem:[#allocation12] sm:$0xff]  }
 0x2f2   :  { %4685 = vmatmul.mubr.bf16.vlgmr.msra.gmra.mrb[8].mxu0 %v3008_v56  ;;  %4849 = vmatmul.mubr.bf16.vlgmr.msra.gmra.mrb[8].mxu1 %v3008_v56  ;;  %v6600_v56 = vld [vmem:[#allocation6 + $0x7cc] ss:$16 sps:$4 sm:$0xff]  }
 0x2f3   :  { %4694 = vmatpush1.bf16.msra.mxu0 %v6511_v52  ;;  %4858 = vmatpush1.bf16.msra.mxu1 %v6514_v55  ;;  %v550_v52 = vrot.slane %v6647_v51, %v549_v46  ;;  %v6597_v55 = vld [vmem:[#allocation6 + $0x7c4] ss:$16 sps:$4 sm:$0xff]  }
 0x2f4   :  { %4725 = vmatprep.mubr.bf16.mxu0 %v3011_v59  ;;  %4889 = vmatprep.mubr.bf16.mxu1 %v3011_v59 }
 0x2f5   :  { %4695 = vmatprep.subr.bf16.mxu0 %v6519_v4  ;;  %4859 = vmatprep.subr.bf16.mxu1 %v6522_v58  ;;  %v6595_v4 = vld [vmem:[#allocation6 + $0x7c0] ss:$16 sps:$4 sm:$0xff]   ;;  %v6598_v58 = vld [vmem:[#allocation6 + $0x7c8] ss:$16 sps:$4 sm:$0xff]   ;;  %v6139_v59 = vadd.f32 %v7101_v39, %v550_v52 }
 0x2f6   :  { %v6611_v39 = vld [vmem:[#allocation9 + $0x48] sm:$0xff]  }
 0x2f7   :  { %4696 = vmatpush1.bf16.msra.mxu0 %v6517_v60  ;;  %4860 = vmatpush1.bf16.msra.mxu1 %v6520_v61  ;;  %v6603_v60 = vld [vmem:[#allocation6 + $0x7e4] ss:$16 sps:$4 sm:$0xff]   ;;  %v6606_v61 = vld [vmem:[#allocation6 + $0x7ec] ss:$16 sps:$4 sm:$0xff]  }
 0x2f8   :  { %4697 = vmatprep.subr.bf16.mxu0 %v6525_v62  ;;  %4861 = vmatprep.subr.bf16.mxu1 %v6528_v63  ;;  %v6601_v62 = vld [vmem:[#allocation6 + $0x7e0] ss:$16 sps:$4 sm:$0xff]   ;;  %v6604_v63 = vld [vmem:[#allocation6 + $0x7e8] ss:$16 sps:$4 sm:$0xff]  }
 0x2fb   :  { %4698 = vmatpush1.bf16.msra.mxu0 %v6523_v0  ;;  %4862 = vmatpush1.bf16.msra.mxu1 %v6526_v1  ;;  %v3002_v0 = vmax.f32 %v6139_v59, 0.0  ;;  %v6607_v1 = vld [vmem:[#allocation9 + $0x40] sm:$0xff]  }
 0x2fc   :  { %4699 = vmatprep.subr.bf16.mxu0 %v6531_v2  ;;  %4863 = vmatprep.subr.bf16.mxu1 %v6534_v57  ;;  %v6608_v2 = vld [vmem:[#allocation9 + $0xc0] sm:$0xff]  }
 0x2fd   :  { %v6609_v57 = vld [vmem:[#allocation9] sm:$0xff]  }
 0x2ff   :  { %4700 = vmatpush1.bf16.msra.mxu0 %v6529_v5  ;;  %4864 = vmatpush1.bf16.msra.mxu1 %v6532_v6  ;;  %v6610_v5 = vld [vmem:[#allocation9 + $0x80] sm:$0xff]   ;;  %v3010_v6 = vpack.c.bf16 %v3002_v0, %v3002_v0 }
 0x300   :  { %4701 = vmatprep.subr.bf16.mxu0 %v6537_v25  ;;  %4865 = vmatprep.subr.bf16.mxu1 %v6540_v7  ;;  %v6612_v25 = vld [vmem:[#allocation9 + $0xc8] sm:$0xff]  }
 0x301   :  { %v6613_v7 = vld [vmem:[#allocation9 + $0x8] sm:$0xff]  }
 0x302   :  { %v6643_v0 = vld [vmem:[#allocation12 + $0x20] sm:$0xff]  }
 0x303   :  { %4702 = vmatpush1.bf16.msra.mxu0 %v6535_v8  ;;  %4866 = vmatpush1.bf16.msra.mxu1 %v6538_v9  ;;  %v6614_v8 = vld [vmem:[#allocation9 + $0x88] sm:$0xff]   ;;  %v6615_v9 = vld [vmem:[#allocation9 + $0x50] sm:$0xff]  }
 0x304   :  { %4703 = vmatprep.subr.bf16.mxu0 %v6543_v10  ;;  %4867 = vmatprep.subr.bf16.mxu1 %v6546_v23  ;;  %v6616_v10 = vld [vmem:[#allocation9 + $0xd0] sm:$0xff]  }
 0x305   :  { %v6617_v23 = vld [vmem:[#allocation9 + $0x10] sm:$0xff]  }
 0x307   :  { %4704 = vmatpush1.bf16.msra.mxu0 %v6541_v13  ;;  %4868 = vmatpush1.bf16.msra.mxu1 %v6544_v14  ;;  %v6618_v13 = vld [vmem:[#allocation9 + $0x90] sm:$0xff]   ;;  %v6619_v14 = vld [vmem:[#allocation9 + $0x58] sm:$0xff]  }
 0x308   :  { %4705 = vmatprep.subr.bf16.mxu0 %v6549_v16  ;;  %4869 = vmatprep.subr.bf16.mxu1 %v6552_v34  ;;  %v6620_v16 = vld [vmem:[#allocation9 + $0xd8] sm:$0xff]  }
 0x309   :  { %v6621_v34 = vld [vmem:[#allocation9 + $0x18] sm:$0xff]  }
 0x30b   :  { %4706 = vmatpush1.bf16.msra.mxu0 %v6547_v17  ;;  %4870 = vmatpush1.bf16.msra.mxu1 %v6550_v18  ;;  %v6622_v17 = vld [vmem:[#allocation9 + $0x98] sm:$0xff]   ;;  %v6623_v18 = vld [vmem:[#allocation9 + $0x60] sm:$0xff]  }
 0x30c   :  { %4707 = vmatprep.subr.bf16.mxu0 %v6555_v19  ;;  %4871 = vmatprep.subr.bf16.mxu1 %v6558_v20  ;;  %v6624_v19 = vld [vmem:[#allocation9 + $0xe0] sm:$0xff]  }
 0x30d   :  { %v6625_v20 = vld [vmem:[#allocation9 + $0x20] sm:$0xff]  }
 0x30f   :  { %4708 = vmatpush1.bf16.msra.mxu0 %v6553_v21  ;;  %4872 = vmatpush1.bf16.msra.mxu1 %v6556_v22  ;;  %v6626_v21 = vld [vmem:[#allocation9 + $0xa0] sm:$0xff]   ;;  %v6627_v22 = vld [vmem:[#allocation9 + $0x68] sm:$0xff]  }
 0x310   :  { %4709 = vmatprep.subr.bf16.mxu0 %v6561_v53  ;;  %4873 = vmatprep.subr.bf16.mxu1 %v6564_v11  ;;  %v6628_v53 = vld [vmem:[#allocation9 + $0xe8] sm:$0xff]  }
 0x311   :  { %v6629_v11 = vld [vmem:[#allocation9 + $0x28] sm:$0xff]  }
 0x313   :  { %4710 = vmatpush1.bf16.msra.mxu0 %v6559_v26  ;;  %4874 = vmatpush1.bf16.msra.mxu1 %v6562_v27  ;;  %v6630_v26 = vld [vmem:[#allocation9 + $0xa8] sm:$0xff]   ;;  %v6631_v27 = vld [vmem:[#allocation9 + $0x70] sm:$0xff]  }
 0x314   :  { %4711 = vmatprep.subr.bf16.mxu0 %v6567_v28  ;;  %4875 = vmatprep.subr.bf16.mxu1 %v6570_v29  ;;  %v6632_v28 = vld [vmem:[#allocation9 + $0xf0] sm:$0xff]  }
 0x315   :  { %v6633_v29 = vld [vmem:[#allocation9 + $0x30] sm:$0xff]  }
 0x317   :  { %4712 = vmatpush1.bf16.msra.mxu0 %v6565_v30  ;;  %4876 = vmatpush1.bf16.msra.mxu1 %v6568_v31  ;;  %v6634_v30 = vld [vmem:[#allocation9 + $0xb0] sm:$0xff]   ;;  %v6635_v31 = vld [vmem:[#allocation9 + $0x78] sm:$0xff]  }
 0x318   :  { %4713 = vmatprep.subr.bf16.mxu0 %v6573_v32  ;;  %4877 = vmatprep.subr.bf16.mxu1 %v6576_v33  ;;  %v6636_v32 = vld [vmem:[#allocation9 + $0xf8] sm:$0xff]  }
 0x319   :  { %v6637_v33 = vld [vmem:[#allocation9 + $0x38] sm:$0xff]  }
 0x31b   :  { %4714 = vmatpush1.bf16.msra.mxu0 %v6571_v15  ;;  %4878 = vmatpush1.bf16.msra.mxu1 %v6574_v35  ;;  %v6638_v15 = vld [vmem:[#allocation9 + $0xb8] sm:$0xff]   ;;  %v6848_v35 = vmov 0.0  }
 0x31c   :  { %4715 = vmatprep.subr.bf16.mxu0 %v6579_v36  ;;  %4879 = vmatprep.subr.bf16.mxu1 %v6582_v37  ;;  %v3268_v36 = vld [vmem:[#allocation7] sm:$0xf] }
 0x31d   :  { %v3273_v37 = vrot.slane %v3268_v36, %v525_v49 }
 0x31f   :  { %4716 = vmatpush1.bf16.msra.mxu0 %v6577_v40  ;;  %4880 = vmatpush1.bf16.msra.mxu1 %v6580_v41  ;;  %v3281_v40 = vrot.slane %v3268_v36, %v533_v12  ;;  %v3277_v41 = vrot.slane %v3268_v36, %v529_v3 }
 0x320   :  { %4717 = vmatprep.subr.bf16.mxu0 %v6585_v42  ;;  %4881 = vmatprep.subr.bf16.mxu1 %v6588_v43  ;;  %v3285_v42 = vrot.slane %v3268_v36, %v537_v54 }
 0x323   :  { %4718 = vmatpush1.bf16.msra.mxu0 %v6583_v44  ;;  %4882 = vmatpush1.bf16.msra.mxu1 %v6586_v45 }
 0x324   :  { %4719 = vmatprep.subr.bf16.mxu0 %v6591_v47  ;;  %4883 = vmatprep.subr.bf16.mxu1 %v6594_v24 }
 0x327   :  { %4720 = vmatpush1.bf16.msra.mxu0 %v6589_v48  ;;  %4884 = vmatpush1.bf16.msra.mxu1 %v6592_v50 }
 0x328   :  { %4721 = vmatprep.subr.bf16.mxu0 %v6597_v55  ;;  %4885 = vmatprep.subr.bf16.mxu1 %v6600_v56 }
 0x32b   :  { %4722 = vmatpush1.bf16.msra.mxu0 %v6595_v4  ;;  %4886 = vmatpush1.bf16.msra.mxu1 %v6598_v58 }
 0x32c   :  { %4723 = vmatprep.subr.bf16.mxu0 %v6603_v60  ;;  %4887 = vmatprep.subr.bf16.mxu1 %v6606_v61  ;;  %v6640_v61 = vld [vmem:[#allocation12 + $0x8] sm:$0xff]  }
 0x32f   :  { %4724 = vmatpush1.bf16.msra.mxu0 %v6601_v62  ;;  %4888 = vmatpush1.bf16.msra.mxu1 %v6604_v63  ;;  %v6641_v62 = vld [vmem:[#allocation12 + $0x10] sm:$0xff]   ;;  %v6642_v63 = vld [vmem:[#allocation12 + $0x18] sm:$0xff]  }
 0x330   :  { %6060 = vmatprep.subr.bf16.mxu0 %v6607_v1  ;;  %6082 = vmatprep.subr.bf16.mxu1 %v6608_v2  ;;  %v6644_v1 = vld [vmem:[#allocation12 + $0x28] sm:$0xff]   ;;  %v6645_v2 = vld [vmem:[#allocation12 + $0x30] sm:$0xff]  }
 0x332   :  { %4726 = vmatmul.mubr.bf16.vlgmr.msra.gmra.mrb[8].mxu0 %v3010_v6  ;;  %4890 = vmatmul.mubr.bf16.vlgmr.msra.gmra.mrb[8].mxu1 %v3010_v6 }
 0x333   :  { %6061 = vmatpush3.bf16.msra.mxu0 %v6609_v57  ;;  %6083 = vmatpush3.bf16.msra.mxu1 %v6610_v5  ;;  %v6646_v57 = vld [vmem:[#allocation12 + $0x38] sm:$0xff]  }
 0x334   :  { %6062 = vmatprep.subr.bf16.mxu0 %v6611_v39  ;;  %6084 = vmatprep.subr.bf16.mxu1 %v6612_v25  ;;  %v6018_v39 = vld [vmem:[#allocation10] ss:$0 sm:$0xff] }
 0x337   :  { %6063 = vmatpush3.bf16.msra.mxu0 %v6613_v7  ;;  %6085 = vmatpush3.bf16.msra.mxu1 %v6614_v8 }
 0x338   :  { %6064 = vmatprep.subr.bf16.mxu0 %v6615_v9  ;;  %6086 = vmatprep.subr.bf16.mxu1 %v6616_v10 }
 0x33b   :  { %6065 = vmatpush3.bf16.msra.mxu0 %v6617_v23  ;;  %6087 = vmatpush3.bf16.msra.mxu1 %v6618_v13 }
 0x33c   :  { %6066 = vmatprep.subr.bf16.mxu0 %v6619_v14  ;;  %6088 = vmatprep.subr.bf16.mxu1 %v6620_v16 }
 0x33f   :  { %6067 = vmatpush3.bf16.msra.mxu0 %v6621_v34  ;;  %6089 = vmatpush3.bf16.msra.mxu1 %v6622_v17 }
 0x340   :  { %6068 = vmatprep.subr.bf16.mxu0 %v6623_v18  ;;  %6090 = vmatprep.subr.bf16.mxu1 %v6624_v19  ;;  %v6051_v19 = vld [vmem:[#allocation13] ss:$0 sm:$0xff] }
 0x343   :  { %6069 = vmatpush3.bf16.msra.mxu0 %v6625_v20  ;;  %6091 = vmatpush3.bf16.msra.mxu1 %v6626_v21 }
 0x344   :  { %6070 = vmatprep.subr.bf16.mxu0 %v6627_v22  ;;  %6092 = vmatprep.subr.bf16.mxu1 %v6628_v53 }
 0x347   :  { %6071 = vmatpush3.bf16.msra.mxu0 %v6629_v11  ;;  %6093 = vmatpush3.bf16.msra.mxu1 %v6630_v26 }
 0x348   :  { %6072 = vmatprep.subr.bf16.mxu0 %v6631_v27  ;;  %6094 = vmatprep.subr.bf16.mxu1 %v6632_v28 }
 0x34b   :  { %6073 = vmatpush3.bf16.msra.mxu0 %v6633_v29  ;;  %6095 = vmatpush3.bf16.msra.mxu1 %v6634_v30 }
 0x34c   :  { %6074 = vmatprep.subr.bf16.mxu0 %v6635_v31  ;;  %6096 = vmatprep.subr.bf16.mxu1 %v6636_v32 }
 0x34f   :  { %6075 = vmatpush3.bf16.msra.mxu0 %v6637_v33  ;;  %6097 = vmatpush3.bf16.msra.mxu1 %v6638_v15 }
 0x350   :  { %6113 = vmatprep.subr.bf16.mxu0 %v6848_v35 }
 0x405   :  { %v4727_v43 = vpop.f32.mrb[8].mxu0  ;;  %v4891_v44 = vpop.f32.mrb[8].mxu1 }
 0x406   :  { %v6141_v45 = vadd.f32 %v4727_v43, %v3273_v37  ;;  %v6143_v46 = vadd.f32 %v4891_v44, %v3281_v40  ;;  %v4729_v47 = vpop.f32.mrb[9].mxu0  ;;  %v4893_v24 = vpop.f32.mrb[9].mxu1 }
 0x407   :  { %v6142_v48 = vadd.f32 %v4729_v47, %v3277_v41  ;;  %v6144_v50 = vadd.f32 %v4893_v24, %v3285_v42  ;;  %v4731_v51 = vpop.f32.mrb[10].mxu0  ;;  %v4895_v52 = vpop.f32.mrb[10].mxu1 }
 0x408   :  { %v4898_v49 = vmax.f32 %v6141_v45, 0.0  ;;  %v4900_v55 = vmax.f32 %v6143_v46, 0.0  ;;  %v4732_v56 = vpop.f32.mrb[11].mxu0  ;;  %v4896_v12 = vpop.f32.mrb[11].mxu1 }
 0x409   :  { %v4899_v4 = vmax.f32 %v6142_v48, 0.0  ;;  %v4901_v58 = vmax.f32 %v6144_v50, 0.0 }
 0x40a   :  { %v4902_v54 = vpack.c.bf16 %v4898_v49, %v4898_v49  ;;  %v4904_v60 = vpack.c.bf16 %v4900_v55, %v4900_v55 }
 0x40b   :  { %v4903_v3 = vpack.c.bf16 %v4899_v4, %v4899_v4  ;;  %v4905_v59 = vpack.c.bf16 %v4901_v58, %v4901_v58 }
 0x40d   :  { %5201 = vmatprep.mubr.bf16.mxu0 %v4903_v3  ;;  %5241 = vmatprep.mubr.bf16.mxu1 %v4905_v59 }
 0x40e   :  { %5202 = vmatmul.mubr.bf16.vlgmr.msra.gmra.mrb[12].mxu0 %v4902_v54  ;;  %5242 = vmatmul.mubr.bf16.vlgmr.msra.gmra.mrb[12].mxu1 %v4904_v60 }
 0x40f   :  { %6114 = vmatpush3.bf16.msra.mxu0 %v6639_v38  ;;  %6129 = vmatprep.mubr.msk.bf16.mxu0 %vm6849_vm0, %v6848_v35 }
 0x410   :  { %6115 = vmatprep.subr.bf16.mxu0 %v6848_v35 }
 0x413   :  { %6116 = vmatpush3.bf16.msra.mxu0 %v6640_v61 }
 0x414   :  { %6117 = vmatprep.subr.bf16.mxu0 %v6848_v35 }
 0x417   :  { %6118 = vmatpush3.bf16.msra.mxu0 %v6641_v62 }
 0x418   :  { %6119 = vmatprep.subr.bf16.mxu0 %v6848_v35 }
 0x41b   :  { %6120 = vmatpush3.bf16.msra.mxu0 %v6642_v63 }
 0x41c   :  { %6121 = vmatprep.subr.bf16.mxu0 %v6848_v35 }
 0x41f   :  { %6122 = vmatpush3.bf16.msra.mxu0 %v6643_v0 }
 0x420   :  { %6123 = vmatprep.subr.bf16.mxu0 %v6848_v35 }
 0x423   :  { %6124 = vmatpush3.bf16.msra.mxu0 %v6644_v1 }
 0x424   :  { %6125 = vmatprep.subr.bf16.mxu0 %v6848_v35 }
 0x427   :  { %6126 = vmatpush3.bf16.msra.mxu0 %v6645_v2 }
 0x428   :  { %6127 = vmatprep.subr.bf16.mxu0 %v6848_v35 }
 0x42b   :  { %6128 = vmatpush3.bf16.msra.mxu0 %v6646_v57 }
 0x4e1   :  { %v6076_v5 = vpop.f32.mrb[12].mxu0  ;;  %v6098_v6 = vpop.f32.mrb[12].mxu1 }
 0x4e2   :  { %v6077_v25 = vpop.f32.mrb[13].mxu0  ;;  %v6099_v7 = vpop.f32.mrb[13].mxu1 }
 0x4e3   :  { %v6078_v8 = vadd.f32 %v6077_v25, %v6076_v5  ;;  %v6100_v9 = vadd.f32 %v6099_v7, %v6098_v6  ;;  %v6079_v10 = vpop.f32.mrb[14].mxu0  ;;  %v6101_v23 = vpop.f32.mrb[14].mxu1 }
 0x4e4   :  { %v6080_v13 = vpop.f32.mrb[15].mxu0  ;;  %v6102_v14 = vpop.f32.mrb[15].mxu1 }
 0x4e5   :  { %v5204_v16 = vadd.f32 %v6078_v8, %v6018_v39 }
 0x4e7   :  { %v5244_v34 = vadd.f32 %v6100_v9, %v5204_v16 }
 0x4e9   :  { %v5249_v17 = vmax.f32 %v5244_v34, 0.0 }
 0x4eb   :  { %v5250_v18 = vpack.c.bf16 %v5249_v17, %v5249_v17 }
 0x4ed   :  { %6130 = vmatmul.mubr.bf16.vlgmr.msra.gmra.mrb[16].mxu0 %v5250_v18 }
 0x5c0   :  { %v5356_v20 = vpop.f32.mrb[16].mxu0 }
 0x5c1   :  { %v5357_v21 = vadd.f32 %v6051_v19, %v5356_v20  ;;  %v6131_v22 = vpop.f32.mrb[17].mxu0 }
 0x5c2   :  { %v5359_v53 = vpop.f32.mrb[18].mxu0 }
 0x5c3   :  { %5362 = vst [vmem:[%s7125_s9] sm:$0xff] %v5357_v21  ;;  %v6132_v11 = vpop.f32.mrb[19].mxu0 }
 0x5c4   :  { %5367 = vsyncpa [#allocation3], 1 }
 0x5c5   :  { %5368 = vsyncpa [#allocation5], 1 }
 0x5c6   :  { %5369 = vsyncpa [#allocation8], 1 }
 0x5c7   :  { %5370 = vsyncpa [#allocation11], 1 }
 0x5c8   :  { %5371 = vsyncpa [#allocation14], 1 }

</bundles_post_ra>
